<compile_context>
chip_gen: v7x
topology: tpu7x:2x2x1
jax: 0.10.0
libtpu: 0.0.40
codegen_flags: <defaults>
</compile_context>

<pallas_src>
import functools
import random

import jax
import jax.numpy as jnp
from jax.experimental import pallas as pl
from jax.experimental.pallas import tpu as pltpu

LANE = 128


def _sigmoid(x):
    return 1.0 / (1.0 + jnp.exp(-x))


# ---------------------------------------------------------------------------
# Fused bidirectional encoder.
# ---------------------------------------------------------------------------
def enc_kernel(x_ref, wi_ref, wh_ref, b_ref, out_ref, hfin_ref, h_scr):
    t = pl.program_id(1)

    @pl.when(t == 0)
    def _():
        h_scr[...] = jnp.zeros_like(h_scr)          # PyTorch GRU h0 = zeros

    x = x_ref[0]                                    # [B, E]
    h = h_scr[...]                                  # [B, H]
    b = b_ref[0]                                    # [4, H] rows: r, z, in, hn

    r = _sigmoid(jnp.dot(x, wi_ref[0, 0], preferred_element_type=jnp.float32)
                 + jnp.dot(h, wh_ref[0, 0], preferred_element_type=jnp.float32)
                 + b[0:1, :])
    z = _sigmoid(jnp.dot(x, wi_ref[0, 1], preferred_element_type=jnp.float32)
                 + jnp.dot(h, wh_ref[0, 1], preferred_element_type=jnp.float32)
                 + b[1:2, :])
    n = jnp.tanh(jnp.dot(x, wi_ref[0, 2], preferred_element_type=jnp.float32)
                 + b[2:3, :]
                 + r * (jnp.dot(h, wh_ref[0, 2],
                                preferred_element_type=jnp.float32)
                        + b[3:4, :]))
    h_new = (1.0 - z) * n + z * h

    h_scr[...] = h_new
    out_ref[0] = h_new.astype(out_ref.dtype)

    @pl.when(t == pl.num_programs(1) - 1)
    def _():
        hfin_ref[...] = h_new.astype(hfin_ref.dtype)


def run_encoder(x_tm, wi, wh, b):
    """x_tm: [S, B, E] time-major embeddings -> (enc_tm [S,B,2H], h0 [B,2H])."""
    S, B, E = x_tm.shape
    H = wh.shape[-1]

    def in_tmap(d, t):          # forward reads t, backward reads S-1-t
        return ((1 - d) * t + d * (S - 1 - t), 0, 0)

    def out_tmap(d, t):         # write at the original time position, dir offset
        return ((1 - d) * t + d * (S - 1 - t), 0, d)

    enc_tm, h_fin = pl.pallas_call(
        enc_kernel,
        grid=(2, S),
        in_specs=[
            pl.BlockSpec((1, B, E), in_tmap),
            pl.BlockSpec((1, 3, E, H), lambda d, t: (d, 0, 0, 0)),
            pl.BlockSpec((1, 3, H, H), lambda d, t: (d, 0, 0, 0)),
            pl.BlockSpec((1, 4, H), lambda d, t: (d, 0, 0)),
        ],
        out_specs=[
            pl.BlockSpec((1, B, H), out_tmap),
            pl.BlockSpec((B, H), lambda d, t: (0, d)),
        ],
        out_shape=[
            jax.ShapeDtypeStruct((S, B, 2 * H), jnp.float32),
            jax.ShapeDtypeStruct((B, 2 * H), jnp.float32),
        ],
        scratch_shapes=[pltpu.VMEM((B, H), jnp.float32)],
        compiler_params=pltpu.CompilerParams(
            dimension_semantics=("parallel", "arbitrary")),
    )(x_tm, wi, wh, b)
    return enc_tm, h_fin


# ---------------------------------------------------------------------------
# Fused decoder: attention + GRU cell + FC, whole target loop in one grid.
# ---------------------------------------------------------------------------
def dec_kernel(tf_ref, teach_ref, h0_ref, enc_ref, embcn_ref,
               wie_ref, wic_ref, whh_ref, b_ref, wfc_ref, bfc_ref,
               logits_ref, h_scr, pred_scr, *, vocab_pad):
    i = pl.program_id(0)

    @pl.when(i == 0)
    def _():
        h_scr[...] = h0_ref[...]
        pred_scr[...] = jnp.zeros_like(pred_scr)

    # ---- choose this step's input token (one-hot over the padded vocab) ----
    use_teacher = jnp.logical_or(i == 0, tf_ref[jnp.maximum(i - 1, 0)] == 1)
    sel = use_teacher.astype(jnp.float32)
    inp_oh = sel * teach_ref[0] + (1.0 - sel) * pred_scr[...]      # [B, Vp]
    emb = jnp.dot(inp_oh, embcn_ref[...],
                  preferred_element_type=jnp.float32)              # [B, Ec]

    h = h_scr[...]                                   # [B, D]
    enc = enc_ref[...]                               # [B, S, D]

    # ---- dot-product attention over source positions ----
    scores = jnp.sum(enc * h[:, None, :], axis=-1)   # [B, S]
    scores = scores - jnp.max(scores, axis=-1, keepdims=True)
    e = jnp.exp(scores)
    attn = e * pl.reciprocal(jnp.sum(e, axis=-1, keepdims=True), approx=True)
    ctx = jnp.sum(attn[:, :, None] * enc, axis=1)    # [B, D]

    # ---- GRU cell; input = [embedded ; context] realised as split matmuls ----
    b = b_ref[...]                                   # [4, D] rows: r, z, in, hn
    r = _sigmoid(jnp.dot(emb, wie_ref[0], preferred_element_type=jnp.float32)
                 + jnp.dot(ctx, wic_ref[0], preferred_element_type=jnp.float32)
                 + jnp.dot(h, whh_ref[0], preferred_element_type=jnp.float32)
                 + b[0:1, :])
    z = _sigmoid(jnp.dot(emb, wie_ref[1], preferred_element_type=jnp.float32)
                 + jnp.dot(ctx, wic_ref[1], preferred_element_type=jnp.float32)
                 + jnp.dot(h, whh_ref[1], preferred_element_type=jnp.float32)
                 + b[1:2, :])
    n = jnp.tanh(jnp.dot(emb, wie_ref[2], preferred_element_type=jnp.float32)
                 + jnp.dot(ctx, wic_ref[2], preferred_element_type=jnp.float32)
                 + b[2:3, :]
                 + r * (jnp.dot(h, whh_ref[2],
                                preferred_element_type=jnp.float32)
                        + b[3:4, :]))
    h_new = (1.0 - z) * n + z * h
    h_scr[...] = h_new

    # ---- output projection (padded vocab lanes carry -1e9 bias) ----
    logits = (jnp.dot(h_new, wfc_ref[...], preferred_element_type=jnp.float32)
              + bfc_ref[...])                        # [B, Vp]
    logits_ref[0] = logits.astype(logits_ref.dtype)

    # ---- greedy top-1 -> one-hot, carried to the next step ----
    lane = jax.lax.broadcasted_iota(jnp.int32, logits.shape, 1)
    m = jnp.max(logits, axis=-1, keepdims=True)
    top1 = jnp.min(jnp.where(logits == m, lane, vocab_pad),
                   axis=-1, keepdims=True)           # first argmax, like torch
    pred_scr[...] = (lane == top1).astype(jnp.float32)


def run_decoder(tf_flags, teach_oh_tm, h0, enc_bm, p):
    Tm1, B, Vp = teach_oh_tm.shape
    D = h0.shape[1]
    S = enc_bm.shape[1]
    Ec = p["emb_cn"].shape[1]

    logits_tm = pl.pallas_call(
        functools.partial(dec_kernel, vocab_pad=Vp),
        grid_spec=pltpu.PrefetchScalarGridSpec(
            num_scalar_prefetch=1,
            grid=(Tm1,),
            in_specs=[
                pl.BlockSpec((1, B, Vp), lambda i, tf: (i, 0, 0)),
                pl.BlockSpec((B, D), lambda i, tf: (0, 0)),
                pl.BlockSpec((B, S, D), lambda i, tf: (0, 0, 0)),
                pl.BlockSpec((Vp, Ec), lambda i, tf: (0, 0)),
                pl.BlockSpec((3, Ec, D), lambda i, tf: (0, 0, 0)),
                pl.BlockSpec((3, D, D), lambda i, tf: (0, 0, 0)),
                pl.BlockSpec((3, D, D), lambda i, tf: (0, 0, 0)),
                pl.BlockSpec((4, D), lambda i, tf: (0, 0)),
                pl.BlockSpec((D, Vp), lambda i, tf: (0, 0)),
                pl.BlockSpec((1, Vp), lambda i, tf: (0, 0)),
            ],
            out_specs=pl.BlockSpec((1, B, Vp), lambda i, tf: (i, 0, 0)),
            scratch_shapes=[
                pltpu.VMEM((B, D), jnp.float32),    # carried hidden
                pltpu.VMEM((B, Vp), jnp.float32),   # carried greedy one-hot
            ],
        ),
        out_shape=jax.ShapeDtypeStruct((Tm1, B, Vp), jnp.float32),
        compiler_params=pltpu.CompilerParams(
            dimension_semantics=("arbitrary",)),
    )(tf_flags, teach_oh_tm, h0, enc_bm, p["emb_cn"],
      p["dec_wie"], p["dec_wic"], p["dec_whh"], p["dec_b"],
      p["wfc"], p["bfc"])
    return logits_tm


# ---------------------------------------------------------------------------
# Full forward (mirrors the PyTorch Seq2Seq.forward semantics), jitted.
# ---------------------------------------------------------------------------
@functools.partial(jax.jit, static_argnames=("cn_vocab",))
def seq2seq_forward(params, src, tgt, tf_flags, *, cn_vocab):
    B, S = src.shape
    T = tgt.shape[1]
    Bp = max(8, ((B + 7) // 8) * 8)                  # pad batch to sublanes
    Vp = params["wfc"].shape[1]

    src_p = jnp.pad(src, ((0, Bp - B), (0, 0)))
    tgt_p = jnp.pad(tgt, ((0, Bp - B), (0, 0)))

    # ---- encoder ----
    x = jnp.take(params["emb_en"], src_p, axis=0)    # [Bp, S, E]
    x_tm = jnp.transpose(x, (1, 0, 2))               # [S, Bp, E]
    enc_tm, h0 = run_encoder(x_tm, params["enc_wi"], params["enc_wh"],
                             params["enc_b"])
    enc_bm = jnp.transpose(enc_tm, (1, 0, 2))        # [Bp, S, 2H]

    # ---- decoder (whole target loop fused into one kernel) ----
    teach_oh = jax.nn.one_hot(tgt_p[:, :T - 1], Vp, dtype=jnp.float32)
    teach_oh_tm = jnp.transpose(teach_oh, (1, 0, 2))     # [T-1, Bp, Vp]
    logits_tm = run_decoder(tf_flags, teach_oh_tm, h0, enc_bm, params)

    logits = jnp.transpose(logits_tm, (1, 0, 2))[:B, :, :cn_vocab]   # [B,T-1,V]
    outputs = jnp.concatenate(
        [jnp.zeros((B, 1, cn_vocab), jnp.float32), logits], axis=1)  # [B, T, V]
    preds = jnp.argmax(logits, axis=-1)                              # [B, T-1]
    return outputs, preds


# ---------------------------------------------------------------------------
# deterministic parameter init (lane-aligned / padded layouts)
# ---------------------------------------------------------------------------
def init_params(key, *, en_vocab, cn_vocab, emb_dim, enc_hid):
    E, H = emb_dim, enc_hid
    D = 2 * H
    Vp = ((cn_vocab + LANE - 1) // LANE) * LANE
    ks = jax.random.split(key, 10)
    s = 0.1

    def w(k, shape):
        return (s * jax.random.normal(k, shape)).astype(jnp.float32)

    # FC projection padded to a lane multiple; padded lanes get -1e9 bias so
    # they never win the in-kernel argmax and are sliced off before returning.
    wfc = jnp.zeros((D, Vp), jnp.float32).at[:, :cn_vocab].set(
        w(ks[0], (D, cn_vocab)))
    bfc = jnp.full((1, Vp), -1e9, jnp.float32).at[:, :cn_vocab].set(0.0)
    emb_cn = jnp.zeros((Vp, E), jnp.float32).at[:cn_vocab].set(
        w(ks[1], (cn_vocab, E)))

    return {
        "emb_en": w(ks[2], (en_vocab, E)),
        "emb_cn": emb_cn,
        # encoder: 2 directions, gates r/z/n stacked on a leading axis
        "enc_wi": w(ks[3], (2, 3, E, H)),
        "enc_wh": w(ks[4], (2, 3, H, H)),
        "enc_b": w(ks[5], (2, 4, H)),          # rows: b_r, b_z, b_in, b_hn
        # decoder GRU (input = [emb ; context], hidden = 2H)
        "dec_wie": w(ks[6], (3, E, D)),
        "dec_wic": w(ks[7], (3, D, D)),
        "dec_whh": w(ks[8], (3, D, D)),
        "dec_b": w(ks[9], (4, D)),
        "wfc": wfc,
        "bfc": bfc,
    }


# ---------------------------------------------------------------------------
if __name__ == "__main__":
    random.seed(0)

    B, S, T = 2, 8, 8
    EMB = 128
    ENC_HID = 128                 # decoder hidden = 2 * ENC_HID = 256
    EN_VOCAB, CN_VOCAB = 32, 40

    key = jax.random.PRNGKey(0)
    kp, ksrc, ktgt = jax.random.split(key, 3)

    params = init_params(kp, en_vocab=EN_VOCAB, cn_vocab=CN_VOCAB,
                         emb_dim=EMB, enc_hid=ENC_HID)

    src = jax.random.randint(ksrc, (B, S), 0, EN_VOCAB, dtype=jnp.int32)
    tgt = jax.random.randint(ktgt, (B, T), 0, CN_VOCAB, dtype=jnp.int32)

    teacher_forcing_ratio = 1.0
    # Host-side coin flips (same semantics/order as the PyTorch loop's
    # random.random() calls), hoisted into an array so the forward can be jitted.
    tf_flags = jnp.array(
        [1 if random.random() <= teacher_forcing_ratio else 0
         for _ in range(T - 1)], dtype=jnp.int32)

    outputs, preds = seq2seq_forward(params, src, tgt, tf_flags,
                                     cn_vocab=CN_VOCAB)
    outputs, preds = jax.block_until_ready((outputs, preds))

    assert outputs.shape == (B, T, CN_VOCAB), outputs.shape
    assert preds.shape == (B, T - 1), preds.shape
    assert bool(jnp.all(outputs[:, 0] == 0.0))          # slot t=0 stays zero
    assert bool(jnp.all(jnp.isfinite(outputs)))

    print("KERNEL_OK")
</pallas_src>

<mosaic_0001>
module attributes {stable_mosaic.version = 11 : i64} {
  func.func @enc_kernel(%arg0: i32, %arg1: i32, %arg2: memref<1x8x128xf32, #tpu.memory_space<vmem>>, %arg3: memref<1x3x128x128xf32, #tpu.memory_space<vmem>>, %arg4: memref<1x3x128x128xf32, #tpu.memory_space<vmem>>, %arg5: memref<1x4x128xf32, #tpu.memory_space<vmem>>, %arg6: memref<1x8x128xf32, #tpu.memory_space<vmem>>, %arg7: memref<8x128xf32, #tpu.memory_space<vmem>>, %arg8: memref<8x128xf32, #tpu.memory_space<vmem>>) attributes {dimension_semantics = [#tpu.dimension_semantics<parallel>, #tpu.dimension_semantics<arbitrary>], iteration_bounds = array<i64: 2, 8>, scalar_prefetch = 0 : i64, scratch_operands = 1 : i64, tpu.core_type = #tpu.core_type<tc>, window_params = [{transform_indices = @transform_0, window_bounds = array<i64: 1, 8, 128>}, {transform_indices = @transform_1, window_bounds = array<i64: 1, 3, 128, 128>}, {transform_indices = @transform_2, window_bounds = array<i64: 1, 3, 128, 128>}, {transform_indices = @transform_3, window_bounds = array<i64: 1, 4, 128>}, {transform_indices = @transform_4, window_bounds = array<i64: 1, 8, 128>}, {transform_indices = @transform_5, window_bounds = array<i64: 8, 128>}]} {
    %c0_i32 = arith.constant 0 : i32
    %0 = arith.cmpi eq, %arg1, %c0_i32 : i32
    %1 = arith.extui %0 : i1 to i32
    %c0_i32_0 = arith.constant 0 : i32
    %2 = arith.cmpi ne, %1, %c0_i32_0 : i32
    scf.if %2 {
      %cst_48 = arith.constant 0.000000e+00 : f32
      %69 = vector.broadcast %cst_48 : f32 to vector<8x128xf32>
      %c0_49 = arith.constant 0 : index
      %c0_50 = arith.constant 0 : index
      %70 = vector.load %arg8[%c0_49, %c0_50] : memref<8x128xf32, #tpu.memory_space<vmem>>, vector<8x128xf32>
      tpu.vector_store %arg8[%c0_49, %c0_50], %69 {strides = array<i32>} : memref<8x128xf32, #tpu.memory_space<vmem>>, vector<8x128xf32>,
    } else {
    }
    %c0 = arith.constant 0 : index
    %c0_1 = arith.constant 0 : index
    %c0_2 = arith.constant 0 : index
    %3 = vector.load %arg2[%c0, %c0_1, %c0_2] : memref<1x8x128xf32, #tpu.memory_space<vmem>>, vector<1x8x128xf32>
    %4 = vector.shape_cast %3 : vector<1x8x128xf32> to vector<8x128xf32>
    %c0_3 = arith.constant 0 : index
    %c0_4 = arith.constant 0 : index
    %5 = vector.load %arg8[%c0_3, %c0_4] : memref<8x128xf32, #tpu.memory_space<vmem>>, vector<8x128xf32>
    %c0_5 = arith.constant 0 : index
    %c0_6 = arith.constant 0 : index
    %c0_7 = arith.constant 0 : index
    %6 = vector.load %arg5[%c0_5, %c0_6, %c0_7] : memref<1x4x128xf32, #tpu.memory_space<vmem>>, vector<1x4x128xf32>
    %7 = vector.shape_cast %6 : vector<1x4x128xf32> to vector<4x128xf32>
    %c0_8 = arith.constant 0 : index
    %c0_9 = arith.constant 0 : index
    %c0_10 = arith.constant 0 : index
    %c0_11 = arith.constant 0 : index
    %8 = vector.load %arg3[%c0_8, %c0_9, %c0_10, %c0_11] : memref<1x3x128x128xf32, #tpu.memory_space<vmem>>, vector<1x1x128x128xf32>
    %9 = vector.shape_cast %8 : vector<1x1x128x128xf32> to vector<128x128xf32>
    %cst = arith.constant dense<0.000000e+00> : vector<8x128xf32>
    %10 = tpu.matmul %4, %9, %cst {dimension_numbers = #tpu.dot_dimension_numbers<[1], [0], [0], [1], [0, 0, 1, 1], [], []>} : vector<8x128xf32>, vector<128x128xf32>, vector<8x128xf32> -> vector<8x128xf32>
    %c0_12 = arith.constant 0 : index
    %c0_13 = arith.constant 0 : index
    %c0_14 = arith.constant 0 : index
    %c0_15 = arith.constant 0 : index
    %11 = vector.load %arg4[%c0_12, %c0_13, %c0_14, %c0_15] : memref<1x3x128x128xf32, #tpu.memory_space<vmem>>, vector<1x1x128x128xf32>
    %12 = vector.shape_cast %11 : vector<1x1x128x128xf32> to vector<128x128xf32>
    %cst_16 = arith.constant dense<0.000000e+00> : vector<8x128xf32>
    %13 = tpu.matmul %5, %12, %cst_16 {dimension_numbers = #tpu.dot_dimension_numbers<[1], [0], [0], [1], [0, 0, 1, 1], [], []>} : vector<8x128xf32>, vector<128x128xf32>, vector<8x128xf32> -> vector<8x128xf32>
    %14 = arith.addf %10, %13 : vector<8x128xf32>
    %15 = vector.extract_strided_slice %7 {offsets = [0, 0], sizes = [1, 128], strides = [1, 1]} : vector<4x128xf32> to vector<1x128xf32>
    %16 = vector.broadcast %15 : vector<1x128xf32> to vector<8x128xf32>
    %17 = arith.addf %14, %16 : vector<8x128xf32>
    %cst_17 = arith.constant 0.000000e+00 : f32
    %18 = vector.broadcast %cst_17 : f32 to vector<8x128xf32>
    %19 = arith.subf %18, %17 : vector<8x128xf32>
    %20 = math.exp %19 : vector<8x128xf32>
    %cst_18 = arith.constant 1.000000e+00 : f32
    %21 = vector.broadcast %cst_18 : f32 to vector<8x128xf32>
    %22 = arith.addf %21, %20 : vector<8x128xf32>
    %cst_19 = arith.constant 1.000000e+00 : f32
    %23 = vector.broadcast %cst_19 : f32 to vector<8x128xf32>
    %24 = arith.divf %23, %22 : vector<8x128xf32>
    %c0_20 = arith.constant 0 : index
    %c1 = arith.constant 1 : index
    %c0_21 = arith.constant 0 : index
    %c0_22 = arith.constant 0 : index
    %25 = vector.load %arg3[%c0_20, %c1, %c0_21, %c0_22] : memref<1x3x128x128xf32, #tpu.memory_space<vmem>>, vector<1x1x128x128xf32>
    %26 = vector.shape_cast %25 : vector<1x1x128x128xf32> to vector<128x128xf32>
    %cst_23 = arith.constant dense<0.000000e+00> : vector<8x128xf32>
    %27 = tpu.matmul %4, %26, %cst_23 {dimension_numbers = #tpu.dot_dimension_numbers<[1], [0], [0], [1], [0, 0, 1, 1], [], []>} : vector<8x128xf32>, vector<128x128xf32>, vector<8x128xf32> -> vector<8x128xf32>
    %c0_24 = arith.constant 0 : index
    %c1_25 = arith.constant 1 : index
    %c0_26 = arith.constant 0 : index
    %c0_27 = arith.constant 0 : index
    %28 = vector.load %arg4[%c0_24, %c1_25, %c0_26, %c0_27] : memref<1x3x128x128xf32, #tpu.memory_space<vmem>>, vector<1x1x128x128xf32>
    %29 = vector.shape_cast %28 : vector<1x1x128x128xf32> to vector<128x128xf32>
    %cst_28 = arith.constant dense<0.000000e+00> : vector<8x128xf32>
    %30 = tpu.matmul %5, %29, %cst_28 {dimension_numbers = #tpu.dot_dimension_numbers<[1], [0], [0], [1], [0, 0, 1, 1], [], []>} : vector<8x128xf32>, vector<128x128xf32>, vector<8x128xf32> -> vector<8x128xf32>
    %31 = arith.addf %27, %30 : vector<8x128xf32>
    %32 = vector.extract_strided_slice %7 {offsets = [1, 0], sizes = [1, 128], strides = [1, 1]} : vector<4x128xf32> to vector<1x128xf32>
    %33 = vector.broadcast %32 : vector<1x128xf32> to vector<8x128xf32>
    %34 = arith.addf %31, %33 : vector<8x128xf32>
    %cst_29 = arith.constant 0.000000e+00 : f32
    %35 = vector.broadcast %cst_29 : f32 to vector<8x128xf32>
    %36 = arith.subf %35, %34 : vector<8x128xf32>
    %37 = math.exp %36 : vector<8x128xf32>
    %cst_30 = arith.constant 1.000000e+00 : f32
    %38 = vector.broadcast %cst_30 : f32 to vector<8x128xf32>
    %39 = arith.addf %38, %37 : vector<8x128xf32>
    %cst_31 = arith.constant 1.000000e+00 : f32
    %40 = vector.broadcast %cst_31 : f32 to vector<8x128xf32>
    %41 = arith.divf %40, %39 : vector<8x128xf32>
    %c0_32 = arith.constant 0 : index
    %c2 = arith.constant 2 : index
    %c0_33 = arith.constant 0 : index
    %c0_34 = arith.constant 0 : index
    %42 = vector.load %arg3[%c0_32, %c2, %c0_33, %c0_34] : memref<1x3x128x128xf32, #tpu.memory_space<vmem>>, vector<1x1x128x128xf32>
    %43 = vector.shape_cast %42 : vector<1x1x128x128xf32> to vector<128x128xf32>
    %cst_35 = arith.constant dense<0.000000e+00> : vector<8x128xf32>
    %44 = tpu.matmul %4, %43, %cst_35 {dimension_numbers = #tpu.dot_dimension_numbers<[1], [0], [0], [1], [0, 0, 1, 1], [], []>} : vector<8x128xf32>, vector<128x128xf32>, vector<8x128xf32> -> vector<8x128xf32>
    %45 = vector.extract_strided_slice %7 {offsets = [2, 0], sizes = [1, 128], strides = [1, 1]} : vector<4x128xf32> to vector<1x128xf32>
    %46 = vector.broadcast %45 : vector<1x128xf32> to vector<8x128xf32>
    %47 = arith.addf %44, %46 : vector<8x128xf32>
    %c0_36 = arith.constant 0 : index
    %c2_37 = arith.constant 2 : index
    %c0_38 = arith.constant 0 : index
    %c0_39 = arith.constant 0 : index
    %48 = vector.load %arg4[%c0_36, %c2_37, %c0_38, %c0_39] : memref<1x3x128x128xf32, #tpu.memory_space<vmem>>, vector<1x1x128x128xf32>
    %49 = vector.shape_cast %48 : vector<1x1x128x128xf32> to vector<128x128xf32>
    %cst_40 = arith.constant dense<0.000000e+00> : vector<8x128xf32>
    %50 = tpu.matmul %5, %49, %cst_40 {dimension_numbers = #tpu.dot_dimension_numbers<[1], [0], [0], [1], [0, 0, 1, 1], [], []>} : vector<8x128xf32>, vector<128x128xf32>, vector<8x128xf32> -> vector<8x128xf32>
    %51 = vector.extract_strided_slice %7 {offsets = [3, 0], sizes = [1, 128], strides = [1, 1]} : vector<4x128xf32> to vector<1x128xf32>
    %52 = vector.broadcast %51 : vector<1x128xf32> to vector<8x128xf32>
    %53 = arith.addf %50, %52 : vector<8x128xf32>
    %54 = arith.mulf %24, %53 : vector<8x128xf32>
    %55 = arith.addf %47, %54 : vector<8x128xf32>
    %56 = math.tanh %55 : vector<8x128xf32>
    %cst_41 = arith.constant 1.000000e+00 : f32
    %57 = vector.broadcast %cst_41 : f32 to vector<8x128xf32>
    %58 = arith.subf %57, %41 : vector<8x128xf32>
    %59 = arith.mulf %58, %56 : vector<8x128xf32>
    %60 = arith.mulf %41, %5 : vector<8x128xf32>
    %61 = arith.addf %59, %60 : vector<8x128xf32>
    %c0_42 = arith.constant 0 : index
    %c0_43 = arith.constant 0 : index
    %62 = vector.load %arg8[%c0_42, %c0_43] : memref<8x128xf32, #tpu.memory_space<vmem>>, vector<8x128xf32>
    tpu.vector_store %arg8[%c0_42, %c0_43], %61 {strides = array<i32>} : memref<8x128xf32, #tpu.memory_space<vmem>>, vector<8x128xf32>,
    %c0_44 = arith.constant 0 : index
    %c0_45 = arith.constant 0 : index
    %c0_46 = arith.constant 0 : index
    %63 = vector.load %arg6[%c0_44, %c0_45, %c0_46] : memref<1x8x128xf32, #tpu.memory_space<vmem>>, vector<1x8x128xf32>
    %64 = vector.shape_cast %63 : vector<1x8x128xf32> to vector<8x128xf32>
    %65 = vector.shape_cast %61 : vector<8x128xf32> to vector<1x8x128xf32>
    tpu.vector_store %arg6[%c0_44, %c0_45, %c0_46], %65 {strides = array<i32>} : memref<1x8x128xf32, #tpu.memory_space<vmem>>, vector<1x8x128xf32>,
    %c7_i32 = arith.constant 7 : i32
    %66 = arith.cmpi eq, %arg1, %c7_i32 : i32
    %67 = arith.extui %66 : i1 to i32
    %c0_i32_47 = arith.constant 0 : i32
    %68 = arith.cmpi ne, %67, %c0_i32_47 : i32
    scf.if %68 {
      %c0_48 = arith.constant 0 : index
      %c0_49 = arith.constant 0 : index
      %69 = vector.load %arg7[%c0_48, %c0_49] : memref<8x128xf32, #tpu.memory_space<vmem>>, vector<8x128xf32>
      tpu.vector_store %arg7[%c0_48, %c0_49], %61 {strides = array<i32>} : memref<8x128xf32, #tpu.memory_space<vmem>>, vector<8x128xf32>,
    } else {
    }
    return
  }
  func.func @transform_0(%arg0: i32, %arg1: i32) -> (i32, i32, i32) {
    %c1_i32 = arith.constant 1 : i32
    %0 = arith.subi %c1_i32, %arg0 : i32
    %1 = arith.muli %0, %arg1 : i32
    %c7_i32 = arith.constant 7 : i32
    %2 = arith.subi %c7_i32, %arg1 : i32
    %3 = arith.muli %arg0, %2 : i32
    %4 = arith.addi %1, %3 : i32
    %c0_i32 = arith.constant 0 : i32
    %c0_i32_0 = arith.constant 0 : i32
    %c0_i32_1 = arith.constant 0 : i32
    return %4, %c0_i32, %c0_i32_0 : i32, i32, i32
  }
  func.func @transform_1(%arg0: i32, %arg1: i32) -> (i32, i32, i32, i32) {
    %c0_i32 = arith.constant 0 : i32
    %c0_i32_0 = arith.constant 0 : i32
    %c0_i32_1 = arith.constant 0 : i32
    %c0_i32_2 = arith.constant 0 : i32
    return %arg0, %c0_i32, %c0_i32_0, %c0_i32_1 : i32, i32, i32, i32
  }
  func.func @transform_2(%arg0: i32, %arg1: i32) -> (i32, i32, i32, i32) {
    %c0_i32 = arith.constant 0 : i32
    %c0_i32_0 = arith.constant 0 : i32
    %c0_i32_1 = arith.constant 0 : i32
    %c0_i32_2 = arith.constant 0 : i32
    return %arg0, %c0_i32, %c0_i32_0, %c0_i32_1 : i32, i32, i32, i32
  }
  func.func @transform_3(%arg0: i32, %arg1: i32) -> (i32, i32, i32) {
    %c0_i32 = arith.constant 0 : i32
    %c0_i32_0 = arith.constant 0 : i32
    %c0_i32_1 = arith.constant 0 : i32
    return %arg0, %c0_i32, %c0_i32_0 : i32, i32, i32
  }
  func.func @transform_4(%arg0: i32, %arg1: i32) -> (i32, i32, i32) {
    %c1_i32 = arith.constant 1 : i32
    %0 = arith.subi %c1_i32, %arg0 : i32
    %1 = arith.muli %0, %arg1 : i32
    %c7_i32 = arith.constant 7 : i32
    %2 = arith.subi %c7_i32, %arg1 : i32
    %3 = arith.muli %arg0, %2 : i32
    %4 = arith.addi %1, %3 : i32
    %c0_i32 = arith.constant 0 : i32
    %c0_i32_0 = arith.constant 0 : i32
    return %4, %c0_i32, %arg0 : i32, i32, i32
  }
  func.func @transform_5(%arg0: i32, %arg1: i32) -> (i32, i32) {
    %c0_i32 = arith.constant 0 : i32
    %c0_i32_0 = arith.constant 0 : i32
    return %c0_i32, %arg0 : i32, i32
  }
}

module attributes {stable_mosaic.version = 11 : i64} {
  func.func @dec_kernel(%arg0: i32, %arg1: memref<7xi32, #tpu.memory_space<smem>>, %arg2: memref<1x8x128xf32, #tpu.memory_space<vmem>>, %arg3: memref<8x256xf32, #tpu.memory_space<vmem>>, %arg4: memref<8x8x256xf32, #tpu.memory_space<vmem>>, %arg5: memref<128x128xf32, #tpu.memory_space<vmem>>, %arg6: memref<3x128x256xf32, #tpu.memory_space<vmem>>, %arg7: memref<3x256x256xf32, #tpu.memory_space<vmem>>, %arg8: memref<3x256x256xf32, #tpu.memory_space<vmem>>, %arg9: memref<4x256xf32, #tpu.memory_space<vmem>>, %arg10: memref<256x128xf32, #tpu.memory_space<vmem>>, %arg11: memref<1x128xf32, #tpu.memory_space<vmem>>, %arg12: memref<1x8x128xf32, #tpu.memory_space<vmem>>, %arg13: memref<8x256xf32, #tpu.memory_space<vmem>>, %arg14: memref<8x128xf32, #tpu.memory_space<vmem>>) attributes {dimension_semantics = [#tpu.dimension_semantics<arbitrary>], iteration_bounds = array<i64: 7>, scalar_prefetch = 1 : i64, scratch_operands = 2 : i64, tpu.core_type = #tpu.core_type<tc>, window_params = [{transform_indices = @transform_0, window_bounds = array<i64: 1, 8, 128>}, {pipeline_mode = #tpu.pipeline_mode<synchronous>, transform_indices = @transform_1, window_bounds = array<i64: 8, 256>}, {pipeline_mode = #tpu.pipeline_mode<synchronous>, transform_indices = @transform_2, window_bounds = array<i64: 8, 8, 256>}, {pipeline_mode = #tpu.pipeline_mode<synchronous>, transform_indices = @transform_3, window_bounds = array<i64: 128, 128>}, {pipeline_mode = #tpu.pipeline_mode<synchronous>, transform_indices = @transform_4, window_bounds = array<i64: 3, 128, 256>}, {pipeline_mode = #tpu.pipeline_mode<synchronous>, transform_indices = @transform_5, window_bounds = array<i64: 3, 256, 256>}, {pipeline_mode = #tpu.pipeline_mode<synchronous>, transform_indices = @transform_6, window_bounds = array<i64: 3, 256, 256>}, {pipeline_mode = #tpu.pipeline_mode<synchronous>, transform_indices = @transform_7, window_bounds = array<i64: 4, 256>}, {pipeline_mode = #tpu.pipeline_mode<synchronous>, transform_indices = @transform_8, window_bounds = array<i64: 256, 128>}, {pipeline_mode = #tpu.pipeline_mode<synchronous>, transform_indices = @transform_9, window_bounds = array<i64: 1, 128>}, {transform_indices = @transform_10, window_bounds = array<i64: 1, 8, 128>}]} {
    %c0_i32 = arith.constant 0 : i32
    %0 = arith.cmpi eq, %arg0, %c0_i32 : i32
    %1 = arith.extui %0 : i1 to i32
    %c0_i32_0 = arith.constant 0 : i32
    %2 = arith.cmpi ne, %1, %c0_i32_0 : i32
    scf.if %2 {
      %c0_77 = arith.constant 0 : index
      %c0_78 = arith.constant 0 : index
      %133 = vector.load %arg3[%c0_77, %c0_78] : memref<8x256xf32, #tpu.memory_space<vmem>>, vector<8x256xf32>
      %c0_79 = arith.constant 0 : index
      %c0_80 = arith.constant 0 : index
      %134 = vector.load %arg13[%c0_79, %c0_80] : memref<8x256xf32, #tpu.memory_space<vmem>>, vector<8x256xf32>
      tpu.vector_store %arg13[%c0_79, %c0_80], %133 {strides = array<i32>} : memref<8x256xf32, #tpu.memory_space<vmem>>, vector<8x256xf32>,
      %cst_81 = arith.constant 0.000000e+00 : f32
      %135 = vector.broadcast %cst_81 : f32 to vector<8x128xf32>
      %c0_82 = arith.constant 0 : index
      %c0_83 = arith.constant 0 : index
      %136 = vector.load %arg14[%c0_82, %c0_83] : memref<8x128xf32, #tpu.memory_space<vmem>>, vector<8x128xf32>
      tpu.vector_store %arg14[%c0_82, %c0_83], %135 {strides = array<i32>} : memref<8x128xf32, #tpu.memory_space<vmem>>, vector<8x128xf32>,
    } else {
    }
    %c0_i32_1 = arith.constant 0 : i32
    %3 = arith.cmpi eq, %arg0, %c0_i32_1 : i32
    %c1_i32 = arith.constant 1 : i32
    %4 = arith.subi %arg0, %c1_i32 : i32
    %c0_i32_2 = arith.constant 0 : i32
    %5 = arith.maxsi %4, %c0_i32_2 : i32
    %6 = arith.index_cast %5 : i32 to index
    %7 = memref.load %arg1[%6] : memref<7xi32, #tpu.memory_space<smem>>
    %c1_i32_3 = arith.constant 1 : i32
    %8 = arith.cmpi eq, %7, %c1_i32_3 : i32
    %9 = arith.ori %3, %8 : i1
    %10 = arith.extui %9 : i1 to i32
    %11 = arith.sitofp %10 : i32 to f32
    %c0 = arith.constant 0 : index
    %c0_4 = arith.constant 0 : index
    %c0_5 = arith.constant 0 : index
    %12 = vector.load %arg2[%c0, %c0_4, %c0_5] : memref<1x8x128xf32, #tpu.memory_space<vmem>>, vector<1x8x128xf32>
    %13 = vector.shape_cast %12 : vector<1x8x128xf32> to vector<8x128xf32>
    %14 = vector.broadcast %11 : f32 to vector<8x128xf32>
    %15 = arith.mulf %14, %13 : vector<8x128xf32>
    %cst = arith.constant 1.000000e+00 : f32
    %16 = arith.subf %cst, %11 : f32
    %c0_6 = arith.constant 0 : index
    %c0_7 = arith.constant 0 : index
    %17 = vector.load %arg14[%c0_6, %c0_7] : memref<8x128xf32, #tpu.memory_space<vmem>>, vector<8x128xf32>
    %18 = vector.broadcast %16 : f32 to vector<8x128xf32>
    %19 = arith.mulf %18, %17 : vector<8x128xf32>
    %20 = arith.addf %15, %19 : vector<8x128xf32>
    %c0_8 = arith.constant 0 : index
    %c0_9 = arith.constant 0 : index
    %21 = vector.load %arg5[%c0_8, %c0_9] : memref<128x128xf32, #tpu.memory_space<vmem>>, vector<128x128xf32>
    %cst_10 = arith.constant dense<0.000000e+00> : vector<8x128xf32>
    %22 = tpu.matmul %20, %21, %cst_10 {dimension_numbers = #tpu.dot_dimension_numbers<[1], [0], [0], [1], [0, 0, 1, 1], [], []>} : vector<8x128xf32>, vector<128x128xf32>, vector<8x128xf32> -> vector<8x128xf32>
    %c0_11 = arith.constant 0 : index
    %c0_12 = arith.constant 0 : index
    %23 = vector.load %arg13[%c0_11, %c0_12] : memref<8x256xf32, #tpu.memory_space<vmem>>, vector<8x256xf32>
    %c0_13 = arith.constant 0 : index
    %c0_14 = arith.constant 0 : index
    %c0_15 = arith.constant 0 : index
    %24 = vector.load %arg4[%c0_13, %c0_14, %c0_15] : memref<8x8x256xf32, #tpu.memory_space<vmem>>, vector<8x8x256xf32>
    %25 = vector.shape_cast %23 : vector<8x256xf32> to vector<8x1x256xf32>
    %26 = vector.broadcast %25 : vector<8x1x256xf32> to vector<8x8x256xf32>
    %27 = arith.mulf %24, %26 : vector<8x8x256xf32>
    %cst_16 = arith.constant dense<0.000000e+00> : vector<8x8xf32>
    %28 = vector.multi_reduction <add>, %27, %cst_16 [2] : vector<8x8x256xf32> to vector<8x8xf32>
    %cst_17 = arith.constant dense<0xFF800000> : vector<8xf32>
    %29 = vector.multi_reduction <maximumf>, %28, %cst_17 [1] : vector<8x8xf32> to vector<8xf32>
    %30 = vector.shape_cast %29 : vector<8xf32> to vector<8x1xf32>
    %31 = vector.broadcast %30 : vector<8x1xf32> to vector<8x8xf32>
    %32 = arith.subf %28, %31 : vector<8x8xf32>
    %33 = math.exp %32 : vector<8x8xf32>
    %cst_18 = arith.constant dense<0.000000e+00> : vector<8xf32>
    %34 = vector.multi_reduction <add>, %33, %cst_18 [1] : vector<8x8xf32> to vector<8xf32>
    %35 = vector.shape_cast %34 : vector<8xf32> to vector<8x1xf32>
    %36 = tpu.reciprocal %35 {approx = true} : vector<8x1xf32> -> vector<8x1xf32>
    %37 = vector.broadcast %36 : vector<8x1xf32> to vector<8x8xf32>
    %38 = arith.mulf %33, %37 : vector<8x8xf32>
    %39 = vector.shape_cast %38 : vector<8x8xf32> to vector<8x8x1xf32>
    %40 = vector.broadcast %39 : vector<8x8x1xf32> to vector<8x8x256xf32>
    %41 = arith.mulf %40, %24 : vector<8x8x256xf32>
    %cst_19 = arith.constant dense<0.000000e+00> : vector<8x256xf32>
    %42 = vector.multi_reduction <add>, %41, %cst_19 [1] : vector<8x8x256xf32> to vector<8x256xf32>
    %c0_20 = arith.constant 0 : index
    %c0_21 = arith.constant 0 : index
    %43 = vector.load %arg9[%c0_20, %c0_21] : memref<4x256xf32, #tpu.memory_space<vmem>>, vector<4x256xf32>
    %c0_22 = arith.constant 0 : index
    %c0_23 = arith.constant 0 : index
    %c0_24 = arith.constant 0 : index
    %44 = vector.load %arg6[%c0_22, %c0_23, %c0_24] : memref<3x128x256xf32, #tpu.memory_space<vmem>>, vector<1x128x256xf32>
    %45 = vector.shape_cast %44 : vector<1x128x256xf32> to vector<128x256xf32>
    %cst_25 = arith.constant dense<0.000000e+00> : vector<8x256xf32>
    %46 = tpu.matmul %22, %45, %cst_25 {dimension_numbers = #tpu.dot_dimension_numbers<[1], [0], [0], [1], [0, 0, 1, 1], [], []>} : vector<8x128xf32>, vector<128x256xf32>, vector<8x256xf32> -> vector<8x256xf32>
    %c0_26 = arith.constant 0 : index
    %c0_27 = arith.constant 0 : index
    %c0_28 = arith.constant 0 : index
    %47 = vector.load %arg7[%c0_26, %c0_27, %c0_28] : memref<3x256x256xf32, #tpu.memory_space<vmem>>, vector<1x256x256xf32>
    %48 = vector.shape_cast %47 : vector<1x256x256xf32> to vector<256x256xf32>
    %cst_29 = arith.constant dense<0.000000e+00> : vector<8x256xf32>
    %49 = tpu.matmul %42, %48, %cst_29 {dimension_numbers = #tpu.dot_dimension_numbers<[1], [0], [0], [1], [0, 0, 1, 1], [], []>} : vector<8x256xf32>, vector<256x256xf32>, vector<8x256xf32> -> vector<8x256xf32>
    %50 = arith.addf %46, %49 : vector<8x256xf32>
    %c0_30 = arith.constant 0 : index
    %c0_31 = arith.constant 0 : index
    %c0_32 = arith.constant 0 : index
    %51 = vector.load %arg8[%c0_30, %c0_31, %c0_32] : memref<3x256x256xf32, #tpu.memory_space<vmem>>, vector<1x256x256xf32>
    %52 = vector.shape_cast %51 : vector<1x256x256xf32> to vector<256x256xf32>
    %cst_33 = arith.constant dense<0.000000e+00> : vector<8x256xf32>
    %53 = tpu.matmul %23, %52, %cst_33 {dimension_numbers = #tpu.dot_dimension_numbers<[1], [0], [0], [1], [0, 0, 1, 1], [], []>} : vector<8x256xf32>, vector<256x256xf32>, vector<8x256xf32> -> vector<8x256xf32>
    %54 = arith.addf %50, %53 : vector<8x256xf32>
    %55 = vector.extract_strided_slice %43 {offsets = [0, 0], sizes = [1, 256], strides = [1, 1]} : vector<4x256xf32> to vector<1x256xf32>
    %56 = vector.broadcast %55 : vector<1x256xf32> to vector<8x256xf32>
    %57 = arith.addf %54, %56 : vector<8x256xf32>
    %cst_34 = arith.constant 0.000000e+00 : f32
    %58 = vector.broadcast %cst_34 : f32 to vector<8x256xf32>
    %59 = arith.subf %58, %57 : vector<8x256xf32>
    %60 = math.exp %59 : vector<8x256xf32>
    %cst_35 = arith.constant 1.000000e+00 : f32
    %61 = vector.broadcast %cst_35 : f32 to vector<8x256xf32>
    %62 = arith.addf %61, %60 : vector<8x256xf32>
    %cst_36 = arith.constant 1.000000e+00 : f32
    %63 = vector.broadcast %cst_36 : f32 to vector<8x256xf32>
    %64 = arith.divf %63, %62 : vector<8x256xf32>
    %c1 = arith.constant 1 : index
    %c0_37 = arith.constant 0 : index
    %c0_38 = arith.constant 0 : index
    %65 = vector.load %arg6[%c1, %c0_37, %c0_38] : memref<3x128x256xf32, #tpu.memory_space<vmem>>, vector<1x128x256xf32>
    %66 = vector.shape_cast %65 : vector<1x128x256xf32> to vector<128x256xf32>
    %cst_39 = arith.constant dense<0.000000e+00> : vector<8x256xf32>
    %67 = tpu.matmul %22, %66, %cst_39 {dimension_numbers = #tpu.dot_dimension_numbers<[1], [0], [0], [1], [0, 0, 1, 1], [], []>} : vector<8x128xf32>, vector<128x256xf32>, vector<8x256xf32> -> vector<8x256xf32>
    %c1_40 = arith.constant 1 : index
    %c0_41 = arith.constant 0 : index
    %c0_42 = arith.constant 0 : index
    %68 = vector.load %arg7[%c1_40, %c0_41, %c0_42] : memref<3x256x256xf32, #tpu.memory_space<vmem>>, vector<1x256x256xf32>
    %69 = vector.shape_cast %68 : vector<1x256x256xf32> to vector<256x256xf32>
    %cst_43 = arith.constant dense<0.000000e+00> : vector<8x256xf32>
    %70 = tpu.matmul %42, %69, %cst_43 {dimension_numbers = #tpu.dot_dimension_numbers<[1], [0], [0], [1], [0, 0, 1, 1], [], []>} : vector<8x256xf32>, vector<256x256xf32>, vector<8x256xf32> -> vector<8x256xf32>
    %71 = arith.addf %67, %70 : vector<8x256xf32>
    %c1_44 = arith.constant 1 : index
    %c0_45 = arith.constant 0 : index
    %c0_46 = arith.constant 0 : index
    %72 = vector.load %arg8[%c1_44, %c0_45, %c0_46] : memref<3x256x256xf32, #tpu.memory_space<vmem>>, vector<1x256x256xf32>
    %73 = vector.shape_cast %72 : vector<1x256x256xf32> to vector<256x256xf32>
    %cst_47 = arith.constant dense<0.000000e+00> : vector<8x256xf32>
    %74 = tpu.matmul %23, %73, %cst_47 {dimension_numbers = #tpu.dot_dimension_numbers<[1], [0], [0], [1], [0, 0, 1, 1], [], []>} : vector<8x256xf32>, vector<256x256xf32>, vector<8x256xf32> -> vector<8x256xf32>
    %75 = arith.addf %71, %74 : vector<8x256xf32>
    %76 = vector.extract_strided_slice %43 {offsets = [1, 0], sizes = [1, 256], strides = [1, 1]} : vector<4x256xf32> to vector<1x256xf32>
    %77 = vector.broadcast %76 : vector<1x256xf32> to vector<8x256xf32>
    %78 = arith.addf %75, %77 : vector<8x256xf32>
    %cst_48 = arith.constant 0.000000e+00 : f32
    %79 = vector.broadcast %cst_48 : f32 to vector<8x256xf32>
    %80 = arith.subf %79, %78 : vector<8x256xf32>
    %81 = math.exp %80 : vector<8x256xf32>
    %cst_49 = arith.constant 1.000000e+00 : f32
    %82 = vector.broadcast %cst_49 : f32 to vector<8x256xf32>
    %83 = arith.addf %82, %81 : vector<8x256xf32>
    %cst_50 = arith.constant 1.000000e+00 : f32
    %84 = vector.broadcast %cst_50 : f32 to vector<8x256xf32>
    %85 = arith.divf %84, %83 : vector<8x256xf32>
    %c2 = arith.constant 2 : index
    %c0_51 = arith.constant 0 : index
    %c0_52 = arith.constant 0 : index
    %86 = vector.load %arg6[%c2, %c0_51, %c0_52] : memref<3x128x256xf32, #tpu.memory_space<vmem>>, vector<1x128x256xf32>
    %87 = vector.shape_cast %86 : vector<1x128x256xf32> to vector<128x256xf32>
    %cst_53 = arith.constant dense<0.000000e+00> : vector<8x256xf32>
    %88 = tpu.matmul %22, %87, %cst_53 {dimension_numbers = #tpu.dot_dimension_numbers<[1], [0], [0], [1], [0, 0, 1, 1], [], []>} : vector<8x128xf32>, vector<128x256xf32>, vector<8x256xf32> -> vector<8x256xf32>
    %c2_54 = arith.constant 2 : index
    %c0_55 = arith.constant 0 : index
    %c0_56 = arith.constant 0 : index
    %89 = vector.load %arg7[%c2_54, %c0_55, %c0_56] : memref<3x256x256xf32, #tpu.memory_space<vmem>>, vector<1x256x256xf32>
    %90 = vector.shape_cast %89 : vector<1x256x256xf32> to vector<256x256xf32>
    %cst_57 = arith.constant dense<0.000000e+00> : vector<8x256xf32>
    %91 = tpu.matmul %42, %90, %cst_57 {dimension_numbers = #tpu.dot_dimension_numbers<[1], [0], [0], [1], [0, 0, 1, 1], [], []>} : vector<8x256xf32>, vector<256x256xf32>, vector<8x256xf32> -> vector<8x256xf32>
    %92 = arith.addf %88, %91 : vector<8x256xf32>
    %93 = vector.extract_strided_slice %43 {offsets = [2, 0], sizes = [1, 256], strides = [1, 1]} : vector<4x256xf32> to vector<1x256xf32>
    %94 = vector.broadcast %93 : vector<1x256xf32> to vector<8x256xf32>
    %95 = arith.addf %92, %94 : vector<8x256xf32>
    %c2_58 = arith.constant 2 : index
    %c0_59 = arith.constant 0 : index
    %c0_60 = arith.constant 0 : index
    %96 = vector.load %arg8[%c2_58, %c0_59, %c0_60] : memref<3x256x256xf32, #tpu.memory_space<vmem>>, vector<1x256x256xf32>
    %97 = vector.shape_cast %96 : vector<1x256x256xf32> to vector<256x256xf32>
    %cst_61 = arith.constant dense<0.000000e+00> : vector<8x256xf32>
    %98 = tpu.matmul %23, %97, %cst_61 {dimension_numbers = #tpu.dot_dimension_numbers<[1], [0], [0], [1], [0, 0, 1, 1], [], []>} : vector<8x256xf32>, vector<256x256xf32>, vector<8x256xf32> -> vector<8x256xf32>
    %99 = vector.extract_strided_slice %43 {offsets = [3, 0], sizes = [1, 256], strides = [1, 1]} : vector<4x256xf32> to vector<1x256xf32>
    %100 = vector.broadcast %99 : vector<1x256xf32> to vector<8x256xf32>
    %101 = arith.addf %98, %100 : vector<8x256xf32>
    %102 = arith.mulf %64, %101 : vector<8x256xf32>
    %103 = arith.addf %95, %102 : vector<8x256xf32>
    %104 = math.tanh %103 : vector<8x256xf32>
    %cst_62 = arith.constant 1.000000e+00 : f32
    %105 = vector.broadcast %cst_62 : f32 to vector<8x256xf32>
    %106 = arith.subf %105, %85 : vector<8x256xf32>
    %107 = arith.mulf %106, %104 : vector<8x256xf32>
    %108 = arith.mulf %85, %23 : vector<8x256xf32>
    %109 = arith.addf %107, %108 : vector<8x256xf32>
    %c0_63 = arith.constant 0 : index
    %c0_64 = arith.constant 0 : index
    %110 = vector.load %arg13[%c0_63, %c0_64] : memref<8x256xf32, #tpu.memory_space<vmem>>, vector<8x256xf32>
    tpu.vector_store %arg13[%c0_63, %c0_64], %109 {strides = array<i32>} : memref<8x256xf32, #tpu.memory_space<vmem>>, vector<8x256xf32>,
    %c0_65 = arith.constant 0 : index
    %c0_66 = arith.constant 0 : index
    %111 = vector.load %arg10[%c0_65, %c0_66] : memref<256x128xf32, #tpu.memory_space<vmem>>, vector<256x128xf32>
    %cst_67 = arith.constant dense<0.000000e+00> : vector<8x128xf32>
    %112 = tpu.matmul %109, %111, %cst_67 {dimension_numbers = #tpu.dot_dimension_numbers<[1], [0], [0], [1], [0, 0, 1, 1], [], []>} : vector<8x256xf32>, vector<256x128xf32>, vector<8x128xf32> -> vector<8x128xf32>
    %c0_68 = arith.constant 0 : index
    %c0_69 = arith.constant 0 : index
    %113 = vector.load %arg11[%c0_68, %c0_69] : memref<1x128xf32, #tpu.memory_space<vmem>>, vector<1x128xf32>
    %114 = vector.broadcast %113 : vector<1x128xf32> to vector<8x128xf32>
    %115 = arith.addf %112, %114 : vector<8x128xf32>
    %c0_70 = arith.constant 0 : index
    %c0_71 = arith.constant 0 : index
    %c0_72 = arith.constant 0 : index
    %116 = vector.load %arg12[%c0_70, %c0_71, %c0_72] : memref<1x8x128xf32, #tpu.memory_space<vmem>>, vector<1x8x128xf32>
    %117 = vector.shape_cast %116 : vector<1x8x128xf32> to vector<8x128xf32>
    %118 = vector.shape_cast %115 : vector<8x128xf32> to vector<1x8x128xf32>
    tpu.vector_store %arg12[%c0_70, %c0_71, %c0_72], %118 {strides = array<i32>} : memref<1x8x128xf32, #tpu.memory_space<vmem>>, vector<1x8x128xf32>,
    %119 = tpu.iota {dimensions = array<i32: 1>} : vector<8x128xi32>
    %cst_73 = arith.constant dense<0xFF800000> : vector<8xf32>
    %120 = vector.multi_reduction <maximumf>, %115, %cst_73 [1] : vector<8x128xf32> to vector<8xf32>
    %121 = vector.shape_cast %120 : vector<8xf32> to vector<8x1xf32>
    %122 = vector.broadcast %121 : vector<8x1xf32> to vector<8x128xf32>
    %123 = arith.cmpf oeq, %115, %122 : vector<8x128xf32>
    %c128_i32 = arith.constant 128 : i32
    %124 = vector.broadcast %c128_i32 : i32 to vector<8x128xi32>
    %125 = arith.select %123, %119, %124 : vector<8x128xi1>, vector<8x128xi32>
    %cst_74 = arith.constant dense<2147483647> : vector<8xi32>
    %126 = vector.multi_reduction <minsi>, %125, %cst_74 [1] : vector<8x128xi32> to vector<8xi32>
    %127 = vector.shape_cast %126 : vector<8xi32> to vector<8x1xi32>
    %128 = vector.broadcast %127 : vector<8x1xi32> to vector<8x128xi32>
    %129 = arith.cmpi eq, %119, %128 : vector<8x128xi32>
    %130 = arith.extui %129 : vector<8x128xi1> to vector<8x128xi32>
    %131 = arith.sitofp %130 : vector<8x128xi32> to vector<8x128xf32>
    %c0_75 = arith.constant 0 : index
    %c0_76 = arith.constant 0 : index
    %132 = vector.load %arg14[%c0_75, %c0_76] : memref<8x128xf32, #tpu.memory_space<vmem>>, vector<8x128xf32>
    tpu.vector_store %arg14[%c0_75, %c0_76], %131 {strides = array<i32>} : memref<8x128xf32, #tpu.memory_space<vmem>>, vector<8x128xf32>,
    return
  }
  func.func @transform_0(%arg0: i32, %arg1: memref<7xi32, #tpu.memory_space<smem>>) -> (i32, i32, i32) {
    %c0_i32 = arith.constant 0 : i32
    %c0_i32_0 = arith.constant 0 : i32
    %c0_i32_1 = arith.constant 0 : i32
    return %arg0, %c0_i32, %c0_i32_0 : i32, i32, i32
  }
  func.func @transform_1(%arg0: i32, %arg1: memref<7xi32, #tpu.memory_space<smem>>) -> (i32, i32) {
    %c0_i32 = arith.constant 0 : i32
    %c0_i32_0 = arith.constant 0 : i32
    %c0_i32_1 = arith.constant 0 : i32
    return %c0_i32, %c0_i32_0 : i32, i32
  }
  func.func @transform_2(%arg0: i32, %arg1: memref<7xi32, #tpu.memory_space<smem>>) -> (i32, i32, i32) {
    %c0_i32 = arith.constant 0 : i32
    %c0_i32_0 = arith.constant 0 : i32
    %c0_i32_1 = arith.constant 0 : i32
    %c0_i32_2 = arith.constant 0 : i32
    return %c0_i32, %c0_i32_0, %c0_i32_1 : i32, i32, i32
  }
  func.func @transform_3(%arg0: i32, %arg1: memref<7xi32, #tpu.memory_space<smem>>) -> (i32, i32) {
    %c0_i32 = arith.constant 0 : i32
    %c0_i32_0 = arith.constant 0 : i32
    %c0_i32_1 = arith.constant 0 : i32
    return %c0_i32, %c0_i32_0 : i32, i32
  }
  func.func @transform_4(%arg0: i32, %arg1: memref<7xi32, #tpu.memory_space<smem>>) -> (i32, i32, i32) {
    %c0_i32 = arith.constant 0 : i32
    %c0_i32_0 = arith.constant 0 : i32
    %c0_i32_1 = arith.constant 0 : i32
    %c0_i32_2 = arith.constant 0 : i32
    return %c0_i32, %c0_i32_0, %c0_i32_1 : i32, i32, i32
  }
  func.func @transform_5(%arg0: i32, %arg1: memref<7xi32, #tpu.memory_space<smem>>) -> (i32, i32, i32) {
    %c0_i32 = arith.constant 0 : i32
    %c0_i32_0 = arith.constant 0 : i32
    %c0_i32_1 = arith.constant 0 : i32
    %c0_i32_2 = arith.constant 0 : i32
    return %c0_i32, %c0_i32_0, %c0_i32_1 : i32, i32, i32
  }
  func.func @transform_6(%arg0: i32, %arg1: memref<7xi32, #tpu.memory_space<smem>>) -> (i32, i32, i32) {
    %c0_i32 = arith.constant 0 : i32
    %c0_i32_0 = arith.constant 0 : i32
    %c0_i32_1 = arith.constant 0 : i32
    %c0_i32_2 = arith.constant 0 : i32
    return %c0_i32, %c0_i32_0, %c0_i32_1 : i32, i32, i32
  }
  func.func @transform_7(%arg0: i32, %arg1: memref<7xi32, #tpu.memory_space<smem>>) -> (i32, i32) {
    %c0_i32 = arith.constant 0 : i32
    %c0_i32_0 = arith.constant 0 : i32
    %c0_i32_1 = arith.constant 0 : i32
    return %c0_i32, %c0_i32_0 : i32, i32
  }
  func.func @transform_8(%arg0: i32, %arg1: memref<7xi32, #tpu.memory_space<smem>>) -> (i32, i32) {
    %c0_i32 = arith.constant 0 : i32
    %c0_i32_0 = arith.constant 0 : i32
    %c0_i32_1 = arith.constant 0 : i32
    return %c0_i32, %c0_i32_0 : i32, i32
  }
  func.func @transform_9(%arg0: i32, %arg1: memref<7xi32, #tpu.memory_space<smem>>) -> (i32, i32) {
    %c0_i32 = arith.constant 0 : i32
    %c0_i32_0 = arith.constant 0 : i32
    %c0_i32_1 = arith.constant 0 : i32
    return %c0_i32, %c0_i32_0 : i32, i32
  }
  func.func @transform_10(%arg0: i32, %arg1: memref<7xi32, #tpu.memory_space<smem>>) -> (i32, i32, i32) {
    %c0_i32 = arith.constant 0 : i32
    %c0_i32_0 = arith.constant 0 : i32
    %c0_i32_1 = arith.constant 0 : i32
    return %arg0, %c0_i32, %c0_i32_0 : i32, i32, i32
  }
}

</mosaic_0001>

<bundles_post_ra>
// kernel: seq2seq_forward.2
= control target key start
LH: loop header
LB: loop body
LE: loop exit
PB: predicated region body
PF: predicated region fallthrough
CT: control target
= control target key end

     0   :  { %s2237_s0 = inlined_call_operand.vmem [shape: f32[8,8,128], index: 0, kind: input, shape index: {}]   ;;  %s2238_s1 = inlined_call_operand.vmem [shape: f32[2,3,128,128], index: 1, kind: input, shape index: {}]   ;;  %s2239_s2 = inlined_call_operand.hbm [shape: f32[2,3,128,128], index: 2, kind: input, shape index: {}]   ;;  %s2240_s3 = inlined_call_operand.vmem [shape: f32[2,4,128], index: 3, kind: input, shape index: {}]   ;;  %s2241_s4 = inlined_call_operand.vmem [shape: f32[8,8,256], index: 4, kind: output, shape index: {0}]   ;;  %s2242_s5 = inlined_call_operand.vmem [shape: f32[8,256], index: 5, kind: output, shape index: {1}]  }
   0x1   :  { %2246 = sst [smem:[#allocation10_spill]] %s2239_s2 }
   0x2   :  { %11 = vsyncpa [#allocation4], 0 }
   0x3   :  { %13 = vsyncpa [#allocation4 + $0x1], 0  ;;  %s1898_s18 = smov 0   ;;  %s1900_s19 = smov 0  }
   0x4   :  { %s1902_s20 = smov 0   ;;  %s1904_s21 = smov 0  }
   0x5   :  { %s1906_s22 = smov 0   ;;  %s1908_s23 = smov 0  }
   0x6   :  { %s1910_s24 = smov 0   ;;  %s1912_s25 = smov 0  }
   0x7 LB: > { %2247 = sst [smem:[#allocation6_spill]] %s1851_s23  ;;  %s1136_s26 = sadd.s32 4294967295, %s1859_s25   ;;  %s1859_s25 = sphi %s1912_s25, %s19_s25   ;;  %s1855_s24 = sphi %s1910_s24, %s2257_s24   ;;  %s1851_s23 = sphi %s1908_s23, %s2256_s23   ;;  %s1847_s22 = sphi %s1906_s22, %s2255_s22   ;;  %s1843_s21 = sphi %s1904_s21, %s2254_s21   ;;  %s1839_s20 = sphi %s1902_s20, %s2260_s20   ;;  %s1835_s19 = sphi %s1900_s19, %s2259_s19   ;;  %s1831_s18 = sphi %s1898_s18, %s2258_s18  }
   0x8   : > { %2248 = sst [smem:[#allocation7_spill]] %s1855_s24  ;;  %s28_s27 = sadd.s32 1, %s1851_s23 }
   0x9   : > { %p29_p0 = scmp.ge.s32.totalorder %s28_s27, 8  ;;  %s31_s28 = sadd.s32 1, %s1855_s24 }
   0xa   : > { %s100_s29 = sadd.s32 1, %s1839_s20  ;;  %p107_p1 = scmp.ne.s32.totalorder %s1839_s20, %s1835_s19 }
   0xb   : > { %s2262_s27 = smov (%p29_p0, %s28_s27), 0  ;;  %s2264_s28 = smov (!%p29_p0, %s31_s28), %s1855_s24 }
   0xc   : > { %2249 = sst [smem:[#allocation8_spill]] %s2262_s27  ;;  %p108_p2 = scmp.eq.s32.totalorder %s1859_s25, 0 }
   0xd   : > { %p113_p3 = scmp.ne.s32.totalorder %s1835_s19, %s1831_s18  ;;  %p33_p4 = scmp.ge.s32.totalorder %s2264_s28, 2 }
   0xe   : > { %p114_p5 = scmp.eq.s32.totalorder %s1136_s26, 0  ;;  %p109_p6 = por %p108_p2, %p107_p1 }
   0xf   : > { %s2266_s28 = smov (%p33_p4, %s2264_s28), 0  ;;  %p1682_p8 = scmp.lt.s32.totalorder %s1859_s25, 16 }
  0x10   : > { %2250 = sst [smem:[#allocation9_spill]] %s2266_s28  ;;  %p1949_p7 = por %p114_p5, %p113_p3 }
  0x11   : > { %s97_s6 = ssub.s32 %s1855_s24, %s2266_s28  ;;  %s252_s7 = sand.u32 1, %s1839_s20  }
  0x12   : > { %p98_p9 = scmp.eq.s32.totalorder %s97_s6, 0  ;;  %s1672_s8 = smul.u32 384, %s252_s7 }
  0x13   : > { %p1957_p10 = pnand %p1682_p8, %p109_p6  ;;  %s1673_s11 = smul.u32 6144, %s1855_s24 }
  0x14   : > { %s1962_s10 = scalar_select %p98_p9, %s1839_s20, %s100_s29  }
  0x15   : > { %s256_s12 = scalar_lea.vmem [#allocation3], %s1672_s8  ;;  %s2253_s2 = sld [smem:[#allocation10_spill]] }
  0x16   : > { %s263_s13 = sshll.u32 %s256_s12, 4  ;;  %s1972_s17 = scalar_lea.sflag [#allocation4], %s252_s7  ;;  %s1970_s13 = int_to_ptr.vmem [resolvable:$true] %s263_s13 }
  0x17   : > { %p1765_p12 = pneg %p1957_p10 }
  0x1b   : > { %s1968_s16 = scalar_lea.hbm %s2253_s2, %s1673_s11  ;;  %s1768_s6 = scalar_lea.hbm %s2253_s2, 12288 }
  0x1c   : > { %s1763_s18 = scalar_lea.hbm %s1968_s16, 6144  ;;  %p1769_p1 = scmp.lt.u32.totalorder %s1968_s16, %s2253_s2 }
  0x1d   : > { %p1764_p11 = scmp.ne.s32.totalorder %s1968_s16, %s1763_s18  ;;  %p1770_p2 = scmp.lt.u32.totalorder %s1768_s6, %s1763_s18 }
  0x1e   : > { %p1772_p4 = scmp.lt.u32.totalorder %s1763_s18, %s1968_s16 }
  0x1f   : > { %p1766_p13 = pnand %p1765_p12, %p1764_p11  ;;  %p1771_p3 = por %p1770_p2, %p1769_p1 }
  0x21   : > { %p1767_p0 = pneg %p1766_p13  ;;  %p1773_p5 = por %p1772_p4, %p1771_p3 }
  0x23   : > { %p1774_p6 = pnand %p1773_p5, %p1767_p0 }
  0x25   : > { %1777 = shalt.err (!%p1774_p6)
}
  0x26   : > { %s1778_s7 = scalar_lea.vmem %s1970_s13, 6144  ;;  %s1861_s12 = smov [#allocation3]  }
  0x27   : > { %p1779_p8 = scmp.ne.s32.totalorder %s1970_s13, %s1778_s7  ;;  %s1783_s14 = sshll.u32 %s1861_s12, 4  ;;  %s1784_s14 = int_to_ptr.vmem [resolvable:$false] %s1783_s14 }
  0x28   : > { %s1785_s15 = scalar_lea.vmem %s1784_s14, 12288  ;;  %p1786_p13 = scmp.lt.s32.totalorder %s1970_s13, %s1784_s14 }
  0x29   : > { %p1781_p9 = pnand %p1779_p8, %p1765_p12  ;;  %p1787_p1 = scmp.lt.s32.totalorder %s1785_s15, %s1778_s7 }
  0x2b   : > { %p1782_p11 = pneg %p1781_p9  ;;  %p1788_p2 = por %p1787_p1, %p1786_p13 }
  0x2d   : > { %p1789_p3 = pnand %p1788_p2, %p1782_p11 }
  0x2f   : > { %1792 = shalt.err (!%p1789_p3)
}
  0x30   : > { %s1862_s18 = smov 128   ;;  %s1863_s26 = smov 8  }
  0x31   : > { %1681 = dma.hbm_to_vmem [thread:$0]  (!%p1957_p10), %s1968_s16, 6144, %s1970_s13, %s1972_s17, %s1862_s18, %s1862_s18, %s1863_s26  }
  0x32   : > { %p1141_p12 = scmp.ge.s32.totalorder %s1859_s25, 1  ;;  %p278_p0 = scmp.lt.s32.totalorder %s1859_s25, 17 }
  0x34   : > { %p279_p4 = pnand %p1141_p12, %p278_p0 }
  0x35   : > { %s284_s29 = sand.u32 (!%p279_p4), 1, %s1835_s19  }
  0x36   : > { %282 = sbr.rel (%p279_p4) target bundleno = 413 (0x19d), region = 36  ;;  %s285_s8 = scalar_lea.sflag (!%p279_p4), [#allocation4], %s284_s29 }
  0x37   : > { %s1674_s6 = smul.u32 (!%p279_p4), 384, %s284_s29 }
  0x39   : > { %s2003_s11 = scalar_lea.vmem (!%p279_p4), [#allocation3], %s1674_s6 }
  0x3d   : > { %1826 = dma.done.wait (%p1949_p7), %s285_s8, 6144  }
  0x3e   : > { %1828 = vsyncadd (%p1949_p7), %s285_s8, 4294961152  ;;  %s345_s9 = ssub.s32 1, %s1847_s22  ;;  %s347_s13 = ssub.s32 7, %s1843_s21 }
  0x3f   : > { %s346_s16 = smul.u32 %s1843_s21, %s345_s9  ;;  %p359_p10 = scmp.lt.s32.totalorder %s1847_s22, 1 }
  0x40   : > { %s348_s17 = smul.u32 %s1847_s22, %s347_s13  ;;  %p1148_p7 = scmp.ne.s32.totalorder %s1843_s21, 0 }
  0x41   : > { %s2268_s22 = smov (!%p359_p10, %s1847_s22), 1  ;;  %v1864_v0 = vmov (!%p1148_p7), 0.0  }
  0x42   : > { %s349_s7 = sadd.s32 %s348_s17, %s346_s16  ;;  %s1675_s12 = smul.u32 384, %s2268_s22  ;;  %394 = vst [vmem:[#allocation2] sm:$0xff] (!%p1148_p7), %v1864_v0 }
  0x43   : > { %p350_p5 = scmp.lt.s32.totalorder %s349_s7, 7  ;;  %s1144_s14 = sshll.u32 %s2268_s22, 2 }
  0x44   : > { %s1147_s15 = sshll.u32 %s2268_s22, 3  ;;  %s2018_s26 = scalar_lea.vmem %s2238_s1, %s1675_s12 }
  0x45   : > { %s2270_s7 = smov (!%p350_p5, %s349_s7), 7  ;;  %s2023_s8 = scalar_lea.vmem %s2240_s3, %s1144_s14 }
  0x46   : > { %s1142_s9 = sshll.u32 %s2270_s7, 3  ;;  %s1145_s2 = sshll.u32 %s2270_s7, 1 }
  0x47   : > { %s2028_s16 = scalar_lea.vmem %s2237_s0, %s1142_s9  ;;  %s378_s17 = sadd.s32 %s1145_s2, %s2268_s22 }
  0x48   : > { %s1146_s27 = sshll.u32 %s378_s17, 3  ;;  %s2033_s30 = scalar_lea.vmem %s2242_s5, %s1147_s15 }
  0x49   : > { %s2038_s29 = scalar_lea.vmem %s2241_s4, %s1146_s27  ;;  %393 = sbr.rel (%p1148_p7) target bundleno = 80 (0x50), region = 44 }
  0x50 PF: > { %v398_v1 = vld [vmem:[%s2018_s26] sm:$0xff]  ;;  %v399_v2 = vld [vmem:[%s2018_s26 + $0x8] sm:$0xff]  ;;  %v1865_v4 = vmov 0.0|0.0   ;;  %v415_v6 = vld [vmem:[%s2003_s11 + $0x8] sm:$0xff]  ;;  %vm1866_vm0 = vmmov 0   ;;  %v1867_v12 = vmov 0.0  }
  0x51   : > { %v414_v3 = vld [vmem:[%s2003_s11] sm:$0xff]  ;;  %1552 = vmatprep.subr.bf16.mxu1 %v1865_v4  ;;  %1528 = vmatprep.subr.bf16.mxu0 %v1865_v4  ;;  %v1553_v5 = vpack.c.bf16 %v399_v2, %v398_v1  ;;  %v400_v7 = vld [vmem:[%s2018_s26 + $0x10] sm:$0xff]  ;;  %v401_v8 = vld [vmem:[%s2018_s26 + $0x18] sm:$0xff]  ;;  %p1213_p6 = scmp.ne.s32.totalorder %s1843_s21, 7 }
  0x52   : > { %v1529_v9 = vpack.c.bf16 %v415_v6, %v414_v3  ;;  %v416_v10 = vld [vmem:[%s2003_s11 + $0x10] sm:$0xff]  ;;  %v417_v11 = vld [vmem:[%s2003_s11 + $0x18] sm:$0xff]  ;;  %1385 = vmatprep.mubr.msk.f32.mxu1 %vm1866_vm0, %v1867_v12  ;;  %1350 = vmatprep.mubr.msk.f32.mxu0 %vm1866_vm0, %v1867_v12  ;;  %v1556_v13 = vpack.c.bf16 %v401_v8, %v400_v7  ;;  %v403_v16 = vld [vmem:[%s2018_s26 + $0x28] sm:$0xff] }
  0x53   : > { %1554 = vmatpush3.bf16.msra.mxu1 %v1553_v5  ;;  %v1532_v14 = vpack.c.bf16 %v417_v11, %v416_v10  ;;  %v402_v15 = vld [vmem:[%s2018_s26 + $0x20] sm:$0xff]  ;;  %v418_v17 = vld [vmem:[%s2003_s11 + $0x20] sm:$0xff]  ;;  %v419_v18 = vld [vmem:[%s2003_s11 + $0x28] sm:$0xff] }
  0x54   : > { %1530 = vmatpush3.bf16.msra.mxu0 %v1529_v9  ;;  %1555 = vmatprep.subr.bf16.mxu1 %v1865_v4  ;;  %v1559_v19 = vpack.c.bf16 %v403_v16, %v402_v15  ;;  %v1535_v20 = vpack.c.bf16 %v419_v18, %v418_v17  ;;  %v404_v21 = vld [vmem:[%s2018_s26 + $0x30] sm:$0xff]  ;;  %v405_v22 = vld [vmem:[%s2018_s26 + $0x38] sm:$0xff]  ;;  %v421_v24 = vld [vmem:[%s2003_s11 + $0x38] sm:$0xff] }
  0x55   : > { %1531 = vmatprep.subr.bf16.mxu0 %v1865_v4  ;;  %v420_v23 = vld [vmem:[%s2003_s11 + $0x30] sm:$0xff]  ;;  %v1562_v25 = vpack.c.bf16 %v405_v22, %v404_v21  ;;  %v406_v27 = vld [vmem:[%s2018_s26 + $0x40] sm:$0xff]  ;;  %v407_v28 = vld [vmem:[%s2018_s26 + $0x48] sm:$0xff] }
  0x56   : > { %v1538_v26 = vpack.c.bf16 %v421_v24, %v420_v23  ;;  %v422_v29 = vld [vmem:[%s2003_s11 + $0x40] sm:$0xff]  ;;  %v423_v30 = vld [vmem:[%s2003_s11 + $0x48] sm:$0xff]  ;;  %v1565_v31 = vpack.c.bf16 %v407_v28, %v406_v27  ;;  %v409_v34 = vld [vmem:[%s2018_s26 + $0x58] sm:$0xff] }
  0x57   : > { %1557 = vmatpush3.bf16.msra.mxu1 %v1556_v13  ;;  %v1541_v32 = vpack.c.bf16 %v423_v30, %v422_v29  ;;  %v408_v33 = vld [vmem:[%s2018_s26 + $0x50] sm:$0xff]  ;;  %v424_v35 = vld [vmem:[%s2003_s11 + $0x50] sm:$0xff]  ;;  %v425_v36 = vld [vmem:[%s2003_s11 + $0x58] sm:$0xff] }
  0x58   : > { %1533 = vmatpush3.bf16.msra.mxu0 %v1532_v14  ;;  %1558 = vmatprep.subr.bf16.mxu1 %v1865_v4  ;;  %v1568_v37 = vpack.c.bf16 %v409_v34, %v408_v33  ;;  %v1544_v38 = vpack.c.bf16 %v425_v36, %v424_v35  ;;  %v410_v39 = vld [vmem:[%s2018_s26 + $0x60] sm:$0xff]  ;;  %v411_v40 = vld [vmem:[%s2018_s26 + $0x68] sm:$0xff]  ;;  %v427_v42 = vld [vmem:[%s2003_s11 + $0x68] sm:$0xff] }
  0x59   : > { %1534 = vmatprep.subr.bf16.mxu0 %v1865_v4  ;;  %v426_v41 = vld [vmem:[%s2003_s11 + $0x60] sm:$0xff]  ;;  %v1571_v43 = vpack.c.bf16 %v411_v40, %v410_v39  ;;  %v412_v45 = vld [vmem:[%s2018_s26 + $0x70] sm:$0xff]  ;;  %v413_v46 = vld [vmem:[%s2018_s26 + $0x78] sm:$0xff] }
  0x5a   : > { %v1547_v44 = vpack.c.bf16 %v427_v42, %v426_v41  ;;  %v428_v47 = vld [vmem:[%s2003_s11 + $0x70] sm:$0xff]  ;;  %v429_v48 = vld [vmem:[%s2003_s11 + $0x78] sm:$0xff]  ;;  %v1574_v49 = vpack.c.bf16 %v413_v46, %v412_v45  ;;  %v1150_v52 = vld [vmem:[%s2018_s26 + $0x88] sm:$0xff] }
  0x5b   : > { %1560 = vmatpush3.bf16.msra.mxu1 %v1559_v19  ;;  %v1550_v50 = vpack.c.bf16 %v429_v48, %v428_v47  ;;  %v1149_v51 = vld [vmem:[%s2018_s26 + $0x80] sm:$0xff]  ;;  %v1165_v53 = vld [vmem:[%s2003_s11 + $0x80] sm:$0xff]  ;;  %v1166_v54 = vld [vmem:[%s2003_s11 + $0x88] sm:$0xff] }
  0x5c   : > { %1536 = vmatpush3.bf16.msra.mxu0 %v1535_v20  ;;  %1561 = vmatprep.subr.bf16.mxu1 %v1865_v4  ;;  %v2098_v55 = vld [vmem:[%s2028_s16] sm:$0xff]  ;;  %v1601_v56 = vpack.c.bf16 %v1150_v52, %v1149_v51  ;;  %v1577_v58 = vpack.c.bf16 %v1166_v54, %v1165_v53  ;;  %v1151_v59 = vld [vmem:[%s2018_s26 + $0x90] sm:$0xff]  ;;  %v1152_v60 = vld [vmem:[%s2018_s26 + $0x98] sm:$0xff] }
  0x5d   : > { %1537 = vmatprep.subr.bf16.mxu0 %v1865_v4  ;;  %v2101_v57 = vld [vmem:[#allocation2] sm:$0xff]  ;;  %v1167_v61 = vld [vmem:[%s2003_s11 + $0x90] sm:$0xff]  ;;  %v1604_v63 = vpack.c.bf16 %v1152_v60, %v1151_v59  ;;  %v1154_v2 = vld [vmem:[%s2018_s26 + $0xa8] sm:$0xff] }
  0x5e   : > { %v1168_v62 = vld [vmem:[%s2003_s11 + $0x98] sm:$0xff]  ;;  %v1169_v3 = vld [vmem:[%s2003_s11 + $0xa0] sm:$0xff]  ;;  %v1170_v5 = vld [vmem:[%s2003_s11 + $0xa8] sm:$0xff] }
  0x5f   : > { %1563 = vmatpush3.bf16.msra.mxu1 %v1562_v25  ;;  %v1580_v0 = vpack.c.bf16 %v1168_v62, %v1167_v61  ;;  %v1153_v1 = vld [vmem:[%s2018_s26 + $0xa0] sm:$0xff]  ;;  %v1583_v7 = vpack.c.bf16 %v1170_v5, %v1169_v3  ;;  %v1155_v8 = vld [vmem:[%s2018_s26 + $0xb0] sm:$0xff]  ;;  %v1156_v9 = vld [vmem:[%s2018_s26 + $0xb8] sm:$0xff] }
  0x60   : > { %1539 = vmatpush3.bf16.msra.mxu0 %v1538_v26  ;;  %1564 = vmatprep.subr.bf16.mxu1 %v1865_v4  ;;  %v1607_v6 = vpack.c.bf16 %v1154_v2, %v1153_v1  ;;  %v1171_v10 = vld [vmem:[%s2003_s11 + $0xb0] sm:$0xff]  ;;  %v1172_v11 = vld [vmem:[%s2003_s11 + $0xb8] sm:$0xff]  ;;  %v1610_v13 = vpack.c.bf16 %v1156_v9, %v1155_v8  ;;  %v1158_v16 = vld [vmem:[%s2018_s26 + $0xc8] sm:$0xff] }
  0x61   : > { %1540 = vmatprep.subr.bf16.mxu0 %v1865_v4  ;;  %v1586_v14 = vpack.c.bf16 %v1172_v11, %v1171_v10  ;;  %v1157_v15 = vld [vmem:[%s2018_s26 + $0xc0] sm:$0xff]  ;;  %v1173_v17 = vld [vmem:[%s2003_s11 + $0xc0] sm:$0xff]  ;;  %v1174_v18 = vld [vmem:[%s2003_s11 + $0xc8] sm:$0xff] }
  0x62   : > { %v1613_v19 = vpack.c.bf16 %v1158_v16, %v1157_v15  ;;  %v1589_v20 = vpack.c.bf16 %v1174_v18, %v1173_v17  ;;  %v1159_v21 = vld [vmem:[%s2018_s26 + $0xd0] sm:$0xff]  ;;  %v1160_v22 = vld [vmem:[%s2018_s26 + $0xd8] sm:$0xff]  ;;  %v1176_v24 = vld [vmem:[%s2003_s11 + $0xd8] sm:$0xff] }
  0x63   : > { %1566 = vmatpush3.bf16.msra.mxu1 %v1565_v31  ;;  %v1175_v23 = vld [vmem:[%s2003_s11 + $0xd0] sm:$0xff]  ;;  %v1616_v25 = vpack.c.bf16 %v1160_v22, %v1159_v21  ;;  %v1161_v27 = vld [vmem:[%s2018_s26 + $0xe0] sm:$0xff]  ;;  %v1162_v28 = vld [vmem:[%s2018_s26 + $0xe8] sm:$0xff] }
  0x64   : > { %1542 = vmatpush3.bf16.msra.mxu0 %v1541_v32  ;;  %1567 = vmatprep.subr.bf16.mxu1 %v1865_v4  ;;  %v1592_v26 = vpack.c.bf16 %v1176_v24, %v1175_v23  ;;  %v1177_v29 = vld [vmem:[%s2003_s11 + $0xe0] sm:$0xff]  ;;  %v1178_v30 = vld [vmem:[%s2003_s11 + $0xe8] sm:$0xff]  ;;  %v1619_v31 = vpack.c.bf16 %v1162_v28, %v1161_v27  ;;  %v1164_v34 = vld [vmem:[%s2018_s26 + $0xf8] sm:$0xff] }
  0x65   : > { %1543 = vmatprep.subr.bf16.mxu0 %v1865_v4  ;;  %v1595_v32 = vpack.c.bf16 %v1178_v30, %v1177_v29  ;;  %v1163_v33 = vld [vmem:[%s2018_s26 + $0xf0] sm:$0xff]  ;;  %v1179_v35 = vld [vmem:[%s2003_s11 + $0xf0] sm:$0xff]  ;;  %v1180_v36 = vld [vmem:[%s2003_s11 + $0xf8] sm:$0xff] }
  0x66   : > { %v1197_v39 = vld [vmem:[%s2003_s11 + $0x100] sm:$0xff]  ;;  %v1198_v40 = vld [vmem:[%s2003_s11 + $0x108] sm:$0xff]  ;;  %v1181_v41 = vld [vmem:[%s2018_s26 + $0x100] sm:$0xff] }
  0x67   : > { %1569 = vmatpush3.bf16.msra.mxu1 %v1568_v37  ;;  %v1622_v37 = vpack.c.bf16 %v1164_v34, %v1163_v33  ;;  %v1182_v42 = vld [vmem:[%s2018_s26 + $0x108] sm:$0xff]  ;;  %v1199_v45 = vld [vmem:[%s2003_s11 + $0x110] sm:$0xff]  ;;  %v1200_v46 = vld [vmem:[%s2003_s11 + $0x118] sm:$0xff] }
  0x68   : > { %1545 = vmatpush3.bf16.msra.mxu0 %v1544_v38  ;;  %1570 = vmatprep.subr.bf16.mxu1 %v1865_v4  ;;  %v1598_v38 = vpack.c.bf16 %v1180_v36, %v1179_v35  ;;  %v1183_v47 = vld [vmem:[%s2018_s26 + $0x110] sm:$0xff]  ;;  %v1184_v48 = vld [vmem:[%s2018_s26 + $0x118] sm:$0xff]  ;;  %v1201_v51 = vld [vmem:[%s2003_s11 + $0x120] sm:$0xff] }
  0x69   : > { %1546 = vmatprep.subr.bf16.mxu0 %v1865_v4  ;;  %v1202_v52 = vld [vmem:[%s2003_s11 + $0x128] sm:$0xff]  ;;  %v1185_v53 = vld [vmem:[%s2018_s26 + $0x120] sm:$0xff]  ;;  %v1186_v54 = vld [vmem:[%s2018_s26 + $0x128] sm:$0xff] }
  0x6a   : > { %v1203_v59 = vld [vmem:[%s2003_s11 + $0x130] sm:$0xff]  ;;  %v1204_v60 = vld [vmem:[%s2003_s11 + $0x138] sm:$0xff]  ;;  %v1187_v61 = vld [vmem:[%s2018_s26 + $0x130] sm:$0xff] }
  0x6b   : > { %1572 = vmatpush3.bf16.msra.mxu1 %v1571_v43  ;;  %v1649_v43 = vpack.c.bf16 %v1198_v40, %v1197_v39  ;;  %v1188_v62 = vld [vmem:[%s2018_s26 + $0x138] sm:$0xff]  ;;  %v1206_v1 = vld [vmem:[%s2003_s11 + $0x148] sm:$0xff]  ;;  %v1189_v2 = vld [vmem:[%s2018_s26 + $0x140] sm:$0xff] }
  0x6c   : > { %1548 = vmatpush3.bf16.msra.mxu0 %v1547_v44  ;;  %1573 = vmatprep.subr.bf16.mxu1 %v1865_v4  ;;  %v1625_v44 = vpack.c.bf16 %v1182_v42, %v1181_v41  ;;  %v1190_v3 = vld [vmem:[%s2018_s26 + $0x148] sm:$0xff]  ;;  %v1208_v8 = vld [vmem:[%s2003_s11 + $0x158] sm:$0xff]  ;;  %v1191_v9 = vld [vmem:[%s2018_s26 + $0x150] sm:$0xff] }
  0x6d   : > { %1549 = vmatprep.subr.bf16.mxu0 %v1865_v4  ;;  %v1192_v10 = vld [vmem:[%s2018_s26 + $0x158] sm:$0xff]  ;;  %v1210_v15 = vld [vmem:[%s2003_s11 + $0x168] sm:$0xff]  ;;  %v1193_v16 = vld [vmem:[%s2018_s26 + $0x160] sm:$0xff] }
  0x6e   : > { %v1194_v17 = vld [vmem:[%s2018_s26 + $0x168] sm:$0xff]  ;;  %v1212_v21 = vld [vmem:[%s2003_s11 + $0x178] sm:$0xff]  ;;  %v1195_v22 = vld [vmem:[%s2018_s26 + $0x170] sm:$0xff] }
  0x6f   : > { %1575 = vmatpush3.bf16.msra.mxu1 %v1574_v49  ;;  %v1652_v49 = vpack.c.bf16 %v1200_v46, %v1199_v45  ;;  %v1196_v23 = vld [vmem:[%s2018_s26 + $0x178] sm:$0xff]  ;;  %v397_v34 = vld [vmem:[%s2023_s8] sm:$0xf] }
  0x70   : > { %1551 = vmatpush3.bf16.msra.mxu0 %v1550_v50  ;;  %1600 = vmatprep.subr.bf16.mxu1 %v1865_v4  ;;  %v1628_v50 = vpack.c.bf16 %v1184_v48, %v1183_v47 }
  0x71   : > { %1576 = vmatprep.subr.bf16.mxu0 %v1865_v4 }
  0x72   : > { %1386 = vmatmul.mubr.f32.vlgmr.msra.gmra.mrb[0].mxu1 %v2098_v55 }
  0x73   : > { %1351 = vmatmul.mubr.f32.vlgmr.msra.gmra.mrb[0].mxu0 %v2101_v57  ;;  %1602 = vmatpush3.bf16.msra.mxu1 %v1601_v56  ;;  %v1655_v56 = vpack.c.bf16 %v1202_v52, %v1201_v51 }
  0x74   : > { %1578 = vmatpush3.bf16.msra.mxu0 %v1577_v58  ;;  %1603 = vmatprep.subr.bf16.mxu1 %v1865_v4  ;;  %v1631_v58 = vpack.c.bf16 %v1186_v54, %v1185_v53 }
  0x75   : > { %1579 = vmatprep.subr.bf16.mxu0 %v1865_v4  ;;  %1455 = vmatprep.mubr.msk.f32.mxu1 %vm1866_vm0, %v1867_v12 }
  0x76   : > { %1420 = vmatprep.mubr.msk.f32.mxu0 %vm1866_vm0, %v1867_v12 }
  0x77   : > { %1605 = vmatpush3.bf16.msra.mxu1 %v1604_v63  ;;  %v1634_v63 = vpack.c.bf16 %v1188_v62, %v1187_v61 }
  0x78   : > { %1581 = vmatpush3.bf16.msra.mxu0 %v1580_v0  ;;  %1606 = vmatprep.subr.bf16.mxu1 %v1865_v4  ;;  %v1205_v0 = vld [vmem:[%s2003_s11 + $0x140] sm:$0xff] }
  0x79   : > { %1582 = vmatprep.subr.bf16.mxu0 %v1865_v4  ;;  %v1661_v5 = vpack.c.bf16 %v1206_v1, %v1205_v0 }
  0x7b   : > { %1608 = vmatpush3.bf16.msra.mxu1 %v1607_v6  ;;  %v1637_v6 = vpack.c.bf16 %v1190_v3, %v1189_v2 }
  0x7c   : > { %1584 = vmatpush3.bf16.msra.mxu0 %v1583_v7  ;;  %1609 = vmatprep.subr.bf16.mxu1 %v1865_v4  ;;  %v1207_v7 = vld [vmem:[%s2003_s11 + $0x150] sm:$0xff] }
  0x7d   : > { %1585 = vmatprep.subr.bf16.mxu0 %v1865_v4  ;;  %v1664_v11 = vpack.c.bf16 %v1208_v8, %v1207_v7 }
  0x7f   : > { %1611 = vmatpush3.bf16.msra.mxu1 %v1610_v13  ;;  %v1640_v13 = vpack.c.bf16 %v1192_v10, %v1191_v9 }
  0x80   : > { %1587 = vmatpush3.bf16.msra.mxu0 %v1586_v14  ;;  %1612 = vmatprep.subr.bf16.mxu1 %v1865_v4  ;;  %v1209_v14 = vld [vmem:[%s2003_s11 + $0x160] sm:$0xff] }
  0x81   : > { %1588 = vmatprep.subr.bf16.mxu0 %v1865_v4  ;;  %v1667_v18 = vpack.c.bf16 %v1210_v15, %v1209_v14 }
  0x83   : > { %1614 = vmatpush3.bf16.msra.mxu1 %v1613_v19  ;;  %v1643_v19 = vpack.c.bf16 %v1194_v17, %v1193_v16 }
  0x84   : > { %1590 = vmatpush3.bf16.msra.mxu0 %v1589_v20  ;;  %1615 = vmatprep.subr.bf16.mxu1 %v1865_v4  ;;  %v1211_v20 = vld [vmem:[%s2003_s11 + $0x170] sm:$0xff] }
  0x85   : > { %1591 = vmatprep.subr.bf16.mxu0 %v1865_v4  ;;  %v1670_v24 = vpack.c.bf16 %v1212_v21, %v1211_v20 }
  0x87   : > { %1617 = vmatpush3.bf16.msra.mxu1 %v1616_v25  ;;  %v1646_v25 = vpack.c.bf16 %v1196_v23, %v1195_v22 }
  0x88   : > { %1593 = vmatpush3.bf16.msra.mxu0 %v1592_v26  ;;  %1618 = vmatprep.subr.bf16.mxu1 %v1865_v4 }
  0x89   : > { %1594 = vmatprep.subr.bf16.mxu0 %v1865_v4 }
  0x8b   : > { %1620 = vmatpush3.bf16.msra.mxu1 %v1619_v31  ;;  %v570_v31 = vlaneseq }
  0x8c   : > { %1596 = vmatpush3.bf16.msra.mxu0 %v1595_v32  ;;  %1621 = vmatprep.subr.bf16.mxu1 %v1865_v4 }
  0x8d   : > { %1597 = vmatprep.subr.bf16.mxu0 %v1865_v4  ;;  %v571_v32 = vshrl.u32 %v570_v31, 7 }
  0x8f   : > { %1623 = vmatpush3.bf16.msra.mxu1 %v1622_v37  ;;  %v572_v33 = vsub.s32 0, %v571_v32  ;;  %v757_v37 = vsub.s32 1, %v571_v32 }
  0x90   : > { %1599 = vmatpush3.bf16.msra.mxu0 %v1598_v38  ;;  %1648 = vmatprep.subr.bf16.mxu1 %v1865_v4 }
  0x91   : > { %1624 = vmatprep.subr.bf16.mxu0 %v1865_v4  ;;  %v573_v35 = vrot.slane %v397_v34, %v572_v33  ;;  %v758_v42 = vrot.slane %v397_v34, %v757_v37 }
  0x92   : > { %1456 = vmatmul.mubr.f32.vlgmr.msra.gmra.mrb[2].mxu1 %v2098_v55 }
  0x93   : > { %1421 = vmatmul.mubr.f32.vlgmr.msra.gmra.mrb[2].mxu0 %v2101_v57  ;;  %1650 = vmatpush3.bf16.msra.mxu1 %v1649_v43 }
  0x94   : > { %1626 = vmatpush3.bf16.msra.mxu0 %v1625_v44  ;;  %1651 = vmatprep.subr.bf16.mxu1 %v1865_v4 }
  0x95   : > { %1627 = vmatprep.subr.bf16.mxu0 %v1865_v4  ;;  %1525 = vmatprep.mubr.msk.f32.mxu1 %vm1866_vm0, %v1867_v12 }
  0x96   : > { %1490 = vmatprep.mubr.msk.f32.mxu0 %vm1866_vm0, %v1867_v12  ;;  %v1658_v12 = vpack.c.bf16 %v1204_v60, %v1203_v59 }
  0x97   : > { %1653 = vmatpush3.bf16.msra.mxu1 %v1652_v49  ;;  %v876_v49 = vsub.s32 3, %v571_v32 }
  0x98   : > { %1629 = vmatpush3.bf16.msra.mxu0 %v1628_v50  ;;  %1654 = vmatprep.subr.bf16.mxu1 %v1865_v4  ;;  %v785_v50 = vsub.s32 2, %v571_v32 }
  0x99   : > { %1630 = vmatprep.subr.bf16.mxu0 %v1865_v4  ;;  %v877_v52 = vrot.slane %v397_v34, %v876_v49 }
  0x9a   : > { %v786_v53 = vrot.slane %v397_v34, %v785_v50 }
  0x9b   : > { %1656 = vmatpush3.bf16.msra.mxu1 %v1655_v56 }
  0x9c   : > { %1632 = vmatpush3.bf16.msra.mxu0 %v1631_v58  ;;  %1657 = vmatprep.subr.bf16.mxu1 %v1865_v4 }
  0x9d   : > { %1633 = vmatprep.subr.bf16.mxu0 %v1865_v4 }
  0x9f   : > { %1659 = vmatpush3.bf16.msra.mxu1 %v1658_v12 }
  0xa0   : > { %1635 = vmatpush3.bf16.msra.mxu0 %v1634_v63  ;;  %1660 = vmatprep.subr.bf16.mxu1 %v1865_v4 }
  0xa1   : > { %1636 = vmatprep.subr.bf16.mxu0 %v1865_v4 }
  0xa3   : > { %1662 = vmatpush3.bf16.msra.mxu1 %v1661_v5 }
  0xa4   : > { %1638 = vmatpush3.bf16.msra.mxu0 %v1637_v6  ;;  %1663 = vmatprep.subr.bf16.mxu1 %v1865_v4 }
  0xa5   : > { %1639 = vmatprep.subr.bf16.mxu0 %v1865_v4 }
  0xa7   : > { %1665 = vmatpush3.bf16.msra.mxu1 %v1664_v11 }
  0xa8   : > { %1641 = vmatpush3.bf16.msra.mxu0 %v1640_v13  ;;  %1666 = vmatprep.subr.bf16.mxu1 %v1865_v4 }
  0xa9   : > { %1642 = vmatprep.subr.bf16.mxu0 %v1865_v4 }
  0xab   : > { %1668 = vmatpush3.bf16.msra.mxu1 %v1667_v18 }
  0xac   : > { %1644 = vmatpush3.bf16.msra.mxu0 %v1643_v19  ;;  %1669 = vmatprep.subr.bf16.mxu1 %v1865_v4 }
  0xad   : > { %1645 = vmatprep.subr.bf16.mxu0 %v1865_v4 }
  0xaf   : > { %1671 = vmatpush3.bf16.msra.mxu1 %v1670_v24 }
  0xb0   : > { %1647 = vmatpush3.bf16.msra.mxu0 %v1646_v25 }
  0xb2   : > { %1526 = vmatmul.mubr.f32.vlgmr.msra.gmra.mrb[4].mxu1 %v2101_v57 }
  0xb3   : > { %1491 = vmatmul.mubr.f32.vlgmr.msra.gmra.mrb[4].mxu0 %v2098_v55 }
 0x145   : > { %v566_v26 = vpop.f32.mrb[0].mxu1 }
 0x146   : > { %v496_v27 = vpop.f32.mrb[0].mxu0  ;;  %v1387_v28 = vpop.f32.mrb[1].mxu1 }
 0x147   : > { %v567_v29 = vadd.f32 %v566_v26, %v496_v27  ;;  %v1352_v30 = vpop.f32.mrb[1].mxu0 }
 0x149   : > { %v574_v36 = vadd.f32 %v573_v35, %v567_v29 }
 0x14b   : > { %v575_v38 = vsub.f32 0.0, %v574_v36 }
 0x14d   : > { %v576_v55 = vmul.f32 1.442695, %v575_v38 }
 0x14f   : > { %1753 = vpow2.f32 %v576_v55 }
 0x159   : > { %v1754_v47 = vpop.eup %1753 }
 0x15a   : > { %v578_v48 = vadd.f32 1.0, %v1754_v47 }
 0x165   : > { %v751_v4 = vpop.f32.mrb[2].mxu1 }
 0x166   : > { %v681_v39 = vpop.f32.mrb[2].mxu0  ;;  %v1457_v40 = vpop.f32.mrb[3].mxu1 }
 0x167   : > { %v752_v41 = vadd.f32 %v751_v4, %v681_v39  ;;  %v1422_v43 = vpop.f32.mrb[3].mxu0 }
 0x169   : > { %v759_v44 = vadd.f32 %v758_v42, %v752_v41 }
 0x16b   : > { %v760_v45 = vsub.f32 0.0, %v759_v44 }
 0x16d   : > { %v761_v46 = vmul.f32 1.442695, %v760_v45 }
 0x16f   : > { %1755 = vpow2.f32 %v761_v46 }
 0x170   : > { %1757 = vrcp.f32 %v578_v48 }
 0x179   : > { %v1756_v51 = vpop.eup %1755 }
 0x17a   : > { %v763_v54 = vadd.f32 1.0, %v1756_v51  ;;  %v1758_v61 = vpop.eup %1757 }
 0x17c   : > { %1759 = vrcp.f32 %v763_v54 }
 0x185   : > { %v944_v56 = vpop.f32.mrb[4].mxu1 }
 0x186   : > { %v945_v58 = vadd.f32 %v944_v56, %v877_v52  ;;  %v853_v59 = vpop.f32.mrb[4].mxu0  ;;  %v1527_v60 = vpop.f32.mrb[5].mxu1 }
 0x187   : > { %v854_v62 = vadd.f32 %v853_v59, %v786_v53  ;;  %v1492_v12 = vpop.f32.mrb[5].mxu0  ;;  %v1760_v1 = vpop.eup %1759 }
 0x188   : > { %v948_v63 = vmul.f32 %v1758_v61, %v945_v58  ;;  %v951_v2 = vsub.f32 1.0, %v1760_v1  ;;  %v953_v6 = vmul.f32 %v1760_v1, %v2101_v57 }
 0x18a   : > { %v949_v0 = vadd.f32 %v948_v63, %v854_v62 }
 0x18c   : > { %1761 = vtanh.f32 %v949_v0 }
 0x195   : > { %960 = sbr.rel (%p1213_p6) target bundleno = 413 (0x19d), region = 48 }
 0x196   : > { %v1762_v3 = vpop.eup %1761 }
 0x197   : > { %v952_v5 = vmul.f32 %v1762_v3, %v951_v2 }
 0x199   : > { %v954_v7 = vadd.f32 %v953_v6, %v952_v5 }
 0x19b   : > { %955 = vst [vmem:[#allocation2] sm:$0xff] %v954_v7  ;;  %956 = vst [vmem:[%s2038_s29] sm:$0xff] %v954_v7 }
 0x19c   : > { %961 = vst [vmem:[%s2033_s30] sm:$0xff] %v954_v7 }
 0x19d PF: > { %s19_s25 = sadd.s32 1, %s1859_s25   ;;  %s2254_s21 = sld [smem:[#allocation6_spill]] }
 0x19e   : > { %p16_p8 = scmp.ge.s32.totalorder %s19_s25, 18   ;;  %s2255_s22 = sld [smem:[#allocation7_spill]] }
 0x19f   : > { %s2256_s23 = sld [smem:[#allocation8_spill]]  ;;  %s2257_s24 = sld [smem:[#allocation9_spill]] }
 0x1a0   : > { %s2258_s18 = smov %s1835_s19  ;;  %s2259_s19 = smov %s1839_s20 }
 0x1a1   : > { %s2260_s20 = smov %s1962_s10  ;;  %18 = sbr.rel (!%p16_p8) target bundleno = 7 (0x7), region = 109 }
 0x1a8   :  { %1018 = vsyncpa [#allocation4], 1 }
 0x1a9   :  { %1020 = vsyncpa [#allocation4 + $0x1], 1 }

// kernel: seq2seq_forward.3
= control target key start
LH: loop header
LB: loop body
LE: loop exit
PB: predicated region body
PF: predicated region fallthrough
CT: control target
= control target key end

     0   :  { %s4766_s0 = inlined_call_operand.vmem [shape: s32[7], index: 0, kind: input, shape index: {}]   ;;  %s4767_s1 = inlined_call_operand.vmem [shape: f32[7,8,128], index: 1, kind: input, shape index: {}]   ;;  %s4768_s2 = inlined_call_operand.vmem [shape: f32[8,256], index: 2, kind: input, shape index: {}]   ;;  %s4769_s3 = inlined_call_operand.vmem [shape: f32[8,8,256], index: 3, kind: input, shape index: {}]   ;;  %s4770_s4 = inlined_call_operand.vmem [shape: f32[128,128], index: 4, kind: input, shape index: {}]   ;;  %s4771_s5 = inlined_call_operand.hbm [shape: f32[3,128,256], index: 5, kind: input, shape index: {}]   ;;  %s4772_s6 = inlined_call_operand.vmem [shape: f32[3,256,256], index: 6, kind: input, shape index: {}]   ;;  %s4773_s7 = inlined_call_operand.hbm [shape: f32[3,256,256], index: 7, kind: input, shape index: {}]   ;;  %s4774_s8 = inlined_call_operand.vmem [shape: f32[4,256], index: 8, kind: input, shape index: {}]   ;;  %s4775_s9 = inlined_call_operand.vmem [shape: f32[256,128], index: 9, kind: input, shape index: {}]   ;;  %s4776_s10 = inlined_call_operand.vmem [shape: f32[1,128], index: 10, kind: input, shape index: {}]   ;;  %s4777_s11 = inlined_call_operand.vmem [shape: f32[7,8,128], index: 11, kind: output, shape index: {}]  }
   0x1   :  { %s16_s19 = sshll.u32 %s4766_s0, 4  ;;  %s17_s19 = int_to_ptr.vmem [resolvable:$true] %s16_s19 }
   0x2   :  { %s3461_s20 = scalar_lea.vmem %s17_s19, 16  ;;  %p3466_p1 = scmp.lt.s32.totalorder %s17_s19, %s17_s19 }
   0x3   :  { %p3462_p0 = scmp.ne.s32.totalorder %s17_s19, %s3461_s20  ;;  %p3467_p2 = scmp.lt.s32.totalorder %s3461_s20, %s3461_s20 }
   0x5   :  { %p3468_p3 = por %p3467_p2, %p3466_p1 }
   0x7   :  { %p3469_p4 = pnand %p3468_p3, %p3462_p0 }
   0x9   :  { %3472 = shalt.err (!%p3469_p4)  }
   0xa   :  { %s3547_s21 = smov [#allocation5]  }
   0xb   :  { %19 = dma.vmem_to_smem %s17_s19, 16, %s3547_s21, [#allocation4] }
   0xc   :  { %3533 = dma.done.wait [#allocation4], 16 }
   0xd   :  { %3534 = vsyncadd [#allocation4], 4294967280 }
   0xe   :  { %21 = sfence }
   0xf   :  { %22 = vsyncpa [#allocation7], 0 }
  0x10   :  { %23 = vsyncpa [#allocation9], 0  ;;  %s3621_s22 = smov 0  }
  0x11 LB: > { %s3627_s0 = sadd.s32 4294967295, %s3545_s22   ;;  %p2586_p5 = scmp.ge.s32.totalorder %s3545_s22, 1  ;;  %s3545_s22 = sphi %s3621_s22, %s29_s22  }
  0x12   : > { %p275_p6 = scmp.lt.s32.totalorder %s3545_s22, 8  ;;  %s3548_s23 = smov [#allocation6]  }
  0x13   : > { %s296_s24 = sshll.u32 %s3548_s23, 4  ;;  %p4778_p9 = scmp.eq.s32.totalorder %s3627_s0, 0  ;;  %s297_s24 = int_to_ptr.vmem [resolvable:$true] %s296_s24 }
  0x14   : > { %p3632_p8 = pnand %p2586_p5, %p275_p6  ;;  %s3549_s26 = smov [#allocation8]  }
  0x15   : > { %s312_s27 = sshll.u32 %s3549_s26, 4  ;;  %s3473_s12 = scalar_lea.hbm %s4771_s5, 12288  ;;  %s3645_s27 = int_to_ptr.vmem [resolvable:$true] %s312_s27 }
  0x16   : > { %s4780_s25 = scalar_select %p3632_p8, 1, 0 }
  0x17   : > { %p3370_p10 = pneg %p3632_p8  ;;  %p3474_p12 = scmp.ne.s32.totalorder %s4771_s5, %s3473_s12 }
  0x18   : > { %p3480_p2 = scmp.lt.u32.totalorder %s3473_s12, %s4771_s5 }
  0x19   : > { %p3641_p11 = pnand %p4778_p9, %p3370_p10 }
  0x1b   : > { %p3475_p13 = pneg %p3641_p11 }
  0x1d   : > { %p3476_p0 = pnand %p3475_p13, %p3474_p12 }
  0x1f   : > { %p3477_p1 = pneg %p3476_p0 }
  0x21   : > { %p3482_p3 = pnand %p3480_p2, %p3477_p1 }
  0x23   : > { %3485 = shalt.err (!%p3482_p3)
}
  0x24   : > { %s3486_s17 = scalar_lea.vmem %s297_s24, 12288  ;;  %p3494_p10 = scmp.lt.s32.totalorder %s297_s24, %s297_s24 }
  0x25   : > { %p3487_p4 = scmp.ne.s32.totalorder %s297_s24, %s3486_s17  ;;  %p3495_p7 = scmp.lt.s32.totalorder %s3486_s17, %s3486_s17 }
  0x27   : > { %p3489_p5 = pnand %p3487_p4, %p3475_p13  ;;  %p3496_p9 = por %p3495_p7, %p3494_p10 }
  0x29   : > { %p3490_p6 = pneg %p3489_p5 }
  0x2b   : > { %p3497_p8 = pnand %p3496_p9, %p3490_p6 }
  0x2d   : > { %3500 = shalt.err (!%p3497_p8)
}
  0x2e   : > { %s3550_s18 = smov 256   ;;  %s3551_s19 = smov 16  }
  0x2f   : > { %3373 = dma.hbm_to_vmem [thread:$0]  (!%p3641_p11), %s4771_s5, 12288, %s297_s24, [#allocation7], %s3550_s18, %s3550_s18, %s3551_s19  }
  0x30   : > { %s3501_s29 = scalar_lea.hbm %s4773_s7, 24576 }
  0x31   : > { %p3502_p12 = scmp.ne.s32.totalorder %s4773_s7, %s3501_s29  ;;  %p3508_p9 = scmp.lt.u32.totalorder %s3501_s29, %s4773_s7 }
  0x33   : > { %p3504_p7 = pnand %p3502_p12, %p3475_p13 }
  0x35   : > { %p3505_p8 = pneg %p3504_p7 }
  0x37   : > { %p3510_p0 = pnand %p3508_p9, %p3505_p8 }
  0x39   : > { %3513 = shalt.err (!%p3510_p0)
}
  0x3a   : > { %s3514_s24 = scalar_lea.vmem %s3645_s27, 24576  ;;  %p3522_p4 = scmp.lt.s32.totalorder %s3645_s27, %s3645_s27 }
  0x3b   : > { %p3515_p1 = scmp.ne.s32.totalorder %s3645_s27, %s3514_s24  ;;  %p3523_p5 = scmp.lt.s32.totalorder %s3514_s24, %s3514_s24 }
  0x3d   : > { %p3517_p2 = pnand %p3515_p1, %p3475_p13  ;;  %p3524_p6 = por %p3523_p5, %p3522_p4 }
  0x3f   : > { %p3518_p3 = pneg %p3517_p2 }
  0x41   : > { %p3525_p10 = pnand %p3524_p6, %p3518_p3 }
  0x43   : > { %3528 = shalt.err (!%p3525_p10)
}
  0x44   : > { %3376 = dma.hbm_to_vmem [thread:$0]  (!%p3641_p11), %s4773_s7, 24576, %s3645_s27, [#allocation9], %s3550_s18, %s3550_s18, %s3551_s19  }
  0x45   : > { %p4782_p12 = scmp.ne.s32.totalorder %s4780_s25, 0 }
  0x46   : > { %p4783_p7 = scmp.eq.s32.totalorder (!%p4782_p12), %s3627_s0, 0 }
  0x47   : > { %344 = sbr.rel (%p4782_p12) target bundleno = 1997 (0x7cd), region = 60 }
  0x4e   : > { %3536 = dma.done.wait (%p4783_p7), [#allocation7], 12288   ;;  %p4784_p13 = pmov %p4783_p7 }
  0x4f   : > { %p4785_p8 = pmov %p4783_p7 }
  0x50   : > { %3538 = vsyncadd (%p4784_p13), [#allocation7], 4294955008 }
  0x51   : > { %3540 = dma.done.wait (%p4785_p8), [#allocation9], 24576   ;;  %p4786_p9 = pmov %p4783_p7 }
  0x52   : > { %p384_p0 = scmp.lt.s32.totalorder %s3627_s0, 6  ;;  %p4787_p11 = scmp.ne.s32.totalorder %s3627_s0, 0 }
  0x53   : > { %3542 = vsyncadd (%p4786_p9), [#allocation9], 4294942720  ;;  %v396_v0 = vld [vmem:[%s4768_s2] sm:$0xff] (!%p4787_p11)  ;;  %v397_v1 = vld [vmem:[%s4768_s2 + $0x8] sm:$0xff] (!%p4787_p11)  ;;  %v3552_v2 = vmov (!%p4787_p11), 0.0  }
  0x54   : > { %s385_s28 = scalar_select %p384_p0, %s3627_s0, 6 }
  0x55   : > { %395 = sbr.rel (%p4787_p11) target bundleno = 92 (0x5c), region = 72  ;;  %398 = vst [vmem:[#allocation2] sm:$0xff] (!%p4787_p11), %v396_v0  ;;  %399 = vst [vmem:[#allocation2 + $0x8] sm:$0xff] (!%p4787_p11), %v397_v1 }
  0x56   : > { %s2593_s27 = sshll.u32 %s385_s28, 3  ;;  %400 = vst [vmem:[#allocation3] sm:$0xff] (!%p4787_p11), %v3552_v2 }
  0x57   : > { %s3709_s18 = scalar_lea.vmem %s4767_s1, %s2593_s27  ;;  %s3714_s21 = scalar_lea.vmem %s4777_s11, %s2593_s27 }
  0x5c PF: > { %v503_v3 = vld [vmem:[#allocation2] sm:$0xff]  ;;  %v504_v4 = vld [vmem:[#allocation2 + $0x8] sm:$0xff]  ;;  %v528_v5 = vlaneseq  ;;  %v3553_v6 = vmov 1966171168   ;;  %v507_v29 = vld [vmem:[%s4769_s3 + $0x10] sm:$0xff]  ;;  %vm735_vm0 = vcmask 1041409  }
  0x5d   : > { %v526_v7 = vunpack.c.l.s4 %v3553_v6  ;;  %v523_v9 = vcombine.low %v503_v3, %v504_v4  ;;  %v524_v11 = vcombine.high %v503_v3, %v504_v4  ;;  %v505_v21 = vld [vmem:[%s4769_s3] sm:$0xff]  ;;  %v506_v22 = vld [vmem:[%s4769_s3 + $0x8] sm:$0xff]  ;;  %v508_v39 = vld [vmem:[%s4769_s3 + $0x18] sm:$0xff]  ;;  %vm737_vm1 = vcmask 1042434   ;;  %s2596_s17 = sadd.s32 4294967295, %s3627_s0  ;;  %p4788_p3 = scmp.eq.s32.totalorder %s3627_s0, 0 }
  0x5e   : > { %v3725_v8 = vshrl.u32 %v528_v5, 7  ;;  %v509_v25 = vld [vmem:[%s4769_s3 + $0x20] sm:$0xff]  ;;  %v510_v28 = vld [vmem:[%s4769_s3 + $0x28] sm:$0xff]  ;;  %v515_v40 = vld [vmem:[%s4769_s3 + $0x50] sm:$0xff]  ;;  %vm739_vm2 = vcmask 1043459   ;;  %vm741_vm3 = vcmask 1044484  }
  0x5f   : > { %v527_v10 = vunpack.c.0.s8 %v526_v7  ;;  %v513_v31 = vld [vmem:[%s4769_s3 + $0x40] sm:$0xff]  ;;  %v516_v41 = vld [vmem:[%s4769_s3 + $0x58] sm:$0xff]  ;;  %v514_v46 = vld [vmem:[%s4769_s3 + $0x48] sm:$0xff]  ;;  %vm743_vm4 = vcmask 1045509   ;;  %vm745_vm5 = vcmask 1046534   ;;  %vm747_vm6 = vcmask 1047559  }
  0x60   : > { %v3729_v14 = vsub.s32 0, %v3725_v8  ;;  %v3732_v15 = vsub.s32 1, %v3725_v8  ;;  %v511_v57 = vld [vmem:[%s4769_s3 + $0x30] sm:$0xff]  ;;  %v512_v61 = vld [vmem:[%s4769_s3 + $0x38] sm:$0xff]  ;;  %v517_v62 = vld [vmem:[%s4769_s3 + $0x60] sm:$0xff]  ;;  %vm750_vm7 = vcmask 64512  }
  0x61   : > { %v530_v12 = vsub.s32 %v527_v10, %v3725_v8  ;;  %v518_v63 = vld [vmem:[%s4769_s3 + $0x68] sm:$0xff]  ;;  %v519_v7 = vld [vmem:[%s4769_s3 + $0x70] sm:$0xff]  ;;  %p402_p1 = scmp.gt.s32.totalorder %s2596_s17, 0  ;;  %vm3556_vm8 = vmmov 0  }
  0x63   : > { %v531_v13 = vrot.slane %v523_v9, %v530_v12  ;;  %v538_v16 = vrot.slane %v524_v11, %v530_v12  ;;  %v520_v9 = vld [vmem:[%s4769_s3 + $0x78] sm:$0xff]  ;;  %s4790_s17 = smov (!%p402_p1, %s2596_s17), 0 }
  0x64   : > { %s404_s25 = sld [smem:[#allocation5 + %s4790_s17]] }
  0x65   : > { %v547_v17 = vrot.slane %v531_v13, %v530_v12  ;;  %v539_v18 = vcombine.high %v531_v13, %v531_v13  ;;  %v540_v19 = vcombine.high %v538_v16, %v538_v16  ;;  %v554_v20 = vrot.slane %v538_v16, %v530_v12 }
  0x67   : > { %v576_v23 = vrot.slane %v547_v17, %v3729_v14  ;;  %v580_v24 = vrot.slane %v547_v17, %v3732_v15  ;;  %v569_v26 = vcombine.high %v547_v17, %v547_v17  ;;  %v561_v27 = vrot.slane %v539_v18, %v530_v12 }
  0x68   : > { %v568_v30 = vrot.slane %v540_v19, %v530_v12  ;;  %v608_v32 = vrot.slane %v554_v20, %v3729_v14  ;;  %v612_v33 = vrot.slane %v554_v20, %v3732_v15  ;;  %v570_v34 = vcombine.high %v554_v20, %v554_v20 }
  0x69   : > { %v653_v35 = vmul.f32 %v576_v23, %v505_v21  ;;  %v654_v36 = vmul.f32 %v580_v24, %v506_v22  ;;  %v592_v37 = vrot.slane %v569_v26, %v3729_v14  ;;  %v596_v38 = vrot.slane %v569_v26, %v3732_v15 }
  0x6a   : > { %v584_v42 = vrot.slane %v561_v27, %v3729_v14  ;;  %v588_v43 = vrot.slane %v561_v27, %v3732_v15  ;;  %v616_v44 = vrot.slane %v568_v30, %v3729_v14  ;;  %v620_v45 = vrot.slane %v568_v30, %v3732_v15  ;;  %p405_p2 = scmp.eq.s32.totalorder %s404_s25, 1 }
  0x6b   : > { %v669_v47 = vadd.f32 %v654_v36, %v653_v35  ;;  %v657_v48 = vmul.f32 %v592_v37, %v509_v25  ;;  %v658_v49 = vmul.f32 %v596_v38, %v510_v28  ;;  %v661_v50 = vmul.f32 %v608_v32, %v513_v31 }
  0x6c   : > { %v655_v51 = vmul.f32 %v584_v42, %v507_v29  ;;  %v656_v52 = vmul.f32 %v588_v43, %v508_v39  ;;  %v663_v53 = vmul.f32 %v616_v44, %v515_v40  ;;  %v664_v54 = vmul.f32 %v620_v45, %v516_v41  ;;  %p406_p4 = por %p4788_p3, %p405_p2 }
  0x6d   : > { %670 = vadd.xlane.f32.xlu0 %v669_v47  ;;  %v675_v55 = vadd.f32 %v658_v49, %v657_v48  ;;  %v662_v56 = vmul.f32 %v612_v33, %v514_v46  ;;  %v571_v58 = vcombine.high %v561_v27, %v561_v27  ;;  %v624_v59 = vrot.slane %v570_v34, %v3729_v14 }
  0x6e   : > { %v672_v60 = vadd.f32 %v656_v52, %v655_v51  ;;  %v628_v0 = vrot.slane %v570_v34, %v3732_v15  ;;  %v572_v1 = vcombine.high %v568_v30, %v568_v30  ;;  %v684_v2 = vadd.f32 %v664_v54, %v663_v53  ;;  %s407_s14 = scalar_select %p406_p4, 1, 0 }
  0x6f   : > { %676 = vadd.xlane.f32.xlu1 %v675_v55  ;;  %v600_v3 = vrot.slane %v571_v58, %v3729_v14  ;;  %v604_v4 = vrot.slane %v571_v58, %v3732_v15  ;;  %v681_v6 = vadd.f32 %v662_v56, %v661_v50  ;;  %v665_v16 = vmul.f32 %v624_v59, %v517_v62 }
  0x70   : > { %v632_v10 = vrot.slane %v572_v1, %v3729_v14  ;;  %v636_v11 = vrot.slane %v572_v1, %v3732_v15  ;;  %v666_v17 = vmul.f32 %v628_v0, %v518_v63  ;;  %v3799_v23 = vand.u32 127, %v528_v5  ;;  %s408_s24 = scvt.s32.f32 %s407_s14 }
  0x71   : > { %673 = vadd.xlane.f32.xlu0 %v672_v60  ;;  %v659_v12 = vmul.f32 %v600_v3, %v511_v57  ;;  %v660_v13 = vmul.f32 %v604_v4, %v512_v61  ;;  %v3554_v48 = vmov 0   ;;  %v3822_v49 = vsub.s32 2, %v3725_v8 }
  0x72   : > { %v667_v19 = vmul.f32 %v632_v10, %v519_v7  ;;  %v668_v20 = vmul.f32 %v636_v11, %v520_v9  ;;  %v687_v21 = vadd.f32 %v666_v17, %v665_v16  ;;  %v3803_v26 = vsub.s32 %v3799_v23, %v3725_v8  ;;  %3401 = vset.pattern.permute.xlu0 %v3554_v48  ;;  %s412_s15 = ssub.f32 1.0, %s408_s24 }
  0x73   : > { %685 = vadd.xlane.f32.xlu1 %v684_v2  ;;  %v678_v18 = vadd.f32 %v660_v13, %v659_v12  ;;  %v3825_v50 = vsub.s32 3, %v3725_v8  ;;  %v3831_v55 = vsub.s32 4, %v3725_v8  ;;  %v3835_v62 = vsub.s32 5, %v3725_v8 }
  0x74   : > { %v690_v22 = vadd.f32 %v668_v20, %v667_v19  ;;  %3400 = vset.pattern.permute.xlu1 %v3554_v48  ;;  %v3839_v2 = vsub.s32 6, %v3725_v8  ;;  %v3843_v7 = vsub.s32 7, %v3725_v8 }
  0x75   : > { %682 = vadd.xlane.f32.xlu0 %v681_v6 }
  0x77   : > { %679 = vadd.xlane.f32.xlu1 %v678_v18 }
  0x79   : > { %688 = vadd.xlane.f32.xlu0 %v687_v21 }
  0x7b   : > { %691 = vadd.xlane.f32.xlu1 %v690_v22 }
  0xfa   : > { %v671_v24 = vpop.xlane.xlu0 %670 }
  0xfb   : > { %v706_v30 = vrot.slane %v671_v24, %v3803_v26 }
  0xfc   : > { %v677_v25 = vpop.xlane.xlu1 %676 }
  0xfd   : > { %v714_v5 = vrot.slane %v677_v25, %v3803_v26 }
  0xfe   : > { %v674_v27 = vpop.xlane.xlu0 %673 }
  0xff   : > { %v710_v28 = vrot.slane %v674_v27, %v3803_v26 }
 0x100   : > { %v686_v29 = vpop.xlane.xlu1 %685 }
 0x101   : > { %v736_v32 = vsel %vm735_vm0, %v710_v28, %v706_v30  ;;  %v726_v38 = vrot.slane %v686_v29, %v3803_v26  ;;  %v418_v30 = vld [vmem:[%s4770_s4 + $0x8] sm:$0xff] }
 0x102   : > { %v683_v31 = vpop.xlane.xlu0 %682  ;;  %v738_v36 = vsel %vm737_vm1, %v714_v5, %v736_v32  ;;  %v3555_v32 = vmov 0.0|0.0  }
 0x103   : > { %v722_v35 = vrot.slane %v683_v31, %v3803_v26  ;;  %2816 = vmatprep.subr.bf16.mxu0 %v3555_v32 }
 0x104   : > { %v680_v33 = vpop.xlane.xlu1 %679 }
 0x105   : > { %v718_v34 = vrot.slane %v680_v33, %v3803_v26 }
 0x106   : > { %v689_v37 = vpop.xlane.xlu0 %688 }
 0x107   : > { %v740_v39 = vsel %vm739_vm2, %v718_v34, %v738_v36  ;;  %v730_v40 = vrot.slane %v689_v37, %v3803_v26  ;;  %v422_v36 = vld [vmem:[%s4770_s4 + $0x28] sm:$0xff] }
 0x108   : > { %v692_v41 = vpop.xlane.xlu1 %691  ;;  %v742_v42 = vsel %vm741_vm3, %v722_v35, %v740_v39  ;;  %v421_v35 = vld [vmem:[%s4770_s4 + $0x20] sm:$0xff]  ;;  %v424_v39 = vld [vmem:[%s4770_s4 + $0x38] sm:$0xff] }
 0x109   : > { %v734_v43 = vrot.slane %v692_v41, %v3803_v26  ;;  %v744_v44 = vsel %vm743_vm4, %v726_v38, %v742_v42  ;;  %v423_v38 = vld [vmem:[%s4770_s4 + $0x30] sm:$0xff]  ;;  %v426_v42 = vld [vmem:[%s4770_s4 + $0x48] sm:$0xff] }
 0x10a   : > { %v746_v45 = vsel %vm745_vm5, %v730_v40, %v744_v44  ;;  %v2826_v40 = vpack.c.bf16 %v424_v39, %v423_v38  ;;  %v427_v44 = vld [vmem:[%s4770_s4 + $0x50] sm:$0xff]  ;;  %v1130_v39 = vld [vmem:[%s4772_s6 + $0x8] sm:$0xff] }
 0x10b   : > { %v748_v46 = vsel %vm747_vm6, %v734_v43, %v746_v45  ;;  %v428_v45 = vld [vmem:[%s4770_s4 + $0x58] sm:$0xff] }
 0x10c   : > { %v751_v47 = vsel %vm750_vm7, %v748_v46, -inf  ;;  %v2832_v46 = vpack.c.bf16 %v428_v45, %v427_v44  ;;  %v1131_v44 = vld [vmem:[%s4772_s6 + $0x10] sm:$0xff] }
 0x10d   : > { %752 = vmax.xlane.f32.xlu0 %v751_v47 }
 0x19a   : > { %v753_v51 = vpop.xlane.xlu0 %752 }
 0x19b   : > { %v758_v52 = vrot.slane %v753_v51, %v3729_v14  ;;  %v762_v53 = vrot.slane %v753_v51, %v3732_v15  ;;  %v766_v54 = vrot.slane %v753_v51, %v3822_v49  ;;  %v770_v56 = vrot.slane %v753_v51, %v3825_v50 }
 0x19c   : > { %v774_v63 = vrot.slane %v753_v51, %v3831_v55  ;;  %v778_v3 = vrot.slane %v753_v51, %v3835_v62  ;;  %v782_v9 = vrot.slane %v753_v51, %v3839_v2  ;;  %v786_v16 = vrot.slane %v753_v51, %v3843_v7 }
 0x19d   : > { %v795_v57 = vsub.f32 %v671_v24, %v758_v52  ;;  %v796_v58 = vsub.f32 %v674_v27, %v762_v53  ;;  %v797_v59 = vsub.f32 %v677_v25, %v766_v54  ;;  %v798_v0 = vsub.f32 %v680_v33, %v770_v56  ;;  %v420_v33 = vld [vmem:[%s4770_s4 + $0x18] sm:$0xff] }
 0x19e   : > { %v799_v4 = vsub.f32 %v683_v31, %v774_v63  ;;  %v800_v10 = vsub.f32 %v686_v29, %v778_v3  ;;  %v801_v17 = vsub.f32 %v689_v37, %v782_v9  ;;  %v802_v19 = vsub.f32 %v692_v41, %v786_v16  ;;  %v417_v29 = vld [vmem:[%s4770_s4] sm:$0xff]  ;;  %v419_v31 = vld [vmem:[%s4770_s4 + $0x10] sm:$0xff] }
 0x19f   : > { %v803_v60 = vmul.f32 1.442695, %v795_v57  ;;  %v805_v61 = vmul.f32 1.442695, %v796_v58  ;;  %v807_v1 = vmul.f32 1.442695, %v797_v59  ;;  %v2817_v5 = vpack.c.bf16 %v418_v30, %v417_v29 }
 0x1a0   : > { %v809_v6 = vmul.f32 1.442695, %v798_v0  ;;  %v811_v11 = vmul.f32 1.442695, %v799_v4  ;;  %v813_v18 = vmul.f32 1.442695, %v800_v10  ;;  %v2820_v34 = vpack.c.bf16 %v420_v33, %v419_v31 }
 0x1a1   : > { %3404 = vpow2.f32 %v803_v60  ;;  %v815_v20 = vmul.f32 1.442695, %v801_v17  ;;  %v817_v22 = vmul.f32 1.442695, %v802_v19  ;;  %2818 = vmatpush3.bf16.msra.mxu0 %v2817_v5  ;;  %v2823_v37 = vpack.c.bf16 %v422_v36, %v421_v35  ;;  %v425_v41 = vld [vmem:[%s4770_s4 + $0x40] sm:$0xff]  ;;  %v432_v29 = vld [vmem:[%s4770_s4 + $0x78] sm:$0xff] }
 0x1a2   : > { %3406 = vpow2.f32 %v805_v61  ;;  %2819 = vmatprep.subr.bf16.mxu0 %v3555_v32  ;;  %v2829_v43 = vpack.c.bf16 %v426_v42, %v425_v41  ;;  %v429_v19 = vld [vmem:[%s4770_s4 + $0x60] sm:$0xff]  ;;  %v3557_v30 = vmov 0.0   ;;  %v410_v33 = vstv %s408_s24  ;;  %v2600_v42 = vld [vmem:[%s4772_s6 + $0x218] sm:$0xff] }
 0x1a3   : > { %3408 = vpow2.f32 %v807_v1  ;;  %2813 = vmatprep.mubr.msk.f32.mxu0 %vm3556_vm8, %v3557_v30  ;;  %v409_v5 = vld [vmem:[%s3709_s18] sm:$0xff]  ;;  %v414_v36 = vstv %s412_s15 }
 0x1a4   : > { %3410 = vpow2.f32 %v809_v6  ;;  %v411_v35 = vmul.f32 %v410_v33, %v409_v5  ;;  %v2612_v33 = vld [vmem:[%s4772_s6 + $0x278] sm:$0xff] }
 0x1a5   : > { %3412 = vpow2.f32 %v811_v11  ;;  %2821 = vmatpush3.bf16.msra.mxu0 %v2820_v34  ;;  %v413_v34 = vld [vmem:[#allocation3] sm:$0xff] }
 0x1a6   : > { %3414 = vpow2.f32 %v813_v18  ;;  %2822 = vmatprep.subr.bf16.mxu0 %v3555_v32 }
 0x1a7   : > { %3416 = vpow2.f32 %v815_v20  ;;  %v431_v20 = vld [vmem:[%s4770_s4 + $0x70] sm:$0xff] }
 0x1a8   : > { %3418 = vpow2.f32 %v817_v22  ;;  %v2838_v31 = vpack.c.bf16 %v432_v29, %v431_v20  ;;  %v1142_v20 = vld [vmem:[%s4772_s6 + $0x68] sm:$0xff] }
 0x1a9   : > { %2824 = vmatpush3.bf16.msra.mxu0 %v2823_v37  ;;  %v415_v37 = vmul.f32 %v414_v36, %v413_v34  ;;  %v2610_v29 = vld [vmem:[%s4772_s6 + $0x268] sm:$0xff]  ;;  %v1141_v34 = vld [vmem:[%s4772_s6 + $0x60] sm:$0xff] }
 0x1aa   : > { %2825 = vmatprep.subr.bf16.mxu0 %v3555_v32  ;;  %v3012_v36 = vpack.c.bf16 %v2612_v33, %v2610_v29  ;;  %v1153_v29 = vld [vmem:[%s4772_s6 + $0xc0] sm:$0xff] }
 0x1ab   : > { %v3846_v12 = vpop.eup %3404  ;;  %v416_v38 = vadd.f32 %v415_v37, %v411_v35  ;;  %v1143_v35 = vld [vmem:[%s4772_s6 + $0x70] sm:$0xff]  ;;  %v2609_v37 = vld [vmem:[%s4772_s6 + $0x260] sm:$0xff] }
 0x1ac   : > { %v3848_v13 = vpop.eup %3406  ;;  %828 = vperm.xlu1 %3400, %v3846_v12  }
 0x1ad   : > { %831 = vperm.xlu0 %3401, %v3848_v13   ;;  %v3853_v8 = vpop.eup %3408  ;;  %2827 = vmatpush3.bf16.msra.mxu0 %v2826_v40  ;;  %v1132_v40 = vld [vmem:[%s4772_s6 + $0x18] sm:$0xff] }
 0x1ae   : > { %v3856_v21 = vpop.eup %3410  ;;  %2828 = vmatprep.subr.bf16.mxu0 %v3555_v32  ;;  %v2840_v41 = vpack.c.bf16 %v1132_v40, %v1130_v39  ;;  %v1146_v39 = vld [vmem:[%s4772_s6 + $0x88] sm:$0xff]  ;;  %v1148_v40 = vld [vmem:[%s4772_s6 + $0x98] sm:$0xff] }
 0x1af   : > { %v3859_v24 = vpop.eup %3412 }
 0x1b0   : > { %834 = vperm.xlu1 %3400, %v3853_v8   ;;  %v3862_v25 = vpop.eup %3414  ;;  %2841 = vmatprep.subr.bf16.mxu1 %v2840_v41  ;;  %v2616_v41 = vld [vmem:[%s4772_s6 + $0x298] sm:$0xff] }
 0x1b1   : > { %v3865_v27 = vpop.eup %3416  ;;  %2830 = vmatpush3.bf16.msra.mxu0 %v2829_v43  ;;  %v1129_v43 = vld [vmem:[%s4772_s6] sm:$0xff] }
 0x1b2   : > { %v3868_v28 = vpop.eup %3418  ;;  %2831 = vmatprep.subr.bf16.mxu0 %v3555_v32 }
 0x1b4   : > { %837 = vperm.xlu1 %3400, %v3856_v21  }
 0x1b5   : > { %2833 = vmatpush3.bf16.msra.mxu0 %v2832_v46  ;;  %v2842_v46 = vpack.c.bf16 %v1131_v44, %v1129_v43  ;;  %v2856_v44 = vpack.c.bf16 %v1148_v40, %v1146_v39  ;;  %v1158_v39 = vld [vmem:[%s4772_s6 + $0xe8] sm:$0xff]  ;;  %v1160_v40 = vld [vmem:[%s4772_s6 + $0xf8] sm:$0xff] }
 0x1b6   : > { %2834 = vmatprep.subr.bf16.mxu0 %v3555_v32 }
 0x1b7   : > { %2843 = vmatpush1.bf16.msra.mxu1 %v2842_v46  ;;  %v1147_v46 = vld [vmem:[%s4772_s6 + $0x90] sm:$0xff] }
 0x1b8   : > { %840 = vperm.xlu1 %3400, %v3859_v24  }
 0x1bc   : > { %843 = vperm.xlu1 %3400, %v3862_v25  }
 0x1c0   : > { %846 = vperm.xlu1 %3400, %v3865_v27  }
 0x1c4   : > { %849 = vperm.xlu1 %3400, %v3868_v28  }
 0x22b   : > { %v829_v47 = vpop.permute.xlu1 %828 }
 0x22c   : > { %v832_v53 = vpop.permute.xlu0 %831  ;;  %v854_v57 = vrot.slane %v829_v47, %v3803_v26  ;;  %v2597_v47 = vld [vmem:[%s4772_s6 + $0x200] sm:$0xff] }
 0x22d   : > { %v858_v56 = vrot.slane %v832_v53, %v3803_v26  ;;  %v1136_v53 = vld [vmem:[%s4772_s6 + $0x38] sm:$0xff] }
 0x22f   : > { %v835_v48 = vpop.permute.xlu1 %834  ;;  %v883_v63 = vsel %vm735_vm0, %v858_v56, %v854_v57  ;;  %v2604_v56 = vld [vmem:[%s4772_s6 + $0x238] sm:$0xff] }
 0x230   : > { %v862_v58 = vrot.slane %v835_v48, %v3803_v26  ;;  %v2599_v48 = vld [vmem:[%s4772_s6 + $0x210] sm:$0xff] }
 0x232   : > { %v884_v1 = vsel %vm737_vm1, %v862_v58, %v883_v63 }
 0x233   : > { %v838_v51 = vpop.permute.xlu1 %837 }
 0x234   : > { %v866_v59 = vrot.slane %v838_v51, %v3803_v26  ;;  %v1134_v51 = vld [vmem:[%s4772_s6 + $0x28] sm:$0xff] }
 0x235   : > { %v2844_v57 = vpack.c.bf16 %v1136_v53, %v1134_v51  ;;  %v2615_v51 = vld [vmem:[%s4772_s6 + $0x290] sm:$0xff]  ;;  %v1152_v53 = vld [vmem:[%s4772_s6 + $0xb8] sm:$0xff] }
 0x236   : > { %v885_v4 = vsel %vm739_vm2, %v866_v59, %v884_v1  ;;  %v1133_v59 = vld [vmem:[%s4772_s6 + $0x20] sm:$0xff]  ;;  %v1138_v1 = vld [vmem:[%s4772_s6 + $0x48] sm:$0xff] }
 0x237   : > { %v841_v52 = vpop.permute.xlu1 %840  ;;  %2845 = vmatprep.subr.bf16.mxu1 %v2844_v57 }
 0x238   : > { %v870_v60 = vrot.slane %v841_v52, %v3803_v26  ;;  %v3002_v52 = vpack.c.bf16 %v2599_v48, %v2597_v47  ;;  %v2613_v47 = vld [vmem:[%s4772_s6 + $0x280] sm:$0xff] }
 0x23a   : > { %v886_v6 = vsel %vm741_vm3, %v870_v60, %v885_v4  ;;  %v1135_v60 = vld [vmem:[%s4772_s6 + $0x30] sm:$0xff] }
 0x23b   : > { %v844_v54 = vpop.permute.xlu1 %843  ;;  %v2846_v63 = vpack.c.bf16 %v1135_v60, %v1133_v59 }
 0x23c   : > { %v874_v0 = vrot.slane %v844_v54, %v3803_v26  ;;  %v2602_v54 = vld [vmem:[%s4772_s6 + $0x228] sm:$0xff] }
 0x23d   : > { %v3004_v58 = vpack.c.bf16 %v2604_v56, %v2602_v54  ;;  %2847 = vmatpush1.bf16.msra.mxu1 %v2846_v63  ;;  %v3018_v56 = vpack.c.bf16 %v2615_v51, %v2613_v47  ;;  %v2627_v47 = vld [vmem:[%s4772_s6 + $0x2f0] sm:$0xff] }
 0x23e   : > { %v887_v10 = vsel %vm743_vm4, %v874_v0, %v886_v6  ;;  %v2603_v0 = vld [vmem:[%s4772_s6 + $0x230] sm:$0xff] }
 0x23f   : > { %v847_v61 = vpop.permute.xlu1 %846 }
 0x240   : > { %v878_v3 = vrot.slane %v847_v61, %v3803_v26  ;;  %v2601_v61 = vld [vmem:[%s4772_s6 + $0x220] sm:$0xff] }
 0x241   : > { %v3006_v4 = vpack.c.bf16 %v2603_v0, %v2601_v61 }
 0x242   : > { %v888_v16 = vsel %vm745_vm5, %v878_v3, %v887_v10  ;;  %v1140_v3 = vld [vmem:[%s4772_s6 + $0x58] sm:$0xff] }
 0x243   : > { %v850_v9 = vpop.permute.xlu1 %849  ;;  %v2848_v6 = vpack.c.bf16 %v1140_v3, %v1138_v1  ;;  %v2608_v10 = vld [vmem:[%s4772_s6 + $0x258] sm:$0xff]  ;;  %v2618_v3 = vld [vmem:[%s4772_s6 + $0x2a8] sm:$0xff] }
 0x244   : > { %v882_v11 = vrot.slane %v850_v9, %v3803_v26  ;;  %v430_v26 = vld [vmem:[%s4770_s4 + $0x68] sm:$0xff] }
 0x245   : > { %v2835_v22 = vpack.c.bf16 %v430_v26, %v429_v19  ;;  %v2606_v9 = vld [vmem:[%s4772_s6 + $0x248] sm:$0xff]  ;;  %v2607_v19 = vld [vmem:[%s4772_s6 + $0x250] sm:$0xff]  ;;  %2849 = vmatprep.subr.bf16.mxu1 %v2848_v6 }
 0x246   : > { %v889_v17 = vsel %vm747_vm6, %v882_v11, %v888_v16  ;;  %v1137_v11 = vld [vmem:[%s4772_s6 + $0x40] sm:$0xff]  ;;  %v3008_v16 = vpack.c.bf16 %v2608_v10, %v2606_v9 }
 0x247   : > { %v891_v18 = vsel %vm750_vm7, %v889_v17, 0.0  ;;  %2836 = vmatpush3.bf16.msra.mxu0 %v2835_v22  ;;  %v1139_v17 = vld [vmem:[%s4772_s6 + $0x50] sm:$0xff]  ;;  %v1144_v22 = vld [vmem:[%s4772_s6 + $0x78] sm:$0xff]  ;;  %v2617_v9 = vld [vmem:[%s4772_s6 + $0x2a0] sm:$0xff] }
 0x248   : > { %892 = vadd.xlane.f32.xlu1 %v891_v18  ;;  %2837 = vmatprep.subr.bf16.mxu0 %v3555_v32  ;;  %v2598_v32 = vld [vmem:[%s4772_s6 + $0x208] sm:$0xff]  ;;  %v2605_v18 = vld [vmem:[%s4772_s6 + $0x240] sm:$0xff]  ;;  %v2850_v26 = vpack.c.bf16 %v1139_v17, %v1137_v11  ;;  %v2852_v5 = vpack.c.bf16 %v1144_v22, %v1142_v20  ;;  %v2619_v11 = vld [vmem:[%s4772_s6 + $0x2b0] sm:$0xff] }
 0x249   : > { %v3000_v45 = vpack.c.bf16 %v2600_v42, %v2598_v32  ;;  %v2614_v32 = vld [vmem:[%s4772_s6 + $0x288] sm:$0xff]  ;;  %v2854_v42 = vpack.c.bf16 %v1143_v35, %v1141_v34  ;;  %v2624_v22 = vld [vmem:[%s4772_s6 + $0x2d8] sm:$0xff]  ;;  %v2621_v34 = vld [vmem:[%s4772_s6 + $0x2c0] sm:$0xff] }
 0x24a   : > { %2851 = vmatpush1.bf16.msra.mxu1 %v2850_v26  ;;  %v3016_v48 = vpack.c.bf16 %v2616_v41, %v2614_v32  ;;  %v1156_v26 = vld [vmem:[%s4772_s6 + $0xd8] sm:$0xff]  ;;  %v2622_v20 = vld [vmem:[%s4772_s6 + $0x2c8] sm:$0xff]  ;;  %v2623_v35 = vld [vmem:[%s4772_s6 + $0x2d0] sm:$0xff] }
 0x24b   : > { %2839 = vmatpush3.bf16.msra.mxu0 %v2838_v31  ;;  %v3010_v31 = vpack.c.bf16 %v2607_v19, %v2605_v18  ;;  %2853 = vmatprep.subr.bf16.mxu1 %v2852_v5  ;;  %v3022_v18 = vpack.c.bf16 %v2619_v11, %v2617_v9  ;;  %v1154_v19 = vld [vmem:[%s4772_s6 + $0xc8] sm:$0xff]  ;;  %v3024_v5 = vpack.c.bf16 %v2624_v22, %v2622_v20  ;;  %v2628_v41 = vld [vmem:[%s4772_s6 + $0x2f8] sm:$0xff]  ;;  %v1165_v11 = vld [vmem:[%s4772_s6 + $0x120] sm:$0xff] }
 0x24c   : > { %3001 = vmatprep.subr.bf16.mxu0 %v3000_v45  ;;  %v1145_v45 = vld [vmem:[%s4772_s6 + $0x80] sm:$0xff]  ;;  %v2626_v32 = vld [vmem:[%s4772_s6 + $0x2e8] sm:$0xff] }
 0x24d   : > { %v2858_v54 = vpack.c.bf16 %v1147_v46, %v1145_v45  ;;  %v2625_v46 = vld [vmem:[%s4772_s6 + $0x2e0] sm:$0xff]  ;;  %v2634_v9 = vld [vmem:[%s4772_s6 + $0x328] sm:$0xff] }
 0x24e   : > { %2814 = vmatmul.mubr.f32.vlgmr.msra.gmra.mrb[0].mxu0 %v416_v38  ;;  %v2611_v38 = vld [vmem:[%s4772_s6 + $0x270] sm:$0xff]  ;;  %2855 = vmatpush1.bf16.msra.mxu1 %v2854_v42  ;;  %v1157_v42 = vld [vmem:[%s4772_s6 + $0xe0] sm:$0xff] }
 0x24f   : > { %3003 = vmatpush1.bf16.msra.mxu0 %v3002_v52  ;;  %v3014_v43 = vpack.c.bf16 %v2611_v38, %v2609_v37  ;;  %v1150_v52 = vld [vmem:[%s4772_s6 + $0xa8] sm:$0xff]  ;;  %2857 = vmatprep.subr.bf16.mxu1 %v2856_v44  ;;  %v3026_v38 = vpack.c.bf16 %v2623_v35, %v2621_v34  ;;  %v3028_v44 = vpack.c.bf16 %v2628_v41, %v2626_v32  ;;  %v1171_v34 = vld [vmem:[%s4772_s6 + $0x150] sm:$0xff] }
 0x250   : > { %3005 = vmatprep.subr.bf16.mxu0 %v3004_v58  ;;  %v2860_v57 = vpack.c.bf16 %v1152_v53, %v1150_v52  ;;  %v3030_v52 = vpack.c.bf16 %v2627_v47, %v2625_v46  ;;  %v1162_v53 = vld [vmem:[%s4772_s6 + $0x108] sm:$0xff]  ;;  %v2641_v47 = vld [vmem:[%s4772_s6 + $0x360] sm:$0xff] }
 0x251   : > { %v1174_v32 = vld [vmem:[%s4772_s6 + $0x168] sm:$0xff] }
 0x252   : > { %2859 = vmatpush1.bf16.msra.mxu1 %v2858_v54  ;;  %v1164_v54 = vld [vmem:[%s4772_s6 + $0x118] sm:$0xff]  ;;  %v2642_v41 = vld [vmem:[%s4772_s6 + $0x368] sm:$0xff] }
 0x253   : > { %3007 = vmatpush1.bf16.msra.mxu0 %v3006_v4  ;;  %2861 = vmatprep.subr.bf16.mxu1 %v2860_v57  ;;  %v2620_v4 = vld [vmem:[%s4772_s6 + $0x2b8] sm:$0xff] }
 0x254   : > { %3009 = vmatprep.subr.bf16.mxu0 %v3008_v16  ;;  %v3020_v6 = vpack.c.bf16 %v2620_v4, %v2618_v3  ;;  %v2632_v57 = vld [vmem:[%s4772_s6 + $0x318] sm:$0xff] }
 0x257   : > { %3011 = vmatpush1.bf16.msra.mxu0 %v3010_v31  ;;  %v1155_v31 = vld [vmem:[%s4772_s6 + $0xd0] sm:$0xff] }
 0x258   : > { %3013 = vmatprep.subr.bf16.mxu0 %v3012_v36  ;;  %v2866_v33 = vpack.c.bf16 %v1155_v31, %v1153_v29  ;;  %v1170_v29 = vld [vmem:[%s4772_s6 + $0x148] sm:$0xff]  ;;  %v1172_v31 = vld [vmem:[%s4772_s6 + $0x158] sm:$0xff] }
 0x25b   : > { %3015 = vmatpush1.bf16.msra.mxu0 %v3014_v43  ;;  %v1159_v43 = vld [vmem:[%s4772_s6 + $0xf0] sm:$0xff] }
 0x25c   : > { %3017 = vmatprep.subr.bf16.mxu0 %v3016_v48  ;;  %v2870_v45 = vpack.c.bf16 %v1159_v43, %v1157_v42  ;;  %v1173_v43 = vld [vmem:[%s4772_s6 + $0x160] sm:$0xff] }
 0x25f   : > { %3019 = vmatpush1.bf16.msra.mxu0 %v3018_v56  ;;  %v2630_v56 = vld [vmem:[%s4772_s6 + $0x308] sm:$0xff] }
 0x260   : > { %3021 = vmatprep.subr.bf16.mxu0 %v3020_v6 }
 0x263   : > { %3023 = vmatpush1.bf16.msra.mxu0 %v3022_v18 }
 0x264   : > { %3025 = vmatprep.subr.bf16.mxu0 %v3024_v5  ;;  %v2638_v5 = vld [vmem:[%s4772_s6 + $0x348] sm:$0xff] }
 0x267   : > { %3027 = vmatpush1.bf16.msra.mxu0 %v3026_v38  ;;  %v2639_v38 = vld [vmem:[%s4772_s6 + $0x350] sm:$0xff] }
 0x268   : > { %3029 = vmatprep.subr.bf16.mxu0 %v3028_v44  ;;  %v1175_v44 = vld [vmem:[%s4772_s6 + $0x170] sm:$0xff] }
 0x269   : > { %v2886_v46 = vpack.c.bf16 %v1175_v44, %v1173_v43  ;;  %v1098_v43 = vld [vmem:[#allocation6 + $0x8] sm:$0xff]  ;;  %v1100_v44 = vld [vmem:[#allocation6 + $0x18] sm:$0xff] }
 0x26b   : > { %3031 = vmatpush1.bf16.msra.mxu0 %v3030_v52  ;;  %v1178_v52 = vld [vmem:[%s4772_s6 + $0x188] sm:$0xff] }
 0x2d5   : > { %v893_v58 = vpop.xlane.xlu1 %892 }
 0x2d6   : > { %3420 = vrcp.f32 %v893_v58  ;;  %v1161_v58 = vld [vmem:[%s4772_s6 + $0x100] sm:$0xff] }
 0x2e0   : > { %v4074_v59 = vpop.eup %3420 }
 0x2e1   : > { %v899_v60 = vrot.slane %v4074_v59, %v3729_v14  ;;  %v903_v63 = vrot.slane %v4074_v59, %v3732_v15  ;;  %v907_v1 = vrot.slane %v4074_v59, %v3822_v49  ;;  %v911_v17 = vrot.slane %v4074_v59, %v3825_v50 }
 0x2e2   : > { %v915_v37 = vrot.slane %v4074_v59, %v3831_v55  ;;  %v919_v51 = vrot.slane %v4074_v59, %v3835_v62  ;;  %v923_v4 = vrot.slane %v4074_v59, %v3839_v2 }
 0x2e3   : > { %v936_v61 = vmul.f32 %v3846_v12, %v899_v60  ;;  %v937_v0 = vmul.f32 %v3848_v13, %v903_v63  ;;  %v1149_v12 = vld [vmem:[%s4772_s6 + $0xa0] sm:$0xff]  ;;  %v1151_v13 = vld [vmem:[%s4772_s6 + $0xb0] sm:$0xff]  ;;  %v938_v16 = vmul.f32 %v3853_v8, %v907_v1  ;;  %v2864_v8 = vpack.c.bf16 %v1156_v26, %v1154_v19 }
 0x2e4   : > { %v2862_v10 = vpack.c.bf16 %v1151_v13, %v1149_v12  ;;  %v939_v36 = vmul.f32 %v3856_v21, %v911_v17  ;;  %v2868_v21 = vpack.c.bf16 %v1160_v40, %v1158_v39  ;;  %v940_v48 = vmul.f32 %v3859_v24, %v915_v37  ;;  %v1163_v60 = vld [vmem:[%s4772_s6 + $0x110] sm:$0xff]  ;;  %v1166_v12 = vld [vmem:[%s4772_s6 + $0x128] sm:$0xff]  ;;  %v1168_v13 = vld [vmem:[%s4772_s6 + $0x138] sm:$0xff] }
 0x2e5   : > { %946 = vperm.xlu0 %3401, %v936_v61   ;;  %v2872_v24 = vpack.c.bf16 %v1164_v54, %v1162_v53  ;;  %v3032_v61 = vpack.c.bf16 %v2632_v57, %v2630_v56  ;;  %v2874_v63 = vpack.c.bf16 %v1163_v60, %v1161_v58  ;;  %v2631_v1 = vld [vmem:[%s4772_s6 + $0x310] sm:$0xff]  ;;  %v941_v3 = vmul.f32 %v3862_v25, %v919_v51  ;;  %v2633_v19 = vld [vmem:[%s4772_s6 + $0x320] sm:$0xff]  ;;  %v1180_v53 = vld [vmem:[%s4772_s6 + $0x198] sm:$0xff] }
 0x2e6   : > { %2863 = vmatpush1.bf16.msra.mxu1 %v2862_v10  ;;  %v2876_v25 = vpack.c.bf16 %v1168_v13, %v1166_v12  ;;  %v2636_v10 = vld [vmem:[%s4772_s6 + $0x338] sm:$0xff]  ;;  %v2635_v26 = vld [vmem:[%s4772_s6 + $0x330] sm:$0xff]  ;;  %v942_v20 = vmul.f32 %v3865_v27, %v923_v4  ;;  %v2880_v27 = vpack.c.bf16 %v1172_v31, %v1170_v29  ;;  %v2637_v37 = vld [vmem:[%s4772_s6 + $0x340] sm:$0xff]  ;;  %v2888_v56 = vpack.c.bf16 %v1180_v53, %v1178_v52 }
 0x2e7   : > { %2865 = vmatprep.subr.bf16.mxu1 %v2864_v8  ;;  %3033 = vmatprep.subr.bf16.mxu0 %v3032_v61  ;;  %v3036_v17 = vpack.c.bf16 %v2636_v10, %v2634_v9  ;;  %v927_v8 = vrot.slane %v4074_v59, %v3843_v7  ;;  %v3038_v22 = vpack.c.bf16 %v2635_v26, %v2633_v19  ;;  %v2640_v59 = vld [vmem:[%s4772_s6 + $0x358] sm:$0xff]  ;;  %v2646_v54 = vld [vmem:[%s4772_s6 + $0x388] sm:$0xff]  ;;  %v1177_v57 = vld [vmem:[%s4772_s6 + $0x180] sm:$0xff] }
 0x2e8   : > { %v3040_v35 = vpack.c.bf16 %v2640_v59, %v2638_v5  ;;  %v3042_v40 = vpack.c.bf16 %v2639_v38, %v2637_v37  ;;  %v1179_v58 = vld [vmem:[%s4772_s6 + $0x190] sm:$0xff]  ;;  %v1184_v4 = vld [vmem:[%s4772_s6 + $0x1b8] sm:$0xff]  ;;  %v1181_v9 = vld [vmem:[%s4772_s6 + $0x1a0] sm:$0xff] }
 0x2e9   : > { %951 = vperm.xlu0 %3401, %v937_v0   ;;  %v2629_v0 = vld [vmem:[%s4772_s6 + $0x300] sm:$0xff]  ;;  %v943_v39 = vmul.f32 %v3868_v28, %v927_v8  ;;  %v2644_v28 = vld [vmem:[%s4772_s6 + $0x378] sm:$0xff]  ;;  %v2890_v61 = vpack.c.bf16 %v1179_v58, %v1177_v57  ;;  %v1186_v19 = vld [vmem:[%s4772_s6 + $0x1c8] sm:$0xff] }
 0x2ea   : > { %2867 = vmatpush1.bf16.msra.mxu1 %v2866_v33  ;;  %v3034_v6 = vpack.c.bf16 %v2631_v1, %v2629_v0  ;;  %v1169_v33 = vld [vmem:[%s4772_s6 + $0x140] sm:$0xff]  ;;  %v2647_v0 = vld [vmem:[%s4772_s6 + $0x390] sm:$0xff]  ;;  %v2652_v13 = vld [vmem:[%s4772_s6 + $0x3b8] sm:$0xff] }
 0x2eb   : > { %2869 = vmatprep.subr.bf16.mxu1 %v2868_v21  ;;  %v1176_v21 = vld [vmem:[%s4772_s6 + $0x178] sm:$0xff]  ;;  %v1185_v29 = vld [vmem:[%s4772_s6 + $0x1c0] sm:$0xff]  ;;  %v1187_v31 = vld [vmem:[%s4772_s6 + $0x1d0] sm:$0xff] }
 0x2ec   : > { %3035 = vmatpush1.bf16.msra.mxu0 %v3034_v6  ;;  %v2884_v42 = vpack.c.bf16 %v1176_v21, %v1174_v32  ;;  %v2650_v6 = vld [vmem:[%s4772_s6 + $0x3a8] sm:$0xff]  ;;  %v1188_v26 = vld [vmem:[%s4772_s6 + $0x1d8] sm:$0xff]  ;;  %v2653_v59 = vld [vmem:[%s4772_s6 + $0x3c0] sm:$0xff] }
 0x2ed   : > { %956 = vperm.xlu0 %3401, %v938_v16   ;;  %v1167_v16 = vld [vmem:[%s4772_s6 + $0x130] sm:$0xff]  ;;  %3037 = vmatprep.subr.bf16.mxu0 %v3036_v17  ;;  %v3052_v10 = vpack.c.bf16 %v2652_v13, %v2650_v6  ;;  %v2896_v8 = vpack.c.bf16 %v1188_v26, %v1186_v19  ;;  %v2658_v37 = vld [vmem:[%s4772_s6 + $0x3e8] sm:$0xff]  ;;  %v2660_v38 = vld [vmem:[%s4772_s6 + $0x3f8] sm:$0xff] }
 0x2ee   : > { %2871 = vmatpush1.bf16.msra.mxu1 %v2870_v45  ;;  %v2878_v18 = vpack.c.bf16 %v1167_v16, %v1165_v11  ;;  %v3044_v45 = vpack.c.bf16 %v2644_v28, %v2642_v41  ;;  %v2649_v16 = vld [vmem:[%s4772_s6 + $0x3a0] sm:$0xff]  ;;  %v2651_v17 = vld [vmem:[%s4772_s6 + $0x3b0] sm:$0xff]  ;;  %v3443_v57 = vld [vmem:[%s4769_s3 + $0x8] sm:$0xff] }
 0x2ef   : > { %2873 = vmatprep.subr.bf16.mxu1 %v2872_v24  ;;  %v2648_v24 = vld [vmem:[%s4772_s6 + $0x398] sm:$0xff]  ;;  %v1189_v32 = vld [vmem:[%s4772_s6 + $0x1e0] sm:$0xff]  ;;  %v1191_v21 = vld [vmem:[%s4772_s6 + $0x1f0] sm:$0xff] }
 0x2f0   : > { %3039 = vmatpush1.bf16.msra.mxu0 %v3038_v22  ;;  %v3048_v60 = vpack.c.bf16 %v2648_v24, %v2646_v54  ;;  %v2656_v22 = vld [vmem:[%s4772_s6 + $0x3d8] sm:$0xff]  ;;  %v2657_v41 = vld [vmem:[%s4772_s6 + $0x3e0] sm:$0xff]  ;;  %v2659_v28 = vld [vmem:[%s4772_s6 + $0x3f0] sm:$0xff] }
 0x2f1   : > { %961 = vperm.xlu0 %3401, %v939_v36   ;;  %v2882_v36 = vpack.c.bf16 %v1171_v34, %v1169_v33  ;;  %3041 = vmatprep.subr.bf16.mxu0 %v3040_v35  ;;  %v2655_v33 = vld [vmem:[%s4772_s6 + $0x3d0] sm:$0xff]  ;;  %v1190_v34 = vld [vmem:[%s4772_s6 + $0x1e8] sm:$0xff] }
 0x2f2   : > { %2875 = vmatpush1.bf16.msra.mxu1 %v2874_v63  ;;  %v2645_v63 = vld [vmem:[%s4772_s6 + $0x380] sm:$0xff]  ;;  %v3058_v35 = vpack.c.bf16 %v2655_v33, %v2653_v59 }
 0x2f3   : > { %2877 = vmatprep.subr.bf16.mxu1 %v2876_v25  ;;  %v3050_v1 = vpack.c.bf16 %v2647_v0, %v2645_v63  ;;  %v1183_v25 = vld [vmem:[%s4772_s6 + $0x1b0] sm:$0xff] }
 0x2f4   : > { %3043 = vmatpush1.bf16.msra.mxu0 %v3042_v40  ;;  %v2894_v11 = vpack.c.bf16 %v1183_v25, %v1181_v9  ;;  %v3060_v40 = vpack.c.bf16 %v2660_v38, %v2658_v37  ;;  %v3444_v0 = vld [vmem:[%s4769_s3 + $0x10] sm:$0xff] }
 0x2f5   : > { %966 = vperm.xlu0 %3401, %v940_v48   ;;  %v2643_v48 = vld [vmem:[%s4772_s6 + $0x370] sm:$0xff]  ;;  %3045 = vmatprep.subr.bf16.mxu0 %v3044_v45  ;;  %v3062_v45 = vpack.c.bf16 %v2659_v28, %v2657_v41 }
 0x2f6   : > { %2879 = vmatpush1.bf16.msra.mxu1 %v2878_v18  ;;  %v3046_v51 = vpack.c.bf16 %v2643_v48, %v2641_v47  ;;  %v3054_v18 = vpack.c.bf16 %v2651_v17, %v2649_v16  ;;  %v1539_v47 = vld [vmem:[#allocation6 + $0x108] sm:$0xff]  ;;  %v1541_v48 = vld [vmem:[#allocation6 + $0x118] sm:$0xff]  ;;  %v3447_v16 = vld [vmem:[%s4769_s3 + $0x28] sm:$0xff] }
 0x2f7   : > { %2881 = vmatprep.subr.bf16.mxu1 %v2880_v27  ;;  %v2898_v27 = vpack.c.bf16 %v1187_v31, %v1185_v29  ;;  %v3448_v31 = vld [vmem:[%s4769_s3 + $0x30] sm:$0xff] }
 0x2f8   : > { %3047 = vmatpush1.bf16.msra.mxu0 %v3046_v51  ;;  %v3064_v51 = vpack.c.bf16 %v1541_v48, %v1539_v47 }
 0x2f9   : > { %971 = vperm.xlu0 %3401, %v941_v3   ;;  %3049 = vmatprep.subr.bf16.mxu0 %v3048_v60  ;;  %v1182_v3 = vld [vmem:[%s4772_s6 + $0x1a8] sm:$0xff] }
 0x2fa   : > { %2883 = vmatpush1.bf16.msra.mxu1 %v2882_v36  ;;  %v2892_v12 = vpack.c.bf16 %v1184_v4, %v1182_v3  ;;  %v1192_v36 = vld [vmem:[%s4772_s6 + $0x1f8] sm:$0xff] }
 0x2fb   : > { %2885 = vmatprep.subr.bf16.mxu1 %v2884_v42  ;;  %v2902_v42 = vpack.c.bf16 %v1191_v21, %v1189_v32  ;;  %v3445_v3 = vld [vmem:[%s4769_s3 + $0x18] sm:$0xff]  ;;  %v3451_v21 = vld [vmem:[%s4769_s3 + $0x48] sm:$0xff] }
 0x2fc   : > { %3051 = vmatpush1.bf16.msra.mxu0 %v3050_v1 }
 0x2fd   : > { %976 = vperm.xlu0 %3401, %v942_v20   ;;  %3053 = vmatprep.subr.bf16.mxu0 %v3052_v10  ;;  %v2654_v20 = vld [vmem:[%s4772_s6 + $0x3c8] sm:$0xff]  ;;  %v3446_v10 = vld [vmem:[%s4769_s3 + $0x20] sm:$0xff] }
 0x2fe   : > { %2887 = vmatpush1.bf16.msra.mxu1 %v2886_v46  ;;  %v3056_v5 = vpack.c.bf16 %v2656_v22, %v2654_v20  ;;  %v2904_v46 = vpack.c.bf16 %v1100_v44, %v1098_v43 }
 0x2ff   : > { %2889 = vmatprep.subr.bf16.mxu1 %v2888_v56  ;;  %v3442_v56 = vld [vmem:[%s4769_s3] sm:$0xff] }
 0x300   : > { %3055 = vmatpush1.bf16.msra.mxu0 %v3054_v18 }
 0x301   : > { %981 = vperm.xlu0 %3401, %v943_v39   ;;  %3057 = vmatprep.subr.bf16.mxu0 %v3056_v5  ;;  %v2900_v39 = vpack.c.bf16 %v1192_v36, %v1190_v34 }
 0x302   : > { %2891 = vmatpush1.bf16.msra.mxu1 %v2890_v61 }
 0x303   : > { %2893 = vmatprep.subr.bf16.mxu1 %v2892_v12 }
 0x304   : > { %3059 = vmatpush1.bf16.msra.mxu0 %v3058_v35 }
 0x305   : > { %3061 = vmatprep.subr.bf16.mxu0 %v3060_v40  ;;  %v3450_v40 = vld [vmem:[%s4769_s3 + $0x40] sm:$0xff] }
 0x306   : > { %2895 = vmatpush1.bf16.msra.mxu1 %v2894_v11 }
 0x307   : > { %2897 = vmatprep.subr.bf16.mxu1 %v2896_v8 }
 0x308   : > { %3063 = vmatpush1.bf16.msra.mxu0 %v3062_v45 }
 0x309   : > { %3065 = vmatprep.subr.bf16.mxu0 %v3064_v51 }
 0x30a   : > { %2899 = vmatpush1.bf16.msra.mxu1 %v2898_v27  ;;  %v3449_v27 = vld [vmem:[%s4769_s3 + $0x38] sm:$0xff] }
 0x30b   : > { %2901 = vmatprep.subr.bf16.mxu1 %v2900_v39 }
 0x30e   : > { %2903 = vmatpush1.bf16.msra.mxu1 %v2902_v42 }
 0x30f   : > { %2905 = vmatprep.subr.bf16.mxu1 %v2904_v46 }
 0x321   : > { %v4358_v52 = vpop.f32.mrb[0].mxu0 }
 0x322   : > { %v2815_v53 = vpop.f32.mrb[1].mxu0 }
 0x364   : > { %v947_v54 = vpop.permute.xlu0 %946 }
 0x365   : > { %v984_v24 = vmul.f32 %v3442_v56, %v947_v54  ;;  %v985_v58 = vmul.f32 %v3443_v57, %v947_v54  ;;  %v3452_v57 = vld [vmem:[%s4769_s3 + $0x50] sm:$0xff] }
 0x367   : > { %v1000_v60 = vrot.slane %v984_v24, 4  ;;  %v1006_v61 = vrot.slane %v985_v58, 4 }
 0x368   : > { %v952_v63 = vpop.permute.xlu0 %951 }
 0x369   : > { %v986_v1 = vmul.f32 %v3444_v0, %v952_v63  ;;  %v987_v4 = vmul.f32 %v3445_v3, %v952_v63  ;;  %v1001_v6 = vadd.f32 %v1000_v60, %v984_v24  ;;  %v1007_v12 = vadd.f32 %v1006_v61, %v985_v58  ;;  %v3453_v60 = vld [vmem:[%s4769_s3 + $0x58] sm:$0xff] }
 0x36b   : > { %v1012_v13 = vrot.slane %v986_v1, 4  ;;  %v1018_v9 = vrot.slane %v987_v4, 4  ;;  %v1002_v18 = vrot.slane %v1001_v6, 2  ;;  %v1008_v19 = vrot.slane %v1007_v12, 2 }
 0x36c   : > { %v957_v25 = vpop.permute.xlu0 %956 }
 0x36d   : > { %v988_v11 = vmul.f32 %v3446_v10, %v957_v25  ;;  %v989_v17 = vmul.f32 %v3447_v16, %v957_v25  ;;  %v1013_v26 = vadd.f32 %v1012_v13, %v986_v1  ;;  %v1019_v20 = vadd.f32 %v1018_v9, %v987_v4 }
 0x36e   : > { %v1003_v33 = vadd.f32 %v1002_v18, %v1001_v6  ;;  %v1009_v34 = vadd.f32 %v1008_v19, %v1007_v12 }
 0x36f   : > { %v1024_v22 = vrot.slane %v988_v11, 4  ;;  %v1030_v29 = vrot.slane %v989_v17, 4  ;;  %v1014_v35 = vrot.slane %v1013_v26, 2  ;;  %v1020_v36 = vrot.slane %v1019_v20, 2 }
 0x370   : > { %v962_v8 = vpop.permute.xlu0 %961  ;;  %v1004_v47 = vrot.slane %v1003_v33, 1  ;;  %v1010_v48 = vrot.slane %v1009_v34, 1 }
 0x371   : > { %v990_v5 = vmul.f32 %v3448_v31, %v962_v8  ;;  %v991_v59 = vmul.f32 %v3449_v27, %v962_v8  ;;  %v1025_v42 = vadd.f32 %v1024_v22, %v988_v11  ;;  %v1031_v28 = vadd.f32 %v1030_v29, %v989_v17  ;;  %v3455_v22 = vld [vmem:[%s4769_s3 + $0x68] sm:$0xff] }
 0x372   : > { %v1015_v51 = vadd.f32 %v1014_v35, %v1013_v26  ;;  %v1021_v53 = vadd.f32 %v1020_v36, %v1019_v20  ;;  %v1005_v12 = vadd.f32 %v1004_v47, %v1003_v33  ;;  %v1011_v13 = vadd.f32 %v1010_v48, %v1009_v34  ;;  %v3454_v20 = vld [vmem:[%s4769_s3 + $0x60] sm:$0xff] }
 0x373   : > { %v1036_v37 = vrot.slane %v990_v5, 4  ;;  %v1042_v38 = vrot.slane %v991_v59, 4  ;;  %v1026_v63 = vrot.slane %v1025_v42, 2  ;;  %v1032_v0 = vrot.slane %v1031_v28, 2 }
 0x374   : > { %v967_v39 = vpop.permute.xlu0 %966  ;;  %v1016_v9 = vrot.slane %v1015_v51, 1  ;;  %v1022_v25 = vrot.slane %v1021_v53, 1 }
 0x375   : > { %v992_v32 = vmul.f32 %v3450_v40, %v967_v39  ;;  %v993_v41 = vmul.f32 %v3451_v21, %v967_v39  ;;  %v1037_v43 = vadd.f32 %v1036_v37, %v990_v5  ;;  %v1043_v44 = vadd.f32 %v1042_v38, %v991_v59 }
 0x376   : > { %v1027_v19 = vadd.f32 %v1026_v63, %v1025_v42  ;;  %v1033_v26 = vadd.f32 %v1032_v0, %v1031_v28  ;;  %v1017_v33 = vadd.f32 %v1016_v9, %v1015_v51  ;;  %v1023_v34 = vadd.f32 %v1022_v25, %v1021_v53  ;;  %v3456_v42 = vld [vmem:[%s4769_s3 + $0x70] sm:$0xff] }
 0x377   : > { %v1048_v45 = vrot.slane %v992_v32, 4  ;;  %v1054_v46 = vrot.slane %v993_v41, 4  ;;  %v1038_v1 = vrot.slane %v1037_v43, 2  ;;  %v1044_v3 = vrot.slane %v1043_v44, 2 }
 0x378   : > { %v972_v54 = vpop.permute.xlu0 %971 }
 0x379   : > { %v1049_v56 = vadd.f32 %v1048_v45, %v992_v32  ;;  %v1055_v24 = vadd.f32 %v1054_v46, %v993_v41  ;;  %v994_v58 = vmul.f32 %v3452_v57, %v972_v54  ;;  %v995_v61 = vmul.f32 %v3453_v60, %v972_v54 }
 0x37a   : > { %v1039_v31 = vadd.f32 %v1038_v1, %v1037_v43  ;;  %v1045_v5 = vadd.f32 %v1044_v3, %v1043_v44  ;;  %v3457_v43 = vld [vmem:[%s4769_s3 + $0x78] sm:$0xff]  ;;  %v1028_v45 = vrot.slane %v1027_v19, 1  ;;  %v1034_v46 = vrot.slane %v1033_v26, 1 }
 0x37b   : > { %v1060_v4 = vrot.slane %v994_v58, 4  ;;  %v1066_v6 = vrot.slane %v995_v61, 4  ;;  %v1050_v11 = vrot.slane %v1049_v56, 2  ;;  %v1056_v16 = vrot.slane %v1055_v24, 2 }
 0x37c   : > { %v977_v10 = vpop.permute.xlu0 %976  ;;  %v1040_v47 = vrot.slane %v1039_v31, 1  ;;  %v1046_v48 = vrot.slane %v1045_v5, 1  ;;  %v1029_v3 = vadd.f32 %v1028_v45, %v1027_v19 }
 0x37d   : > { %v1061_v17 = vadd.f32 %v1060_v4, %v994_v58  ;;  %v1067_v18 = vadd.f32 %v1066_v6, %v995_v61  ;;  %v996_v8 = vmul.f32 %v3454_v20, %v977_v10  ;;  %v997_v29 = vmul.f32 %v3455_v22, %v977_v10 }
 0x37e   : > { %v1051_v38 = vadd.f32 %v1050_v11, %v1049_v56  ;;  %v1057_v39 = vadd.f32 %v1056_v16, %v1055_v24  ;;  %v1035_v4 = vadd.f32 %v1034_v46, %v1033_v26  ;;  %v1041_v6 = vadd.f32 %v1040_v47, %v1039_v31 }
 0x37f   : > { %v1062_v27 = vrot.slane %v1061_v17, 2  ;;  %v1068_v59 = vrot.slane %v1067_v18, 2  ;;  %v1072_v35 = vrot.slane %v996_v8, 4  ;;  %v1078_v36 = vrot.slane %v997_v29, 4 }
 0x380   : > { %v982_v37 = vpop.permute.xlu0 %981  ;;  %v1052_v24 = vrot.slane %v1051_v38, 1  ;;  %v1058_v57 = vrot.slane %v1057_v39, 1  ;;  %v1047_v9 = vadd.f32 %v1046_v48, %v1045_v5  ;;  %v1097_v5 = vld [vmem:[#allocation6] sm:$0xff] }
 0x381   : > { %v1063_v40 = vadd.f32 %v1062_v27, %v1061_v17  ;;  %v1069_v32 = vadd.f32 %v1068_v59, %v1067_v18  ;;  %v1073_v21 = vadd.f32 %v1072_v35, %v996_v8  ;;  %v1079_v41 = vadd.f32 %v1078_v36, %v997_v29  ;;  %v1099_v36 = vld [vmem:[#allocation6 + $0x10] sm:$0xff] }
 0x382   : > { %v998_v28 = vmul.f32 %v3456_v42, %v982_v37  ;;  %v999_v44 = vmul.f32 %v3457_v43, %v982_v37  ;;  %v1209_v17 = vsel %vm735_vm0, %v1017_v33, %v1005_v12  ;;  %v1216_v18 = vsel %vm735_vm0, %v1023_v34, %v1011_v13  ;;  %v1538_v33 = vld [vmem:[#allocation6 + $0x100] sm:$0xff]  ;;  %v1540_v34 = vld [vmem:[#allocation6 + $0x110] sm:$0xff]  ;;  %v1545_v42 = vld [vmem:[#allocation6 + $0x138] sm:$0xff] }
 0x383   : > { %v1074_v51 = vrot.slane %v1073_v21, 2  ;;  %v1080_v53 = vrot.slane %v1079_v41, 2  ;;  %v1064_v58 = vrot.slane %v1063_v40, 1  ;;  %v1070_v60 = vrot.slane %v1069_v32, 1 }
 0x384   : > { %v1084_v54 = vrot.slane %v998_v28, 4  ;;  %v1090_v56 = vrot.slane %v999_v44, 4  ;;  %v1053_v20 = vadd.f32 %v1052_v24, %v1051_v38  ;;  %v1059_v8 = vadd.f32 %v1058_v57, %v1057_v39  ;;  %v1102_v38 = vld [vmem:[#allocation6 + $0x28] sm:$0xff] }
 0x385   : > { %v1075_v61 = vadd.f32 %v1074_v51, %v1073_v21  ;;  %v1081_v63 = vadd.f32 %v1080_v53, %v1079_v41  ;;  %v1065_v22 = vadd.f32 %v1064_v58, %v1063_v40  ;;  %v1071_v29 = vadd.f32 %v1070_v60, %v1069_v32  ;;  %v1104_v32 = vld [vmem:[#allocation6 + $0x38] sm:$0xff]  ;;  %v1543_v41 = vld [vmem:[#allocation6 + $0x128] sm:$0xff]  ;;  %v1101_v53 = vld [vmem:[#allocation6 + $0x20] sm:$0xff] }
 0x386   : > { %v1085_v0 = vadd.f32 %v1084_v54, %v998_v28  ;;  %v1091_v1 = vadd.f32 %v1090_v56, %v999_v44  ;;  %v1210_v35 = vsel %vm737_vm1, %v1029_v3, %v1209_v17  ;;  %v1217_v19 = vsel %vm737_vm1, %v1035_v4, %v1216_v18  ;;  %v1103_v54 = vld [vmem:[#allocation6 + $0x30] sm:$0xff]  ;;  %v1542_v60 = vld [vmem:[#allocation6 + $0x120] sm:$0xff]  ;;  %v1549_v3 = vld [vmem:[#allocation6 + $0x158] sm:$0xff] }
 0x387   : > { %v1076_v25 = vrot.slane %v1075_v61, 1  ;;  %v1082_v10 = vrot.slane %v1081_v63, 1  ;;  %v1218_v12 = vsel %vm739_vm2, %v1047_v9, %v1217_v19  ;;  %v1211_v13 = vsel %vm739_vm2, %v1041_v6, %v1210_v35  ;;  %v1105_v9 = vld [vmem:[#allocation6 + $0x40] sm:$0xff]  ;;  %v1548_v17 = vld [vmem:[#allocation6 + $0x150] sm:$0xff]  ;;  %v1110_v18 = vld [vmem:[#allocation6 + $0x68] sm:$0xff] }
 0x388   : > { %v1086_v11 = vrot.slane %v1085_v0, 2  ;;  %v1092_v16 = vrot.slane %v1091_v1, 2  ;;  %v1219_v39 = vsel %vm741_vm3, %v1059_v8, %v1218_v12  ;;  %v1212_v40 = vsel %vm741_vm3, %v1053_v20, %v1211_v13  ;;  %v1112_v20 = vld [vmem:[#allocation6 + $0x78] sm:$0xff]  ;;  %v1551_v8 = vld [vmem:[#allocation6 + $0x168] sm:$0xff]  ;;  %v1111_v35 = vld [vmem:[#allocation6 + $0x70] sm:$0xff] }
 0x389   : > { %v1077_v26 = vadd.f32 %v1076_v25, %v1075_v61  ;;  %v1083_v31 = vadd.f32 %v1082_v10, %v1081_v63  ;;  %v1220_v43 = vsel %vm743_vm4, %v1071_v29, %v1219_v39  ;;  %v1213_v45 = vsel %vm743_vm4, %v1065_v22, %v1212_v40  ;;  %v1544_v61 = vld [vmem:[#allocation6 + $0x130] sm:$0xff]  ;;  %v1106_v63 = vld [vmem:[#allocation6 + $0x48] sm:$0xff]  ;;  %v1553_v22 = vld [vmem:[#allocation6 + $0x178] sm:$0xff] }
 0x38a   : > { %v1087_v27 = vadd.f32 %v1086_v11, %v1085_v0  ;;  %v1093_v59 = vadd.f32 %v1092_v16, %v1091_v1  ;;  %v2906_v48 = vpack.c.bf16 %v1099_v36, %v1097_v5  ;;  %v3066_v51 = vpack.c.bf16 %v1540_v34, %v1538_v33  ;;  %v1108_v0 = vld [vmem:[#allocation6 + $0x58] sm:$0xff]  ;;  %v1547_v1 = vld [vmem:[#allocation6 + $0x148] sm:$0xff]  ;;  %v1107_v25 = vld [vmem:[#allocation6 + $0x50] sm:$0xff] }
 0x38b   : > { %v1221_v46 = vsel %vm745_vm5, %v1083_v31, %v1220_v43  ;;  %v1214_v47 = vsel %vm745_vm5, %v1077_v26, %v1213_v45  ;;  %v2908_v57 = vpack.c.bf16 %v1104_v32, %v1102_v38  ;;  %v3068_v58 = vpack.c.bf16 %v1545_v42, %v1543_v41  ;;  %v1546_v16 = vld [vmem:[#allocation6 + $0x140] sm:$0xff]  ;;  %v1552_v5 = vld [vmem:[#allocation6 + $0x170] sm:$0xff]  ;;  %v1114_v36 = vld [vmem:[#allocation6 + $0x88] sm:$0xff] }
 0x38c   : > { %v1088_v37 = vrot.slane %v1087_v27, 1  ;;  %v1094_v21 = vrot.slane %v1093_v59, 1  ;;  %v2910_v4 = vpack.c.bf16 %v1103_v54, %v1101_v53  ;;  %v3070_v6 = vpack.c.bf16 %v1544_v61, %v1542_v60  ;;  %v1550_v31 = vld [vmem:[#allocation6 + $0x160] sm:$0xff]  ;;  %v1557_v12 = vld [vmem:[#allocation6 + $0x198] sm:$0xff]  ;;  %v1115_v38 = vld [vmem:[#allocation6 + $0x90] sm:$0xff] }
 0x38d   : > { %v2912_v10 = vpack.c.bf16 %v1108_v0, %v1106_v63  ;;  %v3072_v11 = vpack.c.bf16 %v1549_v3, %v1547_v1  ;;  %v2914_v29 = vpack.c.bf16 %v1107_v25, %v1105_v9  ;;  %v2916_v19 = vpack.c.bf16 %v1112_v20, %v1110_v18  ;;  %v1113_v34 = vld [vmem:[#allocation6 + $0x80] sm:$0xff]  ;;  %v1556_v41 = vld [vmem:[#allocation6 + $0x190] sm:$0xff]  ;;  %v1118_v42 = vld [vmem:[#allocation6 + $0xa8] sm:$0xff] }
 0x38e   : > { %v1095_v28 = vadd.f32 %v1094_v21, %v1093_v59  ;;  %v1089_v44 = vadd.f32 %v1088_v37, %v1087_v27  ;;  %v3074_v27 = vpack.c.bf16 %v1548_v17, %v1546_v16  ;;  %v1109_v59 = vld [vmem:[#allocation6 + $0x60] sm:$0xff]  ;;  %v3076_v26 = vpack.c.bf16 %v1553_v22, %v1551_v8  ;;  %v1116_v37 = vld [vmem:[#allocation6 + $0x98] sm:$0xff]  ;;  %v1555_v21 = vld [vmem:[#allocation6 + $0x188] sm:$0xff] }
 0x38f   : > { %v2918_v13 = vpack.c.bf16 %v1111_v35, %v1109_v59  ;;  %v3078_v33 = vpack.c.bf16 %v1552_v5, %v1550_v31  ;;  %v2920_v39 = vpack.c.bf16 %v1116_v37, %v1114_v36  ;;  %v3080_v40 = vpack.c.bf16 %v1557_v12, %v1555_v21  ;;  %v1554_v32 = vld [vmem:[#allocation6 + $0x180] sm:$0xff]  ;;  %v1559_v43 = vld [vmem:[#allocation6 + $0x1a8] sm:$0xff]  ;;  %v1124_v60 = vld [vmem:[#allocation6 + $0xd8] sm:$0xff] }
 0x390   : > { %v4421_v56 = vsel %vm747_vm6, %v1095_v28, %v1221_v46  ;;  %v4424_v24 = vsel %vm747_vm6, %v1089_v44, %v1214_v47  ;;  %v1120_v28 = vld [vmem:[#allocation6 + $0xb8] sm:$0xff]  ;;  %v2922_v45 = vpack.c.bf16 %v1115_v38, %v1113_v34  ;;  %v3082_v46 = vpack.c.bf16 %v1556_v41, %v1554_v32  ;;  %v1117_v47 = vld [vmem:[#allocation6 + $0xa0] sm:$0xff]  ;;  %v1563_v61 = vld [vmem:[#allocation6 + $0x1c8] sm:$0xff] }
 0x391   : > { %1289 = vmatprep.mubr.f32.mxu1 %v4421_v56  ;;  %1699 = vmatprep.mubr.f32.mxu0 %v4421_v56  ;;  %v1561_v44 = vld [vmem:[#allocation6 + $0x1b8] sm:$0xff]  ;;  %v1558_v54 = vld [vmem:[#allocation6 + $0x1a0] sm:$0xff]  ;;  %v1567_v17 = vld [vmem:[#allocation6 + $0x1e8] sm:$0xff] }
 0x392   : > { %1290 = vmatmul.mubr.f32.vlgmr.msra.gmra.mrb[0].mxu1 %v4424_v24  ;;  %1700 = vmatmul.mubr.f32.vlgmr.msra.gmra.mrb[2].mxu0 %v4424_v24  ;;  %v3084_v53 = vpack.c.bf16 %v1561_v44, %v1559_v43  ;;  %v1565_v63 = vld [vmem:[#allocation6 + $0x1d8] sm:$0xff]  ;;  %v1121_v3 = vld [vmem:[#allocation6 + $0xc0] sm:$0xff]  ;;  %v1779_v5 = vld [vmem:[#allocation8 + $0x208] sm:$0xff] }
 0x393   : > { %2907 = vmatpush1.bf16.msra.mxu1 %v2906_v48  ;;  %3067 = vmatpush1.bf16.msra.mxu0 %v3066_v51  ;;  %v1119_v48 = vld [vmem:[#allocation6 + $0xb0] sm:$0xff]  ;;  %v2924_v51 = vpack.c.bf16 %v1120_v28, %v1118_v42  ;;  %v3088_v9 = vpack.c.bf16 %v1565_v63, %v1563_v61  ;;  %v1562_v25 = vld [vmem:[#allocation6 + $0x1c0] sm:$0xff]  ;;  %v1128_v16 = vld [vmem:[#allocation6 + $0xf8] sm:$0xff] }
 0x394   : > { %2909 = vmatprep.subr.bf16.mxu1 %v2908_v57  ;;  %3069 = vmatprep.subr.bf16.mxu0 %v3068_v58  ;;  %v1560_v57 = vld [vmem:[#allocation6 + $0x1b0] sm:$0xff]  ;;  %v1122_v58 = vld [vmem:[#allocation6 + $0xc8] sm:$0xff]  ;;  %v2926_v0 = vpack.c.bf16 %v1119_v48, %v1117_v47  ;;  %v1569_v18 = vld [vmem:[#allocation6 + $0x1f8] sm:$0xff] }
 0x395   : > { %1360 = vmatprep.mubr.f32.mxu1 %v3557_v30  ;;  %1770 = vmatprep.mubr.f32.mxu0 %v3557_v30  ;;  %v3086_v1 = vpack.c.bf16 %v1560_v57, %v1558_v54  ;;  %v1125_v22 = vld [vmem:[#allocation6 + $0xe0] sm:$0xff]  ;;  %v3092_v59 = vpack.c.bf16 %v1569_v18, %v1567_v17  ;;  %v1370_v31 = vld [vmem:[#allocation8 + $0x18] sm:$0xff]  ;;  %v1783_v41 = vld [vmem:[#allocation8 + $0x228] sm:$0xff] }
 0x396   : > { %v1566_v35 = vld [vmem:[#allocation6 + $0x1e0] sm:$0xff]  ;;  %v1781_v36 = vld [vmem:[#allocation8 + $0x218] sm:$0xff]  ;;  %v1787_v57 = vld [vmem:[#allocation8 + $0x248] sm:$0xff] }
 0x397   : > { %2911 = vmatpush1.bf16.msra.mxu1 %v2910_v4  ;;  %3071 = vmatpush1.bf16.msra.mxu0 %v3070_v6  ;;  %v1123_v4 = vld [vmem:[#allocation6 + $0xd0] sm:$0xff]  ;;  %v2928_v6 = vpack.c.bf16 %v1124_v60, %v1122_v58  ;;  %v1367_v12 = vld [vmem:[#allocation8] sm:$0xff]  ;;  %v3096_v34 = vpack.c.bf16 %v1781_v36, %v1779_v5  ;;  %v1374_v32 = vld [vmem:[#allocation8 + $0x38] sm:$0xff] }
 0x398   : > { %2913 = vmatprep.subr.bf16.mxu1 %v2912_v10  ;;  %3073 = vmatprep.subr.bf16.mxu0 %v3072_v11  ;;  %v1564_v10 = vld [vmem:[#allocation6 + $0x1d0] sm:$0xff]  ;;  %v1126_v11 = vld [vmem:[#allocation6 + $0xe8] sm:$0xff]  ;;  %v2930_v20 = vpack.c.bf16 %v1123_v4, %v1121_v3  ;;  %v1778_v38 = vld [vmem:[#allocation8 + $0x200] sm:$0xff] }
 0x399   : > { %v3090_v8 = vpack.c.bf16 %v1564_v10, %v1562_v25  ;;  %v1785_v42 = vld [vmem:[#allocation8 + $0x238] sm:$0xff]  ;;  %v1371_v44 = vld [vmem:[#allocation8 + $0x20] sm:$0xff]  ;;  %v1791_v10 = vld [vmem:[#allocation8 + $0x268] sm:$0xff] }
 0x39a   : > { %v3100_v47 = vpack.c.bf16 %v1785_v42, %v1783_v41  ;;  %v1782_v48 = vld [vmem:[#allocation8 + $0x220] sm:$0xff]  ;;  %v1378_v54 = vld [vmem:[#allocation8 + $0x58] sm:$0xff] }
 0x39b   : > { %2915 = vmatpush1.bf16.msra.mxu1 %v2914_v29  ;;  %3075 = vmatpush1.bf16.msra.mxu0 %v3074_v27  ;;  %v1127_v29 = vld [vmem:[#allocation6 + $0xf0] sm:$0xff]  ;;  %v2932_v27 = vpack.c.bf16 %v1128_v16, %v1126_v11  ;;  %v1789_v58 = vld [vmem:[#allocation8 + $0x258] sm:$0xff]  ;;  %v1375_v63 = vld [vmem:[#allocation8 + $0x40] sm:$0xff] }
 0x39c   : > { %2917 = vmatprep.subr.bf16.mxu1 %v2916_v19  ;;  %3077 = vmatprep.subr.bf16.mxu0 %v3076_v26  ;;  %v1568_v19 = vld [vmem:[#allocation6 + $0x1f0] sm:$0xff]  ;;  %v1368_v26 = vld [vmem:[#allocation8 + $0x8] sm:$0xff]  ;;  %v2934_v37 = vpack.c.bf16 %v1127_v29, %v1125_v22  ;;  %v3104_v3 = vpack.c.bf16 %v1789_v58, %v1787_v57  ;;  %v1786_v4 = vld [vmem:[#allocation8 + $0x240] sm:$0xff] }
 0x39d   : > { %v3094_v21 = vpack.c.bf16 %v1568_v19, %v1566_v35  ;;  %v1382_v25 = vld [vmem:[#allocation8 + $0x78] sm:$0xff]  ;;  %v4434_v16 = vld [vmem:[#allocation2 + $0x8] sm:$0xff]  ;;  %v1384_v35 = vld [vmem:[#allocation8 + $0x88] sm:$0xff] }
 0x39e   : > { %v1793_v11 = vld [vmem:[#allocation8 + $0x278] sm:$0xff] }
 0x39f   : > { %2919 = vmatpush1.bf16.msra.mxu1 %v2918_v13  ;;  %3079 = vmatpush1.bf16.msra.mxu0 %v3078_v33  ;;  %v1369_v13 = vld [vmem:[#allocation8 + $0x10] sm:$0xff]  ;;  %v2936_v33 = vpack.c.bf16 %v1370_v31, %v1368_v26  ;;  %v3108_v29 = vpack.c.bf16 %v1793_v11, %v1791_v10  ;;  %v1386_v19 = vld [vmem:[#allocation8 + $0x98] sm:$0xff]  ;;  %v1795_v26 = vld [vmem:[#allocation8 + $0x288] sm:$0xff] }
 0x3a0   : > { %2921 = vmatprep.subr.bf16.mxu1 %v2920_v39  ;;  %3081 = vmatprep.subr.bf16.mxu0 %v3080_v40  ;;  %v1780_v39 = vld [vmem:[#allocation8 + $0x210] sm:$0xff]  ;;  %v1372_v40 = vld [vmem:[#allocation8 + $0x28] sm:$0xff]  ;;  %v2938_v28 = vpack.c.bf16 %v1369_v13, %v1367_v12  ;;  %v1797_v31 = vld [vmem:[#allocation8 + $0x298] sm:$0xff]  ;;  %v2952_v12 = vpack.c.bf16 %v1386_v19, %v1384_v35 }
 0x3a1   : > { %v3098_v43 = vpack.c.bf16 %v1780_v39, %v1778_v38  ;;  %v3112_v13 = vpack.c.bf16 %v1797_v31, %v1795_v26  ;;  %v1388_v38 = vld [vmem:[#allocation8 + $0xa8] sm:$0xff]  ;;  %v1390_v39 = vld [vmem:[#allocation8 + $0xb8] sm:$0xff] }
 0x3a2   : > { %v1811_v35 = vld [vmem:[#allocation8 + $0x308] sm:$0xff]  ;;  %v1813_v19 = vld [vmem:[#allocation8 + $0x318] sm:$0xff] }
 0x3a3   : > { %2923 = vmatpush1.bf16.msra.mxu1 %v2922_v45  ;;  %3083 = vmatpush1.bf16.msra.mxu0 %v3082_v46  ;;  %v1373_v45 = vld [vmem:[#allocation8 + $0x30] sm:$0xff]  ;;  %v2940_v46 = vpack.c.bf16 %v1374_v32, %v1372_v40  ;;  %v1799_v40 = vld [vmem:[#allocation8 + $0x2a8] sm:$0xff]  ;;  %v1801_v32 = vld [vmem:[#allocation8 + $0x2b8] sm:$0xff] }
 0x3a4   : > { %2925 = vmatprep.subr.bf16.mxu1 %v2924_v51  ;;  %3085 = vmatprep.subr.bf16.mxu0 %v3084_v53  ;;  %v1784_v51 = vld [vmem:[#allocation8 + $0x230] sm:$0xff]  ;;  %v1376_v53 = vld [vmem:[#allocation8 + $0x48] sm:$0xff]  ;;  %v2942_v60 = vpack.c.bf16 %v1373_v45, %v1371_v44  ;;  %v2956_v44 = vpack.c.bf16 %v1390_v39, %v1388_v38  ;;  %v3116_v45 = vpack.c.bf16 %v1801_v32, %v1799_v40  ;;  %v1817_v39 = vld [vmem:[#allocation8 + $0x338] sm:$0xff] }
 0x3a5   : > { %v3102_v61 = vpack.c.bf16 %v1784_v51, %v1782_v48  ;;  %v1392_v48 = vld [vmem:[#allocation8 + $0xc8] sm:$0xff]  ;;  %v1394_v51 = vld [vmem:[#allocation8 + $0xd8] sm:$0xff] }
 0x3a6   : > { %v1815_v38 = vld [vmem:[#allocation8 + $0x328] sm:$0xff] }
 0x3a7   : > { %2927 = vmatpush1.bf16.msra.mxu1 %v2926_v0  ;;  %3087 = vmatpush1.bf16.msra.mxu0 %v3086_v1  ;;  %v1377_v0 = vld [vmem:[#allocation8 + $0x50] sm:$0xff]  ;;  %v2944_v1 = vpack.c.bf16 %v1378_v54, %v1376_v53  ;;  %v1803_v53 = vld [vmem:[#allocation8 + $0x2c8] sm:$0xff]  ;;  %v1805_v54 = vld [vmem:[#allocation8 + $0x2d8] sm:$0xff] }
 0x3a8   : > { %2929 = vmatprep.subr.bf16.mxu1 %v2928_v6  ;;  %3089 = vmatprep.subr.bf16.mxu0 %v3088_v9  ;;  %v1788_v6 = vld [vmem:[#allocation8 + $0x250] sm:$0xff]  ;;  %v1380_v9 = vld [vmem:[#allocation8 + $0x68] sm:$0xff]  ;;  %v2946_v17 = vpack.c.bf16 %v1377_v0, %v1375_v63  ;;  %v2960_v63 = vpack.c.bf16 %v1394_v51, %v1392_v48  ;;  %v3120_v0 = vpack.c.bf16 %v1805_v54, %v1803_v53  ;;  %v1821_v51 = vld [vmem:[#allocation8 + $0x358] sm:$0xff] }
 0x3a9   : > { %v3106_v18 = vpack.c.bf16 %v1788_v6, %v1786_v4  ;;  %v2948_v22 = vpack.c.bf16 %v1382_v25, %v1380_v9  ;;  %v1396_v4 = vld [vmem:[#allocation8 + $0xe8] sm:$0xff]  ;;  %v1398_v6 = vld [vmem:[#allocation8 + $0xf8] sm:$0xff] }
 0x3aa   : > { %v1807_v9 = vld [vmem:[#allocation8 + $0x2e8] sm:$0xff]  ;;  %v1809_v25 = vld [vmem:[#allocation8 + $0x2f8] sm:$0xff] }
 0x3ab   : > { %2931 = vmatpush1.bf16.msra.mxu1 %v2930_v20  ;;  %3091 = vmatpush1.bf16.msra.mxu0 %v3090_v8  ;;  %v1379_v20 = vld [vmem:[#allocation8 + $0x60] sm:$0xff]  ;;  %v1381_v8 = vld [vmem:[#allocation8 + $0x70] sm:$0xff]  ;;  %v1819_v48 = vld [vmem:[#allocation8 + $0x348] sm:$0xff] }
 0x3ac   : > { %2933 = vmatprep.subr.bf16.mxu1 %v2932_v27  ;;  %3093 = vmatprep.subr.bf16.mxu0 %v3092_v59  ;;  %v1790_v27 = vld [vmem:[#allocation8 + $0x260] sm:$0xff]  ;;  %v1792_v59 = vld [vmem:[#allocation8 + $0x270] sm:$0xff]  ;;  %v2950_v5 = vpack.c.bf16 %v1381_v8, %v1379_v20  ;;  %v2964_v20 = vpack.c.bf16 %v1398_v6, %v1396_v4  ;;  %v3124_v8 = vpack.c.bf16 %v1809_v25, %v1807_v9  ;;  %v1823_v4 = vld [vmem:[#allocation8 + $0x368] sm:$0xff] }
 0x3ad   : > { %v3110_v36 = vpack.c.bf16 %v1792_v59, %v1790_v27  ;;  %v1400_v27 = vld [vmem:[#allocation8 + $0x108] sm:$0xff]  ;;  %v1402_v59 = vld [vmem:[#allocation8 + $0x118] sm:$0xff] }
 0x3ae   : > { %v1825_v6 = vld [vmem:[#allocation8 + $0x378] sm:$0xff] }
 0x3af   : > { %2935 = vmatpush1.bf16.msra.mxu1 %v2934_v37  ;;  %3095 = vmatpush1.bf16.msra.mxu0 %v3094_v21  ;;  %v1383_v37 = vld [vmem:[#allocation8 + $0x80] sm:$0xff]  ;;  %v1385_v21 = vld [vmem:[#allocation8 + $0x90] sm:$0xff] }
 0x3b0   : > { %2937 = vmatprep.subr.bf16.mxu1 %v2936_v33  ;;  %3097 = vmatprep.subr.bf16.mxu0 %v3096_v34  ;;  %v1794_v33 = vld [vmem:[#allocation8 + $0x280] sm:$0xff]  ;;  %v1796_v34 = vld [vmem:[#allocation8 + $0x290] sm:$0xff]  ;;  %v2954_v41 = vpack.c.bf16 %v1385_v21, %v1383_v37  ;;  %v2968_v37 = vpack.c.bf16 %v1402_v59, %v1400_v27  ;;  %v3128_v21 = vpack.c.bf16 %v1813_v19, %v1811_v35  ;;  %v1827_v27 = vld [vmem:[#allocation8 + $0x388] sm:$0xff] }
 0x3b1   : > { %v3114_v42 = vpack.c.bf16 %v1796_v34, %v1794_v33  ;;  %v1404_v33 = vld [vmem:[#allocation8 + $0x128] sm:$0xff]  ;;  %v1406_v34 = vld [vmem:[#allocation8 + $0x138] sm:$0xff] }
 0x3b2   : > { %1361 = vmatmul.mubr.f32.vlgmr.msra.gmra.mrb[0].mxu1 %v4358_v52  ;;  %1771 = vmatmul.mubr.f32.vlgmr.msra.gmra.mrb[2].mxu0 %v4358_v52  ;;  %v1829_v59 = vld [vmem:[#allocation8 + $0x398] sm:$0xff] }
 0x3b3   : > { %2939 = vmatpush1.bf16.msra.mxu1 %v2938_v28  ;;  %3099 = vmatpush1.bf16.msra.mxu0 %v3098_v43  ;;  %v1387_v28 = vld [vmem:[#allocation8 + $0xa0] sm:$0xff]  ;;  %v1389_v43 = vld [vmem:[#allocation8 + $0xb0] sm:$0xff] }
 0x3b4   : > { %2941 = vmatprep.subr.bf16.mxu1 %v2940_v46  ;;  %3101 = vmatprep.subr.bf16.mxu0 %v3100_v47  ;;  %v1798_v46 = vld [vmem:[#allocation8 + $0x2a0] sm:$0xff]  ;;  %v1800_v47 = vld [vmem:[#allocation8 + $0x2b0] sm:$0xff]  ;;  %v2958_v57 = vpack.c.bf16 %v1389_v43, %v1387_v28  ;;  %v2972_v28 = vpack.c.bf16 %v1406_v34, %v1404_v33  ;;  %v3132_v43 = vpack.c.bf16 %v1817_v39, %v1815_v38  ;;  %v1831_v33 = vld [vmem:[#allocation8 + $0x3a8] sm:$0xff] }
 0x3b5   : > { %1495 = vmatprep.mubr.f32.mxu1 %v4434_v16  ;;  %1906 = vmatprep.mubr.f32.mxu0 %v4434_v16  ;;  %v3118_v58 = vpack.c.bf16 %v1800_v47, %v1798_v46  ;;  %v1408_v46 = vld [vmem:[#allocation8 + $0x148] sm:$0xff]  ;;  %v1410_v47 = vld [vmem:[#allocation8 + $0x158] sm:$0xff] }
 0x3b6   : > { %v1833_v34 = vld [vmem:[#allocation8 + $0x3b8] sm:$0xff] }
 0x3b7   : > { %2943 = vmatpush1.bf16.msra.mxu1 %v2942_v60  ;;  %3103 = vmatpush1.bf16.msra.mxu0 %v3102_v61  ;;  %v1391_v60 = vld [vmem:[#allocation8 + $0xc0] sm:$0xff]  ;;  %v1393_v61 = vld [vmem:[#allocation8 + $0xd0] sm:$0xff] }
 0x3b8   : > { %2945 = vmatprep.subr.bf16.mxu1 %v2944_v1  ;;  %3105 = vmatprep.subr.bf16.mxu0 %v3104_v3  ;;  %v1802_v1 = vld [vmem:[#allocation8 + $0x2c0] sm:$0xff]  ;;  %v1804_v3 = vld [vmem:[#allocation8 + $0x2d0] sm:$0xff]  ;;  %v2962_v10 = vpack.c.bf16 %v1393_v61, %v1391_v60  ;;  %v2976_v60 = vpack.c.bf16 %v1410_v47, %v1408_v46  ;;  %v3136_v61 = vpack.c.bf16 %v1821_v51, %v1819_v48  ;;  %v1835_v46 = vld [vmem:[#allocation8 + $0x3c8] sm:$0xff] }
 0x3b9   : > { %v3122_v11 = vpack.c.bf16 %v1804_v3, %v1802_v1  ;;  %v1412_v1 = vld [vmem:[#allocation8 + $0x168] sm:$0xff]  ;;  %v1414_v3 = vld [vmem:[#allocation8 + $0x178] sm:$0xff] }
 0x3ba   : > { %v1837_v47 = vld [vmem:[#allocation8 + $0x3d8] sm:$0xff] }
 0x3bb   : > { %2947 = vmatpush1.bf16.msra.mxu1 %v2946_v17  ;;  %3107 = vmatpush1.bf16.msra.mxu0 %v3106_v18  ;;  %v1395_v17 = vld [vmem:[#allocation8 + $0xe0] sm:$0xff]  ;;  %v1397_v18 = vld [vmem:[#allocation8 + $0xf0] sm:$0xff] }
 0x3bc   : > { %2949 = vmatprep.subr.bf16.mxu1 %v2948_v22  ;;  %3109 = vmatprep.subr.bf16.mxu0 %v3108_v29  ;;  %v1806_v22 = vld [vmem:[#allocation8 + $0x2e0] sm:$0xff]  ;;  %v1808_v29 = vld [vmem:[#allocation8 + $0x2f0] sm:$0xff]  ;;  %v2966_v26 = vpack.c.bf16 %v1397_v18, %v1395_v17  ;;  %v2980_v17 = vpack.c.bf16 %v1414_v3, %v1412_v1  ;;  %v3140_v18 = vpack.c.bf16 %v1825_v6, %v1823_v4  ;;  %v1839_v1 = vld [vmem:[#allocation8 + $0x3e8] sm:$0xff] }
 0x3bd   : > { %v3126_v31 = vpack.c.bf16 %v1808_v29, %v1806_v22  ;;  %v1416_v22 = vld [vmem:[#allocation8 + $0x188] sm:$0xff]  ;;  %v1418_v29 = vld [vmem:[#allocation8 + $0x198] sm:$0xff] }
 0x3be   : > { %v1841_v3 = vld [vmem:[#allocation8 + $0x3f8] sm:$0xff] }
 0x3bf   : > { %2951 = vmatpush1.bf16.msra.mxu1 %v2950_v5  ;;  %3111 = vmatpush1.bf16.msra.mxu0 %v3110_v36  ;;  %v1399_v5 = vld [vmem:[#allocation8 + $0x100] sm:$0xff]  ;;  %v1401_v36 = vld [vmem:[#allocation8 + $0x110] sm:$0xff] }
 0x3c0   : > { %2953 = vmatprep.subr.bf16.mxu1 %v2952_v12  ;;  %3113 = vmatprep.subr.bf16.mxu0 %v3112_v13  ;;  %v1810_v12 = vld [vmem:[#allocation8 + $0x300] sm:$0xff]  ;;  %v1812_v13 = vld [vmem:[#allocation8 + $0x310] sm:$0xff]  ;;  %v2970_v40 = vpack.c.bf16 %v1401_v36, %v1399_v5  ;;  %v2984_v5 = vpack.c.bf16 %v1418_v29, %v1416_v22  ;;  %v3144_v36 = vpack.c.bf16 %v1829_v59, %v1827_v27  ;;  %v2209_v22 = vld [vmem:[#allocation8 + $0x408] sm:$0xff] }
 0x3c1   : > { %v3130_v32 = vpack.c.bf16 %v1812_v13, %v1810_v12  ;;  %v1420_v12 = vld [vmem:[#allocation8 + $0x1a8] sm:$0xff]  ;;  %v1422_v13 = vld [vmem:[#allocation8 + $0x1b8] sm:$0xff] }
 0x3c2   : > { %v2211_v29 = vld [vmem:[#allocation8 + $0x418] sm:$0xff] }
 0x3c3   : > { %2955 = vmatpush1.bf16.msra.mxu1 %v2954_v41  ;;  %3115 = vmatpush1.bf16.msra.mxu0 %v3114_v42  ;;  %v1403_v41 = vld [vmem:[#allocation8 + $0x120] sm:$0xff]  ;;  %v1405_v42 = vld [vmem:[#allocation8 + $0x130] sm:$0xff] }
 0x3c4   : > { %2957 = vmatprep.subr.bf16.mxu1 %v2956_v44  ;;  %3117 = vmatprep.subr.bf16.mxu0 %v3116_v45  ;;  %v1814_v44 = vld [vmem:[#allocation8 + $0x320] sm:$0xff]  ;;  %v1816_v45 = vld [vmem:[#allocation8 + $0x330] sm:$0xff]  ;;  %v2974_v53 = vpack.c.bf16 %v1405_v42, %v1403_v41  ;;  %v2988_v41 = vpack.c.bf16 %v1422_v13, %v1420_v12  ;;  %v3148_v42 = vpack.c.bf16 %v1833_v34, %v1831_v33  ;;  %v2213_v12 = vld [vmem:[#allocation8 + $0x428] sm:$0xff] }
 0x3c5   : > { %v3134_v54 = vpack.c.bf16 %v1816_v45, %v1814_v44  ;;  %v1424_v44 = vld [vmem:[#allocation8 + $0x1c8] sm:$0xff]  ;;  %v1426_v45 = vld [vmem:[#allocation8 + $0x1d8] sm:$0xff] }
 0x3c6   : > { %v2215_v13 = vld [vmem:[#allocation8 + $0x438] sm:$0xff] }
 0x3c7   : > { %2959 = vmatpush1.bf16.msra.mxu1 %v2958_v57  ;;  %3119 = vmatpush1.bf16.msra.mxu0 %v3118_v58  ;;  %v1407_v57 = vld [vmem:[#allocation8 + $0x140] sm:$0xff]  ;;  %v1409_v58 = vld [vmem:[#allocation8 + $0x150] sm:$0xff] }
 0x3c8   : > { %2961 = vmatprep.subr.bf16.mxu1 %v2960_v63  ;;  %3121 = vmatprep.subr.bf16.mxu0 %v3120_v0  ;;  %v1818_v63 = vld [vmem:[#allocation8 + $0x340] sm:$0xff]  ;;  %v1820_v0 = vld [vmem:[#allocation8 + $0x350] sm:$0xff]  ;;  %v2978_v9 = vpack.c.bf16 %v1409_v58, %v1407_v57  ;;  %v2992_v57 = vpack.c.bf16 %v1426_v45, %v1424_v44  ;;  %v3152_v58 = vpack.c.bf16 %v1837_v47, %v1835_v46  ;;  %v4468_v44 = vld [vmem:[#allocation2] sm:$0xff] }
 0x3c9   : > { %v3138_v25 = vpack.c.bf16 %v1820_v0, %v1818_v63  ;;  %v1428_v63 = vld [vmem:[#allocation8 + $0x1e8] sm:$0xff]  ;;  %v1430_v0 = vld [vmem:[#allocation8 + $0x1f8] sm:$0xff] }
 0x3ca   : > { %v2217_v45 = vld [vmem:[#allocation8 + $0x448] sm:$0xff]  ;;  %v2219_v46 = vld [vmem:[#allocation8 + $0x458] sm:$0xff] }
 0x3cb   : > { %2963 = vmatpush1.bf16.msra.mxu1 %v2962_v10  ;;  %3123 = vmatpush1.bf16.msra.mxu0 %v3122_v11  ;;  %v1411_v10 = vld [vmem:[#allocation8 + $0x160] sm:$0xff]  ;;  %v1413_v11 = vld [vmem:[#allocation8 + $0x170] sm:$0xff] }
 0x3cc   : > { %2965 = vmatprep.subr.bf16.mxu1 %v2964_v20  ;;  %3125 = vmatprep.subr.bf16.mxu0 %v3124_v8  ;;  %v1822_v20 = vld [vmem:[#allocation8 + $0x360] sm:$0xff]  ;;  %v1824_v8 = vld [vmem:[#allocation8 + $0x370] sm:$0xff]  ;;  %v2982_v35 = vpack.c.bf16 %v1413_v11, %v1411_v10  ;;  %v2996_v10 = vpack.c.bf16 %v1430_v0, %v1428_v63  ;;  %v3156_v11 = vpack.c.bf16 %v1841_v3, %v1839_v1  ;;  %v2221_v63 = vld [vmem:[#allocation8 + $0x468] sm:$0xff] }
 0x3cd   : > { %v3142_v19 = vpack.c.bf16 %v1824_v8, %v1822_v20  ;;  %v2662_v20 = vld [vmem:[%s4772_s6 + $0x408] sm:$0xff]  ;;  %v2664_v8 = vld [vmem:[%s4772_s6 + $0x418] sm:$0xff]  ;;  %v2223_v0 = vld [vmem:[#allocation8 + $0x478] sm:$0xff] }
 0x3cf   : > { %2967 = vmatpush1.bf16.msra.mxu1 %v2966_v26  ;;  %3127 = vmatpush1.bf16.msra.mxu0 %v3126_v31  ;;  %v1415_v26 = vld [vmem:[#allocation8 + $0x180] sm:$0xff]  ;;  %v1417_v31 = vld [vmem:[#allocation8 + $0x190] sm:$0xff] }
 0x3d0   : > { %2969 = vmatprep.subr.bf16.mxu1 %v2968_v37  ;;  %3129 = vmatprep.subr.bf16.mxu0 %v3128_v21  ;;  %v1826_v37 = vld [vmem:[#allocation8 + $0x380] sm:$0xff]  ;;  %v1828_v21 = vld [vmem:[#allocation8 + $0x390] sm:$0xff]  ;;  %v2986_v38 = vpack.c.bf16 %v1417_v31, %v1415_v26  ;;  %v2661_v26 = vld [vmem:[%s4772_s6 + $0x400] sm:$0xff] }
 0x3d1   : > { %v3146_v39 = vpack.c.bf16 %v1828_v21, %v1826_v37  ;;  %v2663_v31 = vld [vmem:[%s4772_s6 + $0x410] sm:$0xff]  ;;  %v2666_v37 = vld [vmem:[%s4772_s6 + $0x428] sm:$0xff]  ;;  %v2668_v21 = vld [vmem:[%s4772_s6 + $0x438] sm:$0xff] }
 0x3d2   : > { %v3162_v33 = vpack.c.bf16 %v2663_v31, %v2661_v26  ;;  %v2226_v26 = vld [vmem:[#allocation8 + $0x490] sm:$0xff] }
 0x3d3   : > { %2971 = vmatpush1.bf16.msra.mxu1 %v2970_v40  ;;  %3131 = vmatpush1.bf16.msra.mxu0 %v3130_v32  ;;  %v1419_v40 = vld [vmem:[#allocation8 + $0x1a0] sm:$0xff]  ;;  %v1421_v32 = vld [vmem:[#allocation8 + $0x1b0] sm:$0xff] }
 0x3d4   : > { %2973 = vmatprep.subr.bf16.mxu1 %v2972_v28  ;;  %3133 = vmatprep.subr.bf16.mxu0 %v3132_v43  ;;  %v1830_v28 = vld [vmem:[#allocation8 + $0x3a0] sm:$0xff]  ;;  %v1832_v43 = vld [vmem:[#allocation8 + $0x3b0] sm:$0xff]  ;;  %v2990_v48 = vpack.c.bf16 %v1421_v32, %v1419_v40  ;;  %v2667_v40 = vld [vmem:[%s4772_s6 + $0x430] sm:$0xff] }
 0x3d5   : > { %v3150_v51 = vpack.c.bf16 %v1832_v43, %v1830_v28  ;;  %v2212_v32 = vld [vmem:[#allocation8 + $0x420] sm:$0xff]  ;;  %v2670_v28 = vld [vmem:[%s4772_s6 + $0x448] sm:$0xff] }
 0x3d6   : > { %v2672_v43 = vld [vmem:[%s4772_s6 + $0x458] sm:$0xff]  ;;  %v2682_v31 = vld [vmem:[%s4772_s6 + $0x4a8] sm:$0xff] }
 0x3d7   : > { %2975 = vmatpush1.bf16.msra.mxu1 %v2974_v53  ;;  %3135 = vmatpush1.bf16.msra.mxu0 %v3134_v54  ;;  %v1423_v53 = vld [vmem:[#allocation8 + $0x1c0] sm:$0xff]  ;;  %v1425_v54 = vld [vmem:[#allocation8 + $0x1d0] sm:$0xff] }
 0x3d8   : > { %2977 = vmatprep.subr.bf16.mxu1 %v2976_v60  ;;  %3137 = vmatprep.subr.bf16.mxu0 %v3136_v61  ;;  %v1834_v60 = vld [vmem:[#allocation8 + $0x3c0] sm:$0xff]  ;;  %v1836_v61 = vld [vmem:[#allocation8 + $0x3d0] sm:$0xff]  ;;  %v2994_v4 = vpack.c.bf16 %v1425_v54, %v1423_v53  ;;  %v2669_v53 = vld [vmem:[%s4772_s6 + $0x440] sm:$0xff] }
 0x3d9   : > { %v3154_v6 = vpack.c.bf16 %v1836_v61, %v1834_v60  ;;  %v2671_v54 = vld [vmem:[%s4772_s6 + $0x450] sm:$0xff]  ;;  %v2218_v60 = vld [vmem:[#allocation8 + $0x450] sm:$0xff]  ;;  %v2676_v61 = vld [vmem:[%s4772_s6 + $0x478] sm:$0xff] }
 0x3da   : > { %v3170_v1 = vpack.c.bf16 %v2671_v54, %v2669_v53  ;;  %v2234_v54 = vld [vmem:[#allocation8 + $0x4d0] sm:$0xff] }
 0x3db   : > { %2979 = vmatpush1.bf16.msra.mxu1 %v2978_v9  ;;  %3139 = vmatpush1.bf16.msra.mxu0 %v3138_v25  ;;  %v1427_v9 = vld [vmem:[#allocation8 + $0x1e0] sm:$0xff]  ;;  %v1429_v25 = vld [vmem:[#allocation8 + $0x1f0] sm:$0xff] }
 0x3dc   : > { %2981 = vmatprep.subr.bf16.mxu1 %v2980_v17  ;;  %3141 = vmatprep.subr.bf16.mxu0 %v3140_v18  ;;  %v1838_v17 = vld [vmem:[#allocation8 + $0x3e0] sm:$0xff]  ;;  %v1840_v18 = vld [vmem:[#allocation8 + $0x3f0] sm:$0xff]  ;;  %v2998_v27 = vpack.c.bf16 %v1429_v25, %v1427_v9  ;;  %v2675_v9 = vld [vmem:[%s4772_s6 + $0x470] sm:$0xff] }
 0x3dd   : > { %v3158_v59 = vpack.c.bf16 %v1840_v18, %v1838_v17  ;;  %v2220_v25 = vld [vmem:[#allocation8 + $0x460] sm:$0xff]  ;;  %v2225_v18 = vld [vmem:[#allocation8 + $0x488] sm:$0xff] }
 0x3de   : > { %v2680_v17 = vld [vmem:[%s4772_s6 + $0x498] sm:$0xff] }
 0x3df   : > { %2983 = vmatpush1.bf16.msra.mxu1 %v2982_v35  ;;  %3143 = vmatpush1.bf16.msra.mxu0 %v3142_v19  ;;  %v3160_v35 = vpack.c.bf16 %v2664_v8, %v2662_v20  ;;  %v3256_v19 = vpack.c.bf16 %v2211_v29, %v2209_v22  ;;  %v2227_v20 = vld [vmem:[#allocation8 + $0x498] sm:$0xff] }
 0x3e0   : > { %2985 = vmatprep.subr.bf16.mxu1 %v2984_v5  ;;  %3145 = vmatprep.subr.bf16.mxu0 %v3144_v36  ;;  %v2208_v5 = vld [vmem:[#allocation8 + $0x400] sm:$0xff]  ;;  %v2210_v36 = vld [vmem:[#allocation8 + $0x410] sm:$0xff] }
 0x3e1   : > { %v3258_v34 = vpack.c.bf16 %v2210_v36, %v2208_v5  ;;  %v2684_v5 = vld [vmem:[%s4772_s6 + $0x4b8] sm:$0xff]  ;;  %v2229_v36 = vld [vmem:[#allocation8 + $0x4a8] sm:$0xff] }
 0x3e3   : > { %2987 = vmatpush1.bf16.msra.mxu1 %v2986_v38  ;;  %3147 = vmatpush1.bf16.msra.mxu0 %v3146_v39  ;;  %v3164_v38 = vpack.c.bf16 %v2668_v21, %v2666_v37  ;;  %v2665_v39 = vld [vmem:[%s4772_s6 + $0x420] sm:$0xff]  ;;  %v2231_v37 = vld [vmem:[#allocation8 + $0x4b8] sm:$0xff] }
 0x3e4   : > { %2989 = vmatprep.subr.bf16.mxu1 %v2988_v41  ;;  %3149 = vmatprep.subr.bf16.mxu0 %v3148_v42  ;;  %v3260_v41 = vpack.c.bf16 %v2215_v13, %v2213_v12  ;;  %v2214_v42 = vld [vmem:[#allocation8 + $0x430] sm:$0xff]  ;;  %v3166_v47 = vpack.c.bf16 %v2667_v40, %v2665_v39  ;;  %v3180_v13 = vpack.c.bf16 %v2684_v5, %v2682_v31  ;;  %v2247_v31 = vld [vmem:[#allocation8 + $0x538] sm:$0xff] }
 0x3e5   : > { %v3276_v39 = vpack.c.bf16 %v2231_v37, %v2229_v36  ;;  %v2230_v40 = vld [vmem:[#allocation8 + $0x4b0] sm:$0xff] }
 0x3e7   : > { %2991 = vmatpush1.bf16.msra.mxu1 %v2990_v48  ;;  %3151 = vmatpush1.bf16.msra.mxu0 %v3150_v51  ;;  %v3262_v48 = vpack.c.bf16 %v2214_v42, %v2212_v32  ;;  %v3168_v51 = vpack.c.bf16 %v2672_v43, %v2670_v28  ;;  %v2686_v32 = vld [vmem:[%s4772_s6 + $0x4c8] sm:$0xff]  ;;  %v2233_v42 = vld [vmem:[#allocation8 + $0x4c8] sm:$0xff]  ;;  %v2235_v28 = vld [vmem:[#allocation8 + $0x4d8] sm:$0xff] }
 0x3e8   : > { %2993 = vmatprep.subr.bf16.mxu1 %v2992_v57  ;;  %3153 = vmatprep.subr.bf16.mxu0 %v3152_v58  ;;  %v2216_v57 = vld [vmem:[#allocation8 + $0x440] sm:$0xff]  ;;  %v3264_v58 = vpack.c.bf16 %v2219_v46, %v2217_v45  ;;  %v3280_v53 = vpack.c.bf16 %v2235_v28, %v2233_v42 }
 0x3e9   : > { %v3266_v3 = vpack.c.bf16 %v2218_v60, %v2216_v57  ;;  %v2690_v57 = vld [vmem:[%s4772_s6 + $0x4e8] sm:$0xff]  ;;  %v2237_v60 = vld [vmem:[#allocation8 + $0x4e8] sm:$0xff] }
 0x3eb   : > { %2995 = vmatpush1.bf16.msra.mxu1 %v2994_v4  ;;  %3155 = vmatpush1.bf16.msra.mxu0 %v3154_v6  ;;  %v2673_v6 = vld [vmem:[%s4772_s6 + $0x460] sm:$0xff] }
 0x3ec   : > { %2997 = vmatprep.subr.bf16.mxu1 %v2996_v10  ;;  %3157 = vmatprep.subr.bf16.mxu0 %v3156_v11  ;;  %v3268_v10 = vpack.c.bf16 %v2223_v0, %v2221_v63  ;;  %v2678_v11 = vld [vmem:[%s4772_s6 + $0x488] sm:$0xff]  ;;  %v3174_v8 = vpack.c.bf16 %v2675_v9, %v2673_v6 }
 0x3ed   : > { %v3176_v29 = vpack.c.bf16 %v2680_v17, %v2678_v11  ;;  %v2238_v9 = vld [vmem:[#allocation8 + $0x4f0] sm:$0xff]  ;;  %v2243_v11 = vld [vmem:[#allocation8 + $0x518] sm:$0xff] }
 0x3ef   : > { %2999 = vmatpush1.bf16.msra.mxu1 %v2998_v27  ;;  %3159 = vmatpush1.bf16.msra.mxu0 %v3158_v59  ;;  %v2677_v27 = vld [vmem:[%s4772_s6 + $0x480] sm:$0xff]  ;;  %v2679_v59 = vld [vmem:[%s4772_s6 + $0x490] sm:$0xff] }
 0x3f0   : > { %3161 = vmatprep.subr.bf16.mxu1 %v3160_v35  ;;  %3257 = vmatprep.subr.bf16.mxu0 %v3256_v19  ;;  %v2224_v35 = vld [vmem:[#allocation8 + $0x480] sm:$0xff]  ;;  %v3272_v19 = vpack.c.bf16 %v2227_v20, %v2225_v18  ;;  %v3178_v21 = vpack.c.bf16 %v2679_v59, %v2677_v27  ;;  %v2242_v59 = vld [vmem:[#allocation8 + $0x510] sm:$0xff] }
 0x3f1   : > { %v3274_v12 = vpack.c.bf16 %v2226_v26, %v2224_v35  ;;  %v2698_v35 = vld [vmem:[%s4772_s6 + $0x528] sm:$0xff]  ;;  %v2245_v26 = vld [vmem:[#allocation8 + $0x528] sm:$0xff] }
 0x3f2   : > { %1496 = vmatmul.mubr.f32.vlgmr.msra.gmra.mrb[0].mxu1 %v4468_v44  ;;  %1907 = vmatmul.mubr.f32.vlgmr.msra.gmra.mrb[2].mxu0 %v4468_v44 }
 0x3f3   : > { %3163 = vmatpush1.bf16.msra.mxu1 %v3162_v33  ;;  %2109 = vmatprep.mubr.f32.mxu1 %v4421_v56  ;;  %v2674_v56 = vld [vmem:[%s4772_s6 + $0x468] sm:$0xff]  ;;  %v2681_v33 = vld [vmem:[%s4772_s6 + $0x4a0] sm:$0xff] }
 0x3f4   : > { %3259 = vmatpush1.bf16.msra.mxu0 %v3258_v34  ;;  %3165 = vmatprep.subr.bf16.mxu1 %v3164_v38  ;;  %v3172_v4 = vpack.c.bf16 %v2676_v61, %v2674_v56  ;;  %v2683_v34 = vld [vmem:[%s4772_s6 + $0x4b0] sm:$0xff]  ;;  %v2228_v38 = vld [vmem:[#allocation8 + $0x4a0] sm:$0xff] }
 0x3f5   : > { %3261 = vmatprep.subr.bf16.mxu0 %v3260_v41  ;;  %2354 = vmatprep.mubr.f32.mxu0 %v4434_v16  ;;  %v2222_v16 = vld [vmem:[#allocation8 + $0x470] sm:$0xff]  ;;  %v2688_v41 = vld [vmem:[%s4772_s6 + $0x4d8] sm:$0xff]  ;;  %v3182_v43 = vpack.c.bf16 %v2683_v34, %v2681_v33  ;;  %v3278_v45 = vpack.c.bf16 %v2230_v40, %v2228_v38  ;;  %v2239_v56 = vld [vmem:[#allocation8 + $0x4f8] sm:$0xff]  ;;  %v3292_v33 = vpack.c.bf16 %v2247_v31, %v2245_v26 }
 0x3f6   : > { %v3270_v22 = vpack.c.bf16 %v2222_v16, %v2220_v25  ;;  %v3184_v46 = vpack.c.bf16 %v2688_v41, %v2686_v32  ;;  %v3284_v6 = vpack.c.bf16 %v2239_v56, %v2237_v60  ;;  %v2694_v25 = vld [vmem:[%s4772_s6 + $0x508] sm:$0xff]  ;;  %v2241_v16 = vld [vmem:[#allocation8 + $0x508] sm:$0xff]  ;;  %v2251_v32 = vld [vmem:[#allocation8 + $0x558] sm:$0xff] }
 0x3f7   : > { %3167 = vmatpush1.bf16.msra.mxu1 %v3166_v47  ;;  %v2685_v47 = vld [vmem:[%s4772_s6 + $0x4c0] sm:$0xff]  ;;  %v3288_v27 = vpack.c.bf16 %v2243_v11, %v2241_v16  ;;  %v2246_v34 = vld [vmem:[#allocation8 + $0x530] sm:$0xff] }
 0x3f8   : > { %3263 = vmatpush1.bf16.msra.mxu0 %v3262_v48  ;;  %3169 = vmatprep.subr.bf16.mxu1 %v3168_v51  ;;  %v2687_v48 = vld [vmem:[%s4772_s6 + $0x4d0] sm:$0xff]  ;;  %v2232_v51 = vld [vmem:[#allocation8 + $0x4c0] sm:$0xff]  ;;  %v2702_v38 = vld [vmem:[%s4772_s6 + $0x548] sm:$0xff] }
 0x3f9   : > { %3265 = vmatprep.subr.bf16.mxu0 %v3264_v58  ;;  %v2692_v58 = vld [vmem:[%s4772_s6 + $0x4f8] sm:$0xff]  ;;  %v3186_v61 = vpack.c.bf16 %v2687_v48, %v2685_v47  ;;  %v3282_v63 = vpack.c.bf16 %v2234_v54, %v2232_v51  ;;  %v2249_v40 = vld [vmem:[#allocation8 + $0x548] sm:$0xff]  ;;  %v2250_v48 = vld [vmem:[#allocation8 + $0x550] sm:$0xff] }
 0x3fa   : > { %v3188_v0 = vpack.c.bf16 %v2692_v58, %v2690_v57  ;;  %v3296_v47 = vpack.c.bf16 %v2251_v32, %v2249_v40  ;;  %v2706_v51 = vld [vmem:[%s4772_s6 + $0x568] sm:$0xff]  ;;  %v2253_v54 = vld [vmem:[#allocation8 + $0x568] sm:$0xff]  ;;  %v2255_v57 = vld [vmem:[#allocation8 + $0x578] sm:$0xff] }
 0x3fb   : > { %3171 = vmatpush1.bf16.msra.mxu1 %v3170_v1  ;;  %v2689_v1 = vld [vmem:[%s4772_s6 + $0x4e0] sm:$0xff] }
 0x3fc   : > { %3267 = vmatpush1.bf16.msra.mxu0 %v3266_v3  ;;  %3173 = vmatprep.subr.bf16.mxu1 %v3172_v4  ;;  %v2691_v3 = vld [vmem:[%s4772_s6 + $0x4f0] sm:$0xff]  ;;  %v2236_v4 = vld [vmem:[#allocation8 + $0x4e0] sm:$0xff] }
 0x3fd   : > { %3269 = vmatprep.subr.bf16.mxu0 %v3268_v10  ;;  %v2696_v10 = vld [vmem:[%s4772_s6 + $0x518] sm:$0xff]  ;;  %v3190_v17 = vpack.c.bf16 %v2691_v3, %v2689_v1  ;;  %v3286_v18 = vpack.c.bf16 %v2238_v9, %v2236_v4  ;;  %v3300_v1 = vpack.c.bf16 %v2255_v57, %v2253_v54  ;;  %v2254_v3 = vld [vmem:[#allocation8 + $0x570] sm:$0xff]  ;;  %v2257_v9 = vld [vmem:[#allocation8 + $0x588] sm:$0xff] }
 0x3fe   : > { %v3192_v20 = vpack.c.bf16 %v2696_v10, %v2694_v25  ;;  %v2710_v4 = vld [vmem:[%s4772_s6 + $0x588] sm:$0xff]  ;;  %v2259_v25 = vld [vmem:[#allocation8 + $0x598] sm:$0xff] }
 0x3ff   : > { %3175 = vmatpush1.bf16.msra.mxu1 %v3174_v8  ;;  %v2693_v8 = vld [vmem:[%s4772_s6 + $0x500] sm:$0xff] }
 0x400   : > { %3271 = vmatpush1.bf16.msra.mxu0 %v3270_v22  ;;  %3177 = vmatprep.subr.bf16.mxu1 %v3176_v29  ;;  %v2695_v22 = vld [vmem:[%s4772_s6 + $0x510] sm:$0xff]  ;;  %v2240_v29 = vld [vmem:[#allocation8 + $0x500] sm:$0xff] }
 0x401   : > { %3273 = vmatprep.subr.bf16.mxu0 %v3272_v19  ;;  %v2700_v19 = vld [vmem:[%s4772_s6 + $0x538] sm:$0xff]  ;;  %v3194_v5 = vpack.c.bf16 %v2695_v22, %v2693_v8  ;;  %v3290_v36 = vpack.c.bf16 %v2242_v59, %v2240_v29  ;;  %v3304_v8 = vpack.c.bf16 %v2259_v25, %v2257_v9  ;;  %v2258_v22 = vld [vmem:[#allocation8 + $0x590] sm:$0xff]  ;;  %v2261_v59 = vld [vmem:[#allocation8 + $0x5a8] sm:$0xff] }
 0x402   : > { %v3196_v37 = vpack.c.bf16 %v2700_v19, %v2698_v35  ;;  %v2714_v29 = vld [vmem:[%s4772_s6 + $0x5a8] sm:$0xff]  ;;  %v2263_v35 = vld [vmem:[#allocation8 + $0x5b8] sm:$0xff]  ;;  %v1948_v9 = vld [vmem:[#allocation6 + $0x200] sm:$0xff] }
 0x403   : > { %3179 = vmatpush1.bf16.msra.mxu1 %v3178_v21  ;;  %v2697_v21 = vld [vmem:[%s4772_s6 + $0x520] sm:$0xff]  ;;  %v1950_v25 = vld [vmem:[#allocation6 + $0x210] sm:$0xff] }
 0x404   : > { %3275 = vmatpush1.bf16.msra.mxu0 %v3274_v12  ;;  %3181 = vmatprep.subr.bf16.mxu1 %v3180_v13  ;;  %v2699_v12 = vld [vmem:[%s4772_s6 + $0x530] sm:$0xff]  ;;  %v2244_v13 = vld [vmem:[#allocation8 + $0x520] sm:$0xff] }
 0x405   : > { %3277 = vmatprep.subr.bf16.mxu0 %v3276_v39  ;;  %v2704_v39 = vld [vmem:[%s4772_s6 + $0x558] sm:$0xff]  ;;  %v3198_v41 = vpack.c.bf16 %v2699_v12, %v2697_v21  ;;  %v3294_v42 = vpack.c.bf16 %v2246_v34, %v2244_v13  ;;  %v3308_v21 = vpack.c.bf16 %v2263_v35, %v2261_v59  ;;  %v2262_v12 = vld [vmem:[#allocation8 + $0x5b0] sm:$0xff]  ;;  %v2265_v34 = vld [vmem:[#allocation8 + $0x5c8] sm:$0xff] }
 0x406   : > { %v3200_v28 = vpack.c.bf16 %v2704_v39, %v2702_v38  ;;  %v2718_v13 = vld [vmem:[%s4772_s6 + $0x5c8] sm:$0xff]  ;;  %v2267_v38 = vld [vmem:[#allocation8 + $0x5d8] sm:$0xff]  ;;  %v1956_v59 = vld [vmem:[#allocation6 + $0x240] sm:$0xff] }
 0x407   : > { %3183 = vmatpush1.bf16.msra.mxu1 %v3182_v43  ;;  %v2701_v43 = vld [vmem:[%s4772_s6 + $0x540] sm:$0xff]  ;;  %v1958_v35 = vld [vmem:[#allocation6 + $0x250] sm:$0xff] }
 0x408   : > { %3279 = vmatpush1.bf16.msra.mxu0 %v3278_v45  ;;  %3185 = vmatprep.subr.bf16.mxu1 %v3184_v46  ;;  %v2703_v45 = vld [vmem:[%s4772_s6 + $0x550] sm:$0xff]  ;;  %v2248_v46 = vld [vmem:[#allocation8 + $0x540] sm:$0xff] }
 0x409   : > { %3281 = vmatprep.subr.bf16.mxu0 %v3280_v53  ;;  %v2708_v53 = vld [vmem:[%s4772_s6 + $0x578] sm:$0xff]  ;;  %v3202_v58 = vpack.c.bf16 %v2703_v45, %v2701_v43  ;;  %v3298_v60 = vpack.c.bf16 %v2250_v48, %v2248_v46  ;;  %v3312_v43 = vpack.c.bf16 %v2267_v38, %v2265_v34  ;;  %v2266_v45 = vld [vmem:[#allocation8 + $0x5d0] sm:$0xff]  ;;  %v2269_v48 = vld [vmem:[#allocation8 + $0x5e8] sm:$0xff] }
 0x40a   : > { %v3204_v56 = vpack.c.bf16 %v2708_v53, %v2706_v51  ;;  %v2722_v46 = vld [vmem:[%s4772_s6 + $0x5e8] sm:$0xff]  ;;  %v2271_v51 = vld [vmem:[#allocation8 + $0x5f8] sm:$0xff]  ;;  %v1969_v38 = vld [vmem:[#allocation6 + $0x2a8] sm:$0xff] }
 0x40b   : > { %3187 = vmatpush1.bf16.msra.mxu1 %v3186_v61  ;;  %v2705_v61 = vld [vmem:[%s4772_s6 + $0x560] sm:$0xff]  ;;  %v1966_v34 = vld [vmem:[#allocation6 + $0x290] sm:$0xff] }
 0x40c   : > { %3283 = vmatpush1.bf16.msra.mxu0 %v3282_v63  ;;  %3189 = vmatprep.subr.bf16.mxu1 %v3188_v0  ;;  %v2707_v63 = vld [vmem:[%s4772_s6 + $0x570] sm:$0xff]  ;;  %v2252_v0 = vld [vmem:[#allocation8 + $0x560] sm:$0xff] }
 0x40d   : > { %3285 = vmatprep.subr.bf16.mxu0 %v3284_v6  ;;  %v2712_v6 = vld [vmem:[%s4772_s6 + $0x598] sm:$0xff]  ;;  %v3206_v10 = vpack.c.bf16 %v2707_v63, %v2705_v61  ;;  %v3302_v16 = vpack.c.bf16 %v2254_v3, %v2252_v0  ;;  %v3316_v61 = vpack.c.bf16 %v2271_v51, %v2269_v48  ;;  %v2270_v63 = vld [vmem:[#allocation8 + $0x5f0] sm:$0xff]  ;;  %v1949_v0 = vld [vmem:[#allocation6 + $0x208] sm:$0xff] }
 0x40e   : > { %v3208_v11 = vpack.c.bf16 %v2712_v6, %v2710_v4  ;;  %v1974_v48 = vld [vmem:[#allocation6 + $0x2d0] sm:$0xff]  ;;  %v1977_v51 = vld [vmem:[#allocation6 + $0x2e8] sm:$0xff] }
 0x40f   : > { %3191 = vmatpush1.bf16.msra.mxu1 %v3190_v17  ;;  %v2709_v17 = vld [vmem:[%s4772_s6 + $0x580] sm:$0xff] }
 0x410   : > { %3287 = vmatpush1.bf16.msra.mxu0 %v3286_v18  ;;  %3193 = vmatprep.subr.bf16.mxu1 %v3192_v20  ;;  %v2711_v18 = vld [vmem:[%s4772_s6 + $0x590] sm:$0xff]  ;;  %v2256_v20 = vld [vmem:[#allocation8 + $0x580] sm:$0xff] }
 0x411   : > { %3289 = vmatprep.subr.bf16.mxu0 %v3288_v27  ;;  %v2716_v27 = vld [vmem:[%s4772_s6 + $0x5b8] sm:$0xff]  ;;  %v3210_v19 = vpack.c.bf16 %v2711_v18, %v2709_v17  ;;  %v3306_v26 = vpack.c.bf16 %v2258_v22, %v2256_v20  ;;  %v1954_v20 = vld [vmem:[#allocation6 + $0x230] sm:$0xff]  ;;  %v1959_v22 = vld [vmem:[#allocation6 + $0x258] sm:$0xff] }
 0x412   : > { %v3212_v31 = vpack.c.bf16 %v2716_v27, %v2714_v29  ;;  %v1952_v18 = vld [vmem:[#allocation6 + $0x220] sm:$0xff] }
 0x413   : > { %3195 = vmatpush1.bf16.msra.mxu1 %v3194_v5  ;;  %v2713_v5 = vld [vmem:[%s4772_s6 + $0x5a0] sm:$0xff]  ;;  %v3230_v29 = vpack.c.bf16 %v1954_v20, %v1952_v18 }
 0x414   : > { %3291 = vmatpush1.bf16.msra.mxu0 %v3290_v36  ;;  %3197 = vmatprep.subr.bf16.mxu1 %v3196_v37  ;;  %v2715_v36 = vld [vmem:[%s4772_s6 + $0x5b0] sm:$0xff]  ;;  %v2260_v37 = vld [vmem:[#allocation8 + $0x5a0] sm:$0xff]  ;;  %v2381_v20 = vld [vmem:[%s4775_s9 + $0x20] sm:$0xff] }
 0x415   : > { %3293 = vmatprep.subr.bf16.mxu0 %v3292_v33  ;;  %v2720_v33 = vld [vmem:[%s4772_s6 + $0x5d8] sm:$0xff]  ;;  %v3214_v39 = vpack.c.bf16 %v2715_v36, %v2713_v5  ;;  %v3310_v40 = vpack.c.bf16 %v2262_v12, %v2260_v37  ;;  %v1962_v37 = vld [vmem:[#allocation6 + $0x270] sm:$0xff] }
 0x416   : > { %v3216_v32 = vpack.c.bf16 %v2720_v33, %v2718_v13  ;;  %v1960_v36 = vld [vmem:[#allocation6 + $0x260] sm:$0xff] }
 0x417   : > { %3199 = vmatpush1.bf16.msra.mxu1 %v3198_v41  ;;  %v2717_v41 = vld [vmem:[%s4772_s6 + $0x5c0] sm:$0xff]  ;;  %v3238_v12 = vpack.c.bf16 %v1962_v37, %v1960_v36  ;;  %v1964_v33 = vld [vmem:[#allocation6 + $0x280] sm:$0xff] }
 0x418   : > { %3295 = vmatpush1.bf16.msra.mxu0 %v3294_v42  ;;  %3201 = vmatprep.subr.bf16.mxu1 %v3200_v28  ;;  %v2719_v42 = vld [vmem:[%s4772_s6 + $0x5d0] sm:$0xff]  ;;  %v2264_v28 = vld [vmem:[#allocation8 + $0x5c0] sm:$0xff]  ;;  %v2385_v36 = vld [vmem:[%s4775_s9 + $0x40] sm:$0xff] }
 0x419   : > { %3297 = vmatprep.subr.bf16.mxu0 %v3296_v47  ;;  %v2724_v47 = vld [vmem:[%s4772_s6 + $0x5f8] sm:$0xff]  ;;  %v3218_v53 = vpack.c.bf16 %v2719_v42, %v2717_v41  ;;  %v3314_v54 = vpack.c.bf16 %v2266_v45, %v2264_v28  ;;  %v1970_v42 = vld [vmem:[#allocation6 + $0x2b0] sm:$0xff]  ;;  %v1973_v28 = vld [vmem:[#allocation6 + $0x2c8] sm:$0xff] }
 0x41a   : > { %v3220_v57 = vpack.c.bf16 %v2724_v47, %v2722_v46  ;;  %v1968_v41 = vld [vmem:[#allocation6 + $0x2a0] sm:$0xff] }
 0x41b   : > { %3203 = vmatpush1.bf16.msra.mxu1 %v3202_v58  ;;  %v2721_v58 = vld [vmem:[%s4772_s6 + $0x5e0] sm:$0xff]  ;;  %v3246_v45 = vpack.c.bf16 %v1970_v42, %v1968_v41  ;;  %v1972_v47 = vld [vmem:[#allocation6 + $0x2c0] sm:$0xff] }
 0x41c   : > { %3299 = vmatpush1.bf16.msra.mxu0 %v3298_v60  ;;  %3205 = vmatprep.subr.bf16.mxu1 %v3204_v56  ;;  %v2723_v60 = vld [vmem:[%s4772_s6 + $0x5f0] sm:$0xff]  ;;  %v2268_v56 = vld [vmem:[#allocation8 + $0x5e0] sm:$0xff]  ;;  %v2389_v42 = vld [vmem:[%s4775_s9 + $0x60] sm:$0xff] }
 0x41d   : > { %3301 = vmatprep.subr.bf16.mxu0 %v3300_v1  ;;  %v1951_v1 = vld [vmem:[#allocation6 + $0x218] sm:$0xff]  ;;  %v3222_v3 = vpack.c.bf16 %v2723_v60, %v2721_v58  ;;  %v3318_v4 = vpack.c.bf16 %v2270_v63, %v2268_v56  ;;  %v1976_v58 = vld [vmem:[#allocation6 + $0x2e0] sm:$0xff]  ;;  %v1978_v60 = vld [vmem:[#allocation6 + $0x2f0] sm:$0xff] }
 0x41e   : > { %v3224_v6 = vpack.c.bf16 %v1951_v1, %v1949_v0  ;;  %v3254_v56 = vpack.c.bf16 %v1978_v60, %v1976_v58  ;;  %v2394_v63 = vld [vmem:[%s4775_s9 + $0x88] sm:$0xff]  ;;  %v2377_v0 = vld [vmem:[%s4775_s9] sm:$0xff] }
 0x41f   : > { %3207 = vmatpush1.bf16.msra.mxu1 %v3206_v10  ;;  %v1953_v10 = vld [vmem:[#allocation6 + $0x228] sm:$0xff] }
 0x420   : > { %3303 = vmatpush1.bf16.msra.mxu0 %v3302_v16  ;;  %3209 = vmatprep.subr.bf16.mxu1 %v3208_v11  ;;  %v1955_v16 = vld [vmem:[#allocation6 + $0x238] sm:$0xff]  ;;  %v3226_v11 = vpack.c.bf16 %v1950_v25, %v1948_v9 }
 0x421   : > { %3305 = vmatprep.subr.bf16.mxu0 %v3304_v8  ;;  %v3228_v17 = vpack.c.bf16 %v1955_v16, %v1953_v10  ;;  %v1957_v8 = vld [vmem:[#allocation6 + $0x248] sm:$0xff]  ;;  %v2379_v25 = vld [vmem:[%s4775_s9 + $0x10] sm:$0xff]  ;;  %v2380_v10 = vld [vmem:[%s4775_s9 + $0x18] sm:$0xff] }
 0x422   : > { %v3232_v27 = vpack.c.bf16 %v1959_v22, %v1957_v8  ;;  %v2397_v16 = vld [vmem:[%s4775_s9 + $0xa0] sm:$0xff]  ;;  %v2382_v8 = vld [vmem:[%s4775_s9 + $0x28] sm:$0xff] }
 0x423   : > { %3211 = vmatpush1.bf16.msra.mxu1 %v3210_v19  ;;  %v1961_v19 = vld [vmem:[#allocation6 + $0x268] sm:$0xff]  ;;  %v3330_v22 = vpack.c.bf16 %v2382_v8, %v2381_v20 }
 0x424   : > { %3307 = vmatpush1.bf16.msra.mxu0 %v3306_v26  ;;  %3213 = vmatprep.subr.bf16.mxu1 %v3212_v31  ;;  %v1963_v26 = vld [vmem:[#allocation6 + $0x278] sm:$0xff]  ;;  %v3234_v31 = vpack.c.bf16 %v1958_v35, %v1956_v59 }
 0x425   : > { %3309 = vmatprep.subr.bf16.mxu0 %v3308_v21  ;;  %v3236_v5 = vpack.c.bf16 %v1963_v26, %v1961_v19  ;;  %v1965_v21 = vld [vmem:[#allocation6 + $0x288] sm:$0xff]  ;;  %v2383_v35 = vld [vmem:[%s4775_s9 + $0x30] sm:$0xff]  ;;  %v2384_v19 = vld [vmem:[%s4775_s9 + $0x38] sm:$0xff] }
 0x426   : > { %v3334_v26 = vpack.c.bf16 %v2384_v19, %v2383_v35 }
 0x427   : > { %3215 = vmatpush1.bf16.msra.mxu1 %v3214_v39  ;;  %v1971_v39 = vld [vmem:[#allocation6 + $0x2b8] sm:$0xff] }
 0x428   : > { %3311 = vmatpush1.bf16.msra.mxu0 %v3310_v40  ;;  %3217 = vmatprep.subr.bf16.mxu1 %v3216_v32  ;;  %v3242_v40 = vpack.c.bf16 %v1966_v34, %v1964_v33  ;;  %v3244_v32 = vpack.c.bf16 %v1971_v39, %v1969_v38  ;;  %v2387_v34 = vld [vmem:[%s4775_s9 + $0x50] sm:$0xff]  ;;  %v2388_v38 = vld [vmem:[%s4775_s9 + $0x58] sm:$0xff]  ;;  %v2405_v39 = vld [vmem:[%s4775_s9 + $0xe0] sm:$0xff] }
 0x429   : > { %3313 = vmatprep.subr.bf16.mxu0 %v3312_v43  ;;  %v1975_v43 = vld [vmem:[#allocation6 + $0x2d8] sm:$0xff] }
 0x42a   : > { %v3248_v46 = vpack.c.bf16 %v1975_v43, %v1973_v28  ;;  %v2390_v28 = vld [vmem:[%s4775_s9 + $0x68] sm:$0xff]  ;;  %v2407_v43 = vld [vmem:[%s4775_s9 + $0xf0] sm:$0xff] }
 0x42b   : > { %3219 = vmatpush1.bf16.msra.mxu1 %v3218_v53  ;;  %v1979_v53 = vld [vmem:[#allocation6 + $0x2f8] sm:$0xff] }
 0x42c   : > { %3315 = vmatpush1.bf16.msra.mxu0 %v3314_v54  ;;  %3221 = vmatprep.subr.bf16.mxu1 %v3220_v57  ;;  %v3250_v54 = vpack.c.bf16 %v1974_v48, %v1972_v47  ;;  %v3252_v57 = vpack.c.bf16 %v1979_v53, %v1977_v51  ;;  %v2391_v48 = vld [vmem:[%s4775_s9 + $0x70] sm:$0xff]  ;;  %v2392_v51 = vld [vmem:[%s4775_s9 + $0x78] sm:$0xff] }
 0x42d   : > { %3317 = vmatprep.subr.bf16.mxu0 %v3316_v61  ;;  %v2393_v61 = vld [vmem:[%s4775_s9 + $0x80] sm:$0xff]  ;;  %v3350_v53 = vpack.c.bf16 %v2392_v51, %v2391_v48 }
 0x42e   : > { %v3320_v1 = vpack.c.bf16 %v2394_v63, %v2393_v61 }
 0x42f   : > { %3223 = vmatpush1.bf16.msra.mxu1 %v3222_v3  ;;  %v2378_v3 = vld [vmem:[%s4775_s9 + $0x8] sm:$0xff] }
 0x430   : > { %3319 = vmatpush1.bf16.msra.mxu0 %v3318_v4  ;;  %3225 = vmatprep.subr.bf16.mxu1 %v3224_v6  ;;  %v2396_v4 = vld [vmem:[%s4775_s9 + $0x98] sm:$0xff]  ;;  %v3322_v6 = vpack.c.bf16 %v2378_v3, %v2377_v0 }
 0x431   : > { %3321 = vmatprep.subr.bf16.mxu0 %v3320_v1 }
 0x432   : > { %2110 = vmatmul.mubr.f32.vlgmr.msra.gmra.mrb[2].mxu1 %v4424_v24  ;;  %v1967_v24 = vld [vmem:[#allocation6 + $0x298] sm:$0xff] }
 0x433   : > { %2355 = vmatmul.mubr.f32.vlgmr.msra.gmra.mrb[4].mxu0 %v4468_v44  ;;  %3227 = vmatpush1.bf16.msra.mxu1 %v3226_v11  ;;  %v3240_v13 = vpack.c.bf16 %v1967_v24, %v1965_v21  ;;  %v2398_v11 = vld [vmem:[%s4775_s9 + $0xa8] sm:$0xff]  ;;  %v2403_v24 = vld [vmem:[%s4775_s9 + $0xd0] sm:$0xff] }
 0x434   : > { %3229 = vmatprep.subr.bf16.mxu1 %v3228_v17  ;;  %2180 = vmatprep.mubr.f32.mxu1 %v3557_v30  ;;  %v3326_v17 = vpack.c.bf16 %v2380_v10, %v2379_v25  ;;  %v3328_v18 = vpack.c.bf16 %v2398_v11, %v2397_v16  ;;  %v2386_v21 = vld [vmem:[%s4775_s9 + $0x48] sm:$0xff] }
 0x435   : > { %3323 = vmatpush3.bf16.msra.mxu0 %v3322_v6 }
 0x437   : > { %3231 = vmatpush1.bf16.msra.mxu1 %v3230_v29  ;;  %v2399_v29 = vld [vmem:[%s4775_s9 + $0xb0] sm:$0xff] }
 0x438   : > { %3233 = vmatprep.subr.bf16.mxu1 %v3232_v27  ;;  %v2400_v27 = vld [vmem:[%s4775_s9 + $0xb8] sm:$0xff] }
 0x439   : > { %v3332_v59 = vpack.c.bf16 %v2400_v27, %v2399_v29 }
 0x43b   : > { %3235 = vmatpush1.bf16.msra.mxu1 %v3234_v31  ;;  %v2401_v31 = vld [vmem:[%s4775_s9 + $0xc0] sm:$0xff] }
 0x43c   : > { %3237 = vmatprep.subr.bf16.mxu1 %v3236_v5  ;;  %v2402_v5 = vld [vmem:[%s4775_s9 + $0xc8] sm:$0xff] }
 0x43d   : > { %v3336_v37 = vpack.c.bf16 %v2402_v5, %v2401_v31 }
 0x43f   : > { %3239 = vmatpush1.bf16.msra.mxu1 %v3238_v12  ;;  %v2404_v12 = vld [vmem:[%s4775_s9 + $0xd8] sm:$0xff] }
 0x440   : > { %3241 = vmatprep.subr.bf16.mxu1 %v3240_v13  ;;  %v3338_v13 = vpack.c.bf16 %v2386_v21, %v2385_v36  ;;  %v3340_v33 = vpack.c.bf16 %v2404_v12, %v2403_v24 }
 0x443   : > { %3243 = vmatpush1.bf16.msra.mxu1 %v3242_v40  ;;  %v2406_v40 = vld [vmem:[%s4775_s9 + $0xe8] sm:$0xff] }
 0x444   : > { %3245 = vmatprep.subr.bf16.mxu1 %v3244_v32  ;;  %v3342_v32 = vpack.c.bf16 %v2388_v38, %v2387_v34  ;;  %v3344_v41 = vpack.c.bf16 %v2406_v40, %v2405_v39 }
 0x447   : > { %3247 = vmatpush1.bf16.msra.mxu1 %v3246_v45  ;;  %v2408_v45 = vld [vmem:[%s4775_s9 + $0xf8] sm:$0xff] }
 0x448   : > { %3249 = vmatprep.subr.bf16.mxu1 %v3248_v46  ;;  %v3346_v46 = vpack.c.bf16 %v2390_v28, %v2389_v42  ;;  %v3348_v47 = vpack.c.bf16 %v2408_v45, %v2407_v43 }
 0x44b   : > { %3251 = vmatpush1.bf16.msra.mxu1 %v3250_v54 }
 0x44c   : > { %3253 = vmatprep.subr.bf16.mxu1 %v3252_v57 }
 0x44f   : > { %3255 = vmatpush1.bf16.msra.mxu1 %v3254_v56  ;;  %v1096_v56 = vld [vmem:[%s4774_s8] sm:$0xff] }
 0x450   : > { %v1508_v61 = vrot.slane %v1096_v56, %v3729_v14  ;;  %v1512_v63 = vrot.slane %v1096_v56, %v3831_v55  ;;  %v2275_v55 = vrot.slane %v1096_v56, %v3825_v50  ;;  %v1922_v20 = vrot.slane %v1096_v56, %v3835_v62 }
 0x452   : > { %2181 = vmatmul.mubr.f32.vlgmr.msra.gmra.mrb[2].mxu1 %v4358_v52  ;;  %v2395_v52 = vld [vmem:[%s4775_s9 + $0x90] sm:$0xff]  ;;  %v1518_v0 = vrot.slane %v1508_v61, %v3729_v14  ;;  %v1522_v1 = vrot.slane %v1512_v63, %v3729_v14  ;;  %v1918_v14 = vrot.slane %v1096_v56, %v3732_v15  ;;  %v2285_v8 = vrot.slane %v2275_v55, %v3825_v50 }
 0x453   : > { %v3324_v9 = vpack.c.bf16 %v2396_v4, %v2395_v52  ;;  %v1932_v27 = vrot.slane %v1922_v20, %v3732_v15 }
 0x454   : > { %v1928_v29 = vrot.slane %v1918_v14, %v3732_v15  ;;  %v2194_v15 = vrot.slane %v1096_v56, %v3839_v2 }
 0x455   : > { %3325 = vmatprep.subr.bf16.mxu0 %v3324_v9 }
 0x456   : > { %3327 = vmatpush3.bf16.msra.mxu0 %v3326_v17 }
 0x457   : > { %3329 = vmatprep.subr.bf16.mxu0 %v3328_v18  ;;  %v2279_v18 = vrot.slane %v1096_v56, %v3843_v7 }
 0x45a   : > { %3331 = vmatpush3.bf16.msra.mxu0 %v3330_v22  ;;  %v2289_v22 = vrot.slane %v2279_v18, %v3825_v50  ;;  %v2190_v50 = vrot.slane %v1096_v56, %v3822_v49 }
 0x45b   : > { %3333 = vmatprep.subr.bf16.mxu0 %v3332_v59 }
 0x45c   : > { %v2200_v39 = vrot.slane %v2190_v50, %v3822_v49 }
 0x45e   : > { %3335 = vmatpush3.bf16.msra.mxu0 %v3334_v26 }
 0x45f   : > { %3337 = vmatprep.subr.bf16.mxu0 %v3336_v37 }
 0x462   : > { %3339 = vmatpush3.bf16.msra.mxu0 %v3338_v13 }
 0x463   : > { %3341 = vmatprep.subr.bf16.mxu0 %v3340_v33 }
 0x466   : > { %3343 = vmatpush3.bf16.msra.mxu0 %v3342_v32  ;;  %v2204_v32 = vrot.slane %v2194_v15, %v3822_v49 }
 0x467   : > { %3345 = vmatprep.subr.bf16.mxu0 %v3344_v41 }
 0x46a   : > { %3347 = vmatpush3.bf16.msra.mxu0 %v3346_v46 }
 0x46b   : > { %3349 = vmatprep.subr.bf16.mxu0 %v3348_v47 }
 0x46e   : > { %3351 = vmatpush3.bf16.msra.mxu0 %v3350_v53 }
 0x4c5   : > { %v1497_v54 = vpop.f32.mrb[0].mxu1  ;;  %v1908_v57 = vpop.f32.mrb[2].mxu0 }
 0x4c6   : > { %v1499_v58 = vpop.f32.mrb[1].mxu1  ;;  %v1910_v60 = vpop.f32.mrb[3].mxu0  ;;  %v1523_v3 = vadd.f32 %v1518_v0, %v1497_v54  ;;  %v1933_v36 = vadd.f32 %v1928_v29, %v1908_v57 }
 0x4c7   : > { %v1524_v52 = vadd.f32 %v1522_v1, %v1499_v58  ;;  %v1934_v37 = vadd.f32 %v1932_v27, %v1910_v60  ;;  %v3460_v60 = vld [vmem:[#allocation2 + $0x8] sm:$0xff]  ;;  %v2725_v1 = vld [vmem:[%s4776_s10] ss:$0 sm:$0xff] }
 0x4c8   : > { %v1525_v4 = vsub.f32 0.0, %v1523_v3  ;;  %v1935_v24 = vsub.f32 0.0, %v1933_v36 }
 0x4c9   : > { %v1526_v6 = vsub.f32 0.0, %v1524_v52  ;;  %v1936_v62 = vsub.f32 0.0, %v1934_v37 }
 0x4ca   : > { %v1527_v9 = vmul.f32 1.442695, %v1525_v4  ;;  %v1937_v12 = vmul.f32 1.442695, %v1935_v24 }
 0x4cb   : > { %v1529_v25 = vmul.f32 1.442695, %v1526_v6  ;;  %v1939_v13 = vmul.f32 1.442695, %v1936_v62 }
 0x4cc   : > { %3422 = vpow2.f32 %v1527_v9 }
 0x4cd   : > { %3424 = vpow2.f32 %v1529_v25 }
 0x4d6   : > { %v3423_v10 = vpop.eup %3422 }
 0x4d7   : > { %v3425_v16 = vpop.eup %3424  ;;  %v1531_v11 = vadd.f32 1.0, %v3423_v10 }
 0x4d8   : > { %v1532_v17 = vadd.f32 1.0, %v3425_v16 }
 0x4d9   : > { %3426 = vrcp.f32 %v1531_v11 }
 0x4da   : > { %3428 = vrcp.f32 %v1532_v17 }
 0x4db   : > { %3430 = vpow2.f32 %v1937_v12 }
 0x4dc   : > { %3432 = vpow2.f32 %v1939_v13 }
 0x4e3   : > { %v3427_v26 = vpop.eup %3426 }
 0x4e4   : > { %v3429_v5 = vpop.eup %3428 }
 0x4e5   : > { %v3431_v33 = vpop.eup %3430 }
 0x4e6   : > { %v3433_v34 = vpop.eup %3432  ;;  %v1941_v38 = vadd.f32 1.0, %v3431_v33 }
 0x4e7   : > { %v1942_v40 = vadd.f32 1.0, %v3433_v34 }
 0x4e8   : > { %3434 = vrcp.f32 %v1941_v38 }
 0x4e9   : > { %3436 = vrcp.f32 %v1942_v40 }
 0x4f2   : > { %v3435_v47 = vpop.eup %3434 }
 0x4f3   : > { %v3437_v48 = vpop.eup %3436  ;;  %v2367_v2 = vsub.f32 1.0, %v3435_v47  ;;  %v2371_v49 = vmul.f32 %v4468_v44, %v3435_v47 }
 0x4f4   : > { %v2368_v53 = vsub.f32 1.0, %v3437_v48  ;;  %v2372_v56 = vmul.f32 %v3460_v60, %v3437_v48 }
 0x506   : > { %v2356_v59 = vpop.f32.mrb[4].mxu0 }
 0x507   : > { %v2357_v35 = vadd.f32 %v2356_v59, %v2285_v8  ;;  %v2358_v19 = vpop.f32.mrb[5].mxu0 }
 0x508   : > { %v2359_v31 = vadd.f32 %v2358_v19, %v2289_v22 }
 0x509   : > { %v2361_v7 = vmul.f32 %v3427_v26, %v2357_v35 }
 0x50a   : > { %v2362_v21 = vmul.f32 %v3429_v5, %v2359_v31 }
 0x525   : > { %v2182_v41 = vpop.f32.mrb[2].mxu1 }
 0x526   : > { %v2205_v42 = vadd.f32 %v2200_v39, %v2182_v41  ;;  %v2184_v28 = vpop.f32.mrb[3].mxu1 }
 0x527   : > { %v2206_v43 = vadd.f32 %v2204_v32, %v2184_v28 }
 0x528   : > { %v2363_v45 = vadd.f32 %v2361_v7, %v2205_v42 }
 0x529   : > { %v2364_v46 = vadd.f32 %v2362_v21, %v2206_v43 }
 0x52a   : > { %3438 = vtanh.f32 %v2363_v45 }
 0x52b   : > { %3440 = vtanh.f32 %v2364_v46 }
 0x534   : > { %v3439_v51 = vpop.eup %3438 }
 0x535   : > { %v3441_v54 = vpop.eup %3440  ;;  %v2369_v57 = vmul.f32 %v3439_v51, %v2367_v2 }
 0x536   : > { %v2370_v58 = vmul.f32 %v3441_v54, %v2368_v53 }
 0x537   : > { %v2373_v61 = vadd.f32 %v2371_v49, %v2369_v57 }
 0x538   : > { %v2374_v63 = vadd.f32 %v2372_v56, %v2370_v58 }
 0x539   : > { %2375 = vst [vmem:[#allocation2] sm:$0xff] %v2373_v61 }
 0x53a   : > { %2376 = vst [vmem:[#allocation2 + $0x8] sm:$0xff] %v2374_v63  ;;  %2480 = vmatprep.mubr.f32.mxu0 %v2374_v63 }
 0x53b   : > { %2481 = vmatmul.mubr.f32.vlgmr.msra.gmra.mrb[6].mxu0 %v2373_v61 }
 0x60e   : > { %v2778_v0 = vpop.f32.mrb[6].mxu0 }
 0x60f   : > { %v2779_v3 = vpop.f32.mrb[7].mxu0 }
 0x610   : > { %v2780_v52 = vadd.f32 %v2779_v3, %v2778_v0 }
 0x612   : > { %v2483_v4 = vadd.f32 %v2780_v52, %v2725_v1 }
 0x614   : > { %2486 = vst [vmem:[%s3714_s21] sm:$0xff] %v2483_v4  ;;  %2487 = vmax.xlane.f32.xlu1 %v2483_v4 }
 0x6a1   : > { %v2488_v44 = vpop.xlane.xlu1 %2487 }
 0x6a2   : > { %vm2489_vm9 = vcmp.eq.f32.partialorder %v2483_v4, %v2488_v44 }
 0x6a3   : > { %v2490_v6 = vsel %vm2489_vm9, %v3799_v23, 128 }
 0x6a4   : > { %v2492_v9 = vshra.s32 %v2490_v6, 16  ;;  %v2491_v10 = vand.u32 65535, %v2490_v6 }
 0x6a6   : > { %v2494_v25 = vcvt.s32.f32 %v2492_v9  ;;  %v2493_v11 = vcvt.s32.f32 %v2491_v10 }
 0x6a8   : > { %2495 = vmin.xlane.f32.xlu0 %v2494_v25 }
 0x735   : > { %v2496_v16 = vpop.xlane.xlu0 %2495 }
 0x736   : > { %vm2497_vm10 = vcmp.eq.f32.partialorder %v2494_v25, %v2496_v16  ;;  %v2502_v55 = vcvt.f32.s32 %v2496_v16 }
 0x737   : > { %v2498_v17 = vsel %vm2497_vm10, %v2493_v11, inf }
 0x738   : > { %2499 = vmin.xlane.f32.xlu1 %v2498_v17  ;;  %v2503_v14 = vshll.u32 %v2502_v55, 16 }
 0x7c5   : > { %v2500_v18 = vpop.xlane.xlu1 %2499 }
 0x7c6   : > { %v2501_v20 = vcvt.f32.s32 %v2500_v18 }
 0x7c8   : > { %v2504_v8 = vadd.s32 %v2503_v14, %v2501_v20 }
 0x7ca   : > { %vm2505_vm11 = vcmp.eq.s32.totalorder %v3799_v23, %v2504_v8 }
 0x7cb   : > { %v2726_v22 = vsel %vm2505_vm11, 1.0, %v3557_v30 }
 0x7cc   : > { %2508 = vst [vmem:[#allocation3] sm:$0xff] %v2726_v22 }
 0x7cd PF: > { %s29_s22 = sadd.s32 1, %s3545_s22  }
 0x7ce   : > { %p26_p5 = scmp.ge.s32.totalorder %s29_s22, 9  }
 0x7d0   :  { %28 = sbr.rel (!%p26_p5) target bundleno = 17 (0x11), region = 109 }
 0x7d7   :  { %2528 = vsyncpa [#allocation7], 1 }
 0x7d8   :  { %2530 = vsyncpa [#allocation7 + $0x1], 1 }
 0x7d9   :  { %2531 = vsyncpa [#allocation9], 1 }

</bundles_post_ra>
